<compile_context>
chip_gen: v7x
topology: tpu7x:2x2x1
jax: 0.10.0
libtpu: 0.0.40
codegen_flags: <defaults>
</compile_context>

<pallas_src>
import functools

import jax
import jax.numpy as jnp
from jax.experimental import pallas as pl
from jax.experimental.pallas import tpu as pltpu


_VMEM_LIMIT = 48 * 1024 * 1024   # headroom under v7x's 64 MiB; fine on v5e/v6e
_LN_EPS = 1e-5


def _cparams(n_grid_dims=1):
    return pltpu.CompilerParams(
        dimension_semantics=("parallel",) * n_grid_dims,
        vmem_limit_bytes=_VMEM_LIMIT,
    )


def _row_tile(n: int) -> int:
    """Row tile: multiple of 8, capped at 512, >=2 grid steps when possible."""
    half = -(-n // 2)
    t = -(-half // 8) * 8
    return max(8, min(512, t))


# ----------------------------------------------------------------------------
# Pallas kernels
# ----------------------------------------------------------------------------
def pointnet_lma_pallas(x, p):
    """Fused PointNet per-point MLP (6->64->128->d0) + LMA stand-in Linear(d0->d0).

    x: (N, 6) f32.  Returns (N, d0) bf16.  Hidden width 64 is zero-padded to
    128 lanes at param-prep time (exact), so every intermediate is lane-dense.
    """
    N, Din = x.shape
    d1, d2, d3, d4 = (p["w1"].shape[1], p["w2"].shape[1],
                      p["w3"].shape[1], p["w4"].shape[1])
    tm = _row_tile(N)
    grid = pl.cdiv(N, tm)

    def kernel(x_ref, w1, b1, w2, b2, w3, b3, w4, b4, o_ref):
        h = jnp.dot(x_ref[...].astype(jnp.bfloat16), w1[...],
                    preferred_element_type=jnp.float32) + b1[...]
        h = jnp.maximum(h, 0.0)
        h = jnp.dot(h.astype(jnp.bfloat16), w2[...],
                    preferred_element_type=jnp.float32) + b2[...]
        h = jnp.maximum(h, 0.0)
        h = jnp.dot(h.astype(jnp.bfloat16), w3[...],
                    preferred_element_type=jnp.float32) + b3[...]
        h = jnp.dot(h.astype(jnp.bfloat16), w4[...],
                    preferred_element_type=jnp.float32) + b4[...]
        o_ref[...] = h.astype(jnp.bfloat16)

    return pl.pallas_call(
        kernel,
        out_shape=jax.ShapeDtypeStruct((N, d4), jnp.bfloat16),
        grid=(grid,),
        in_specs=[
            pl.BlockSpec((tm, Din), lambda i: (i, 0)),
            pl.BlockSpec((Din, d1), lambda i: (0, 0)),
            pl.BlockSpec((1, d1), lambda i: (0, 0)),
            pl.BlockSpec((d1, d2), lambda i: (0, 0)),
            pl.BlockSpec((1, d2), lambda i: (0, 0)),
            pl.BlockSpec((d2, d3), lambda i: (0, 0)),
            pl.BlockSpec((1, d3), lambda i: (0, 0)),
            pl.BlockSpec((d3, d4), lambda i: (0, 0)),
            pl.BlockSpec((1, d4), lambda i: (0, 0)),
        ],
        out_specs=pl.BlockSpec((tm, d4), lambda i: (i, 0)),
        compiler_params=_cparams(1),
    )(x, p["w1"], p["b1"], p["w2"], p["b2"], p["w3"], p["b3"], p["w4"], p["b4"])


def attn_block_pallas(x, p, heads, block_b):
    """Fused: QKV proj -> per-head softmax attention -> out-proj -> residual -> LN1.

    x: (B, L, D) bf16 -> (B, L, D) bf16.  Gridded over blocks of `block_b`
    batch elements.  1/sqrt(dh) is folded into the q columns of w_qkv/b_qkv.
    TODO(synk): full (L, L) score per head; switch to flash-style KV tiling
                if L grows beyond a few hundred (VMEM on v7x).
    """
    B, L, D = x.shape
    dh = D // heads

    def kernel(x_ref, wqkv_ref, bqkv_ref, wo_ref, bo_ref, g_ref, be_ref, o_ref):
        for bb in range(block_b):
            xb = x_ref[bb]                                          # (L, D) bf16
            qkv = jnp.dot(xb, wqkv_ref[...],
                          preferred_element_type=jnp.float32) + bqkv_ref[...]
            y = jnp.zeros((L, D), jnp.float32)
            for h in range(heads):
                q = qkv[:, h * dh:(h + 1) * dh].astype(jnp.bfloat16)
                k = qkv[:, D + h * dh:D + (h + 1) * dh].astype(jnp.bfloat16)
                v = qkv[:, 2 * D + h * dh:2 * D + (h + 1) * dh].astype(jnp.bfloat16)
                s = jax.lax.dot_general(q, k, (((1,), (1,)), ((), ())),
                                        preferred_element_type=jnp.float32)  # (L,L)
                m = jnp.max(s, axis=-1, keepdims=True)
                pexp = jnp.exp(s - m)
                pexp = pexp * pl.reciprocal(
                    jnp.sum(pexp, axis=-1, keepdims=True), approx=True)
                ah = jnp.dot(pexp.astype(jnp.bfloat16), v,
                             preferred_element_type=jnp.float32)             # (L,dh)
                # fold the per-head output straight into the out-projection
                # accumulation: no (L, D) lane concat / repack of head slices
                y = y + jnp.dot(ah.astype(jnp.bfloat16),
                                wo_ref[h * dh:(h + 1) * dh, :],
                                preferred_element_type=jnp.float32)
            r = xb.astype(jnp.float32) + y + bo_ref[...]
            mu = jnp.mean(r, axis=-1, keepdims=True)
            var = jnp.mean((r - mu) ** 2, axis=-1, keepdims=True)
            o_ref[bb] = ((r - mu) * jax.lax.rsqrt(var + _LN_EPS)
                         * g_ref[...] + be_ref[...]).astype(jnp.bfloat16)

    grid = pl.cdiv(B, block_b)
    return pl.pallas_call(
        kernel,
        out_shape=jax.ShapeDtypeStruct((B, L, D), jnp.bfloat16),
        grid=(grid,),
        in_specs=[
            pl.BlockSpec((block_b, L, D), lambda i: (i, 0, 0)),
            pl.BlockSpec((D, 3 * D), lambda i: (0, 0)),
            pl.BlockSpec((1, 3 * D), lambda i: (0, 0)),
            pl.BlockSpec((D, D), lambda i: (0, 0)),
            pl.BlockSpec((1, D), lambda i: (0, 0)),
            pl.BlockSpec((1, D), lambda i: (0, 0)),
            pl.BlockSpec((1, D), lambda i: (0, 0)),
        ],
        out_specs=pl.BlockSpec((block_b, L, D), lambda i: (i, 0, 0)),
        compiler_params=_cparams(1),
    )(x, p["w_qkv"], p["b_qkv"], p["wo"], p["bo"], p["ln1_g"], p["ln1_b"])


def ffn_block_pallas(x2d, p):
    """Fused: FFN(Linear+ReLU -> Linear) -> residual -> LN2.

    x2d: (N, D) bf16 -> (N, D) bf16.  The (tm, d_ff) intermediate stays in VMEM.
    """
    N, D = x2d.shape
    d_ff = p["w1"].shape[1]
    tm = _row_tile(N)
    grid = pl.cdiv(N, tm)

    def kernel(x_ref, w1, b1, w2, b2, g_ref, be_ref, o_ref):
        xb = x_ref[...]                                             # (tm, D) bf16
        h = jnp.dot(xb, w1[...], preferred_element_type=jnp.float32) + b1[...]
        h = jnp.maximum(h, 0.0)
        y = jnp.dot(h.astype(jnp.bfloat16), w2[...],
                    preferred_element_type=jnp.float32) + b2[...]
        r = xb.astype(jnp.float32) + y
        mu = jnp.mean(r, axis=-1, keepdims=True)
        var = jnp.mean((r - mu) ** 2, axis=-1, keepdims=True)
        o_ref[...] = ((r - mu) * jax.lax.rsqrt(var + _LN_EPS)
                      * g_ref[...] + be_ref[...]).astype(jnp.bfloat16)

    return pl.pallas_call(
        kernel,
        out_shape=jax.ShapeDtypeStruct((N, D), jnp.bfloat16),
        grid=(grid,),
        in_specs=[
            pl.BlockSpec((tm, D), lambda i: (i, 0)),
            pl.BlockSpec((D, d_ff), lambda i: (0, 0)),
            pl.BlockSpec((1, d_ff), lambda i: (0, 0)),
            pl.BlockSpec((d_ff, D), lambda i: (0, 0)),
            pl.BlockSpec((1, D), lambda i: (0, 0)),
            pl.BlockSpec((1, D), lambda i: (0, 0)),
            pl.BlockSpec((1, D), lambda i: (0, 0)),
        ],
        out_specs=pl.BlockSpec((tm, D), lambda i: (i, 0)),
        compiler_params=_cparams(1),
    )(x2d, p["w1"], p["b1"], p["w2"], p["b2"], p["ln2_g"], p["ln2_b"])


def pool_head_pallas(x, head_w, head_b):
    """AdaptiveMaxPool1d(1) over L fused with the fc_mu|fc_logvar linear.

    x: (B, L, D) bf16 -> (B, D) f32 (mu | logvar concatenated along lanes).
    The masked_fill in the reference uses an all-ones mask -> no-op here.
    """
    B, L, D = x.shape
    Dout = head_w.shape[1]

    def kernel(x_ref, w_ref, b_ref, o_ref):
        pooled = jnp.max(x_ref[...].astype(jnp.float32), axis=1)   # (B, D)
        o_ref[...] = jnp.dot(pooled.astype(jnp.bfloat16), w_ref[...],
                             preferred_element_type=jnp.float32) + b_ref[...]

    return pl.pallas_call(
        kernel,
        out_shape=jax.ShapeDtypeStruct((B, Dout), jnp.float32),
        grid=(1,),
        in_specs=[
            pl.BlockSpec((B, L, D), lambda i: (0, 0, 0)),
            pl.BlockSpec((D, Dout), lambda i: (0, 0)),
            pl.BlockSpec((1, Dout), lambda i: (0, 0)),
        ],
        out_specs=pl.BlockSpec((B, Dout), lambda i: (0, 0)),
        compiler_params=_cparams(1),
    )(x, head_w, head_b)


# ----------------------------------------------------------------------------
# Forward pass (glue in plain JAX; all compute in the kernels above)
# ----------------------------------------------------------------------------
def nemesis_vae_forward(params, points, normals, heads):
    B, L, _ = points.shape
    # --- PointNetBackbone + LMAInitialTransform (stand-in), fused -------------
    x6 = jnp.concatenate([points, normals], axis=-1).reshape(B * L, 6)
    x = pointnet_lma_pallas(x6, params["pointnet"])                 # (B*L, d0) bf16
    D = x.shape[-1]
    x = x.reshape(B, L, D)

    # --- Transformer blocks: 2 pallas_calls per block --------------------------
    block_b = max(1, min(8, B // 2)) if B > 1 else 1                # >=2 grid steps
    for bp in params["blocks"]:
        x = attn_block_pallas(x, bp, heads, block_b)                # (B, L, D) bf16
        x = ffn_block_pallas(x.reshape(B * L, D), bp).reshape(B, L, D)

    # --- masked_fill (all-ones mask -> no-op) + max-pool + fused heads ---------
    out = pool_head_pallas(x, params["head_w"], params["head_b"])   # (B, D) f32
    half = out.shape[-1] // 2
    return out[:, :half], out[:, half:]


# ----------------------------------------------------------------------------
# Deterministic parameter init + one-time kernel-format prep
# ----------------------------------------------------------------------------
def init_linear(key, fan_in, fan_out):
    k1, k2 = jax.random.split(key)
    bound = 1.0 / (fan_in ** 0.5)
    w = jax.random.uniform(k1, (fan_in, fan_out), jnp.float32, -bound, bound)
    b = jax.random.uniform(k2, (fan_out,), jnp.float32, -bound, bound)
    return w, b


def init_params(key, d0, heads, d_ff, n_blocks):
    keys = iter(jax.random.split(key, 8 * n_blocks + 16))
    d_star = d0                      # LMA stand-in keeps the width
    dh = d_star // heads

    # backbone Linear(6,64)/ReLU/Linear(64,128)/ReLU/Linear(128,d0); hidden 64
    # is zero-padded to 128 (exact).  4th matmul = LMA stand-in Linear(d0,d0).
    w1, b1 = init_linear(next(keys), 6, 64)
    w1 = jnp.pad(w1, ((0, 0), (0, 64)))
    b1 = jnp.pad(b1, (0, 64))
    w2, b2 = init_linear(next(keys), 64, 128)
    w2 = jnp.pad(w2, ((0, 64), (0, 0)))
    w3, b3 = init_linear(next(keys), 128, d0)
    w4, b4 = init_linear(next(keys), d0, d_star)
    pointnet = {
        "w1": w1.astype(jnp.bfloat16), "b1": b1.reshape(1, -1),
        "w2": w2.astype(jnp.bfloat16), "b2": b2.reshape(1, -1),
        "w3": w3.astype(jnp.bfloat16), "b3": b3.reshape(1, -1),
        "w4": w4.astype(jnp.bfloat16), "b4": b4.reshape(1, -1),
    }

    scale = 1.0 / (dh ** 0.5)
    blocks = []
    for _ in range(n_blocks):
        wq, bq = init_linear(next(keys), d_star, d_star)
        wk, bk = init_linear(next(keys), d_star, d_star)
        wv, bv = init_linear(next(keys), d_star, d_star)
        # fold the 1/sqrt(dh) softmax scale into the q projection (free)
        w_qkv = jnp.concatenate([wq * scale, wk, wv], axis=1)
        b_qkv = jnp.concatenate([bq * scale, bk, bv])
        wo, bo = init_linear(next(keys), d_star, d_star)
        fw1, fb1 = init_linear(next(keys), d_star, d_ff)
        fw2, fb2 = init_linear(next(keys), d_ff, d_star)
        blocks.append({
            "w_qkv": w_qkv.astype(jnp.bfloat16), "b_qkv": b_qkv.reshape(1, -1),
            "wo": wo.astype(jnp.bfloat16), "bo": bo.reshape(1, -1),
            "ln1_g": jnp.ones((1, d_star), jnp.float32),
            "ln1_b": jnp.zeros((1, d_star), jnp.float32),
            "w1": fw1.astype(jnp.bfloat16), "b1": fb1.reshape(1, -1),
            "w2": fw2.astype(jnp.bfloat16), "b2": fb2.reshape(1, -1),
            "ln2_g": jnp.ones((1, d_star), jnp.float32),
            "ln2_b": jnp.zeros((1, d_star), jnp.float32),
        })

    mu_w, mu_b = init_linear(next(keys), d_star, d_star // 2)
    lv_w, lv_b = init_linear(next(keys), d_star, d_star // 2)
    head_w = jnp.concatenate([mu_w, lv_w], axis=1).astype(jnp.bfloat16)
    head_b = jnp.concatenate([mu_b, lv_b]).reshape(1, -1)

    return {"pointnet": pointnet, "blocks": blocks,
            "head_w": head_w, "head_b": head_b}


# ----------------------------------------------------------------------------
if __name__ == "__main__":
    B, L = 2, 16             # batch, number of points
    d0, heads, d_ff, n_blocks = 128, 4, 256, 2

    key = jax.random.PRNGKey(0)
    kp, kn, kw = jax.random.split(key, 3)
    points = jax.random.normal(kp, (B, L, 3), jnp.float32)
    normals = jax.random.normal(kn, (B, L, 3), jnp.float32)

    params = init_params(kw, d0, heads, d_ff, n_blocks)

    fwd = jax.jit(functools.partial(nemesis_vae_forward, heads=heads))
    mu, logvar = fwd(params, points, normals)
    mu = jax.block_until_ready(mu)
    logvar = jax.block_until_ready(logvar)

    assert mu.shape == (B, d0 // 2) and logvar.shape == (B, d0 // 2)
    assert bool(jnp.all(jnp.isfinite(mu))) and bool(jnp.all(jnp.isfinite(logvar)))
    print("KERNEL_OK")
</pallas_src>

<mosaic_0001>
module attributes {stable_mosaic.version = 11 : i64} {
  func.func @kernel(%arg0: i32, %arg1: memref<1x16x128xbf16, #tpu.memory_space<vmem>>, %arg2: memref<128x384xbf16, #tpu.memory_space<vmem>>, %arg3: memref<1x384xf32, #tpu.memory_space<vmem>>, %arg4: memref<128x128xbf16, #tpu.memory_space<vmem>>, %arg5: memref<1x128xf32, #tpu.memory_space<vmem>>, %arg6: memref<1x128xf32, #tpu.memory_space<vmem>>, %arg7: memref<1x128xf32, #tpu.memory_space<vmem>>, %arg8: memref<1x16x128xbf16, #tpu.memory_space<vmem>>) attributes {dimension_semantics = [#tpu.dimension_semantics<parallel>], iteration_bounds = array<i64: 2>, scalar_prefetch = 0 : i64, scratch_operands = 0 : i64, tpu.core_type = #tpu.core_type<tc>, window_params = [{transform_indices = @transform_0, window_bounds = array<i64: 1, 16, 128>}, {pipeline_mode = #tpu.pipeline_mode<synchronous>, transform_indices = @transform_1, window_bounds = array<i64: 128, 384>}, {pipeline_mode = #tpu.pipeline_mode<synchronous>, transform_indices = @transform_2, window_bounds = array<i64: 1, 384>}, {pipeline_mode = #tpu.pipeline_mode<synchronous>, transform_indices = @transform_3, window_bounds = array<i64: 128, 128>}, {pipeline_mode = #tpu.pipeline_mode<synchronous>, transform_indices = @transform_4, window_bounds = array<i64: 1, 128>}, {pipeline_mode = #tpu.pipeline_mode<synchronous>, transform_indices = @transform_5, window_bounds = array<i64: 1, 128>}, {pipeline_mode = #tpu.pipeline_mode<synchronous>, transform_indices = @transform_6, window_bounds = array<i64: 1, 128>}, {transform_indices = @transform_7, window_bounds = array<i64: 1, 16, 128>}]} {
    %c0 = arith.constant 0 : index
    %c0_0 = arith.constant 0 : index
    %c0_1 = arith.constant 0 : index
    %0 = vector.load %arg1[%c0, %c0_0, %c0_1] : memref<1x16x128xbf16, #tpu.memory_space<vmem>>, vector<1x16x128xbf16>
    %1 = vector.shape_cast %0 : vector<1x16x128xbf16> to vector<16x128xbf16>
    %c0_2 = arith.constant 0 : index
    %c0_3 = arith.constant 0 : index
    %2 = vector.load %arg2[%c0_2, %c0_3] : memref<128x384xbf16, #tpu.memory_space<vmem>>, vector<128x384xbf16>
    %cst = arith.constant dense<0.000000e+00> : vector<16x384xf32>
    %3 = tpu.matmul %1, %2, %cst {dimension_numbers = #tpu.dot_dimension_numbers<[1], [0], [0], [1], [0, 0, 1, 1], [], []>} : vector<16x128xbf16>, vector<128x384xbf16>, vector<16x384xf32> -> vector<16x384xf32>
    %c0_4 = arith.constant 0 : index
    %c0_5 = arith.constant 0 : index
    %4 = vector.load %arg3[%c0_4, %c0_5] : memref<1x384xf32, #tpu.memory_space<vmem>>, vector<1x384xf32>
    %5 = vector.broadcast %4 : vector<1x384xf32> to vector<16x384xf32>
    %6 = arith.addf %3, %5 : vector<16x384xf32>
    %cst_6 = arith.constant 0.000000e+00 : f32
    %7 = vector.broadcast %cst_6 : f32 to vector<16x128xf32>
    %8 = vector.extract_strided_slice %6 {offsets = [0, 0], sizes = [16, 32], strides = [1, 1]} : vector<16x384xf32> to vector<16x32xf32>
    %9 = arith.truncf %8 : vector<16x32xf32> to vector<16x32xbf16>
    %10 = vector.extract_strided_slice %6 {offsets = [0, 128], sizes = [16, 32], strides = [1, 1]} : vector<16x384xf32> to vector<16x32xf32>
    %11 = arith.truncf %10 : vector<16x32xf32> to vector<16x32xbf16>
    %12 = vector.extract_strided_slice %6 {offsets = [0, 256], sizes = [16, 32], strides = [1, 1]} : vector<16x384xf32> to vector<16x32xf32>
    %13 = arith.truncf %12 : vector<16x32xf32> to vector<16x32xbf16>
    %cst_7 = arith.constant dense<0.000000e+00> : vector<16x16xf32>
    %14 = tpu.matmul %9, %11, %cst_7 {dimension_numbers = #tpu.dot_dimension_numbers<[1], [1], [0], [0], [0, 0, 1, 0], [], []>} : vector<16x32xbf16>, vector<16x32xbf16>, vector<16x16xf32> -> vector<16x16xf32>
    %cst_8 = arith.constant dense<0xFF800000> : vector<16xf32>
    %15 = vector.multi_reduction <maximumf>, %14, %cst_8 [1] : vector<16x16xf32> to vector<16xf32>
    %16 = vector.shape_cast %15 : vector<16xf32> to vector<16x1xf32>
    %17 = vector.broadcast %16 : vector<16x1xf32> to vector<16x16xf32>
    %18 = arith.subf %14, %17 : vector<16x16xf32>
    %19 = math.exp %18 : vector<16x16xf32>
    %cst_9 = arith.constant dense<0.000000e+00> : vector<16xf32>
    %20 = vector.multi_reduction <add>, %19, %cst_9 [1] : vector<16x16xf32> to vector<16xf32>
    %21 = vector.shape_cast %20 : vector<16xf32> to vector<16x1xf32>
    %22 = tpu.reciprocal %21 {approx = true} : vector<16x1xf32> -> vector<16x1xf32>
    %23 = vector.broadcast %22 : vector<16x1xf32> to vector<16x16xf32>
    %24 = arith.mulf %19, %23 : vector<16x16xf32>
    %25 = arith.truncf %24 : vector<16x16xf32> to vector<16x16xbf16>
    %cst_10 = arith.constant dense<0.000000e+00> : vector<16x32xf32>
    %26 = tpu.matmul %25, %13, %cst_10 {dimension_numbers = #tpu.dot_dimension_numbers<[1], [0], [0], [1], [0, 0, 1, 1], [], []>} : vector<16x16xbf16>, vector<16x32xbf16>, vector<16x32xf32> -> vector<16x32xf32>
    %27 = arith.truncf %26 : vector<16x32xf32> to vector<16x32xbf16>
    %c0_11 = arith.constant 0 : index
    %c0_12 = arith.constant 0 : index
    %28 = vector.load %arg4[%c0_11, %c0_12] : memref<128x128xbf16, #tpu.memory_space<vmem>>, vector<32x128xbf16>
    %cst_13 = arith.constant dense<0.000000e+00> : vector<16x128xf32>
    %29 = tpu.matmul %27, %28, %cst_13 {dimension_numbers = #tpu.dot_dimension_numbers<[1], [0], [0], [1], [0, 0, 1, 1], [], []>} : vector<16x32xbf16>, vector<32x128xbf16>, vector<16x128xf32> -> vector<16x128xf32>
    %30 = arith.addf %7, %29 : vector<16x128xf32>
    %31 = vector.extract_strided_slice %6 {offsets = [0, 32], sizes = [16, 32], strides = [1, 1]} : vector<16x384xf32> to vector<16x32xf32>
    %32 = arith.truncf %31 : vector<16x32xf32> to vector<16x32xbf16>
    %33 = vector.extract_strided_slice %6 {offsets = [0, 160], sizes = [16, 32], strides = [1, 1]} : vector<16x384xf32> to vector<16x32xf32>
    %34 = arith.truncf %33 : vector<16x32xf32> to vector<16x32xbf16>
    %35 = vector.extract_strided_slice %6 {offsets = [0, 288], sizes = [16, 32], strides = [1, 1]} : vector<16x384xf32> to vector<16x32xf32>
    %36 = arith.truncf %35 : vector<16x32xf32> to vector<16x32xbf16>
    %cst_14 = arith.constant dense<0.000000e+00> : vector<16x16xf32>
    %37 = tpu.matmul %32, %34, %cst_14 {dimension_numbers = #tpu.dot_dimension_numbers<[1], [1], [0], [0], [0, 0, 1, 0], [], []>} : vector<16x32xbf16>, vector<16x32xbf16>, vector<16x16xf32> -> vector<16x16xf32>
    %cst_15 = arith.constant dense<0xFF800000> : vector<16xf32>
    %38 = vector.multi_reduction <maximumf>, %37, %cst_15 [1] : vector<16x16xf32> to vector<16xf32>
    %39 = vector.shape_cast %38 : vector<16xf32> to vector<16x1xf32>
    %40 = vector.broadcast %39 : vector<16x1xf32> to vector<16x16xf32>
    %41 = arith.subf %37, %40 : vector<16x16xf32>
    %42 = math.exp %41 : vector<16x16xf32>
    %cst_16 = arith.constant dense<0.000000e+00> : vector<16xf32>
    %43 = vector.multi_reduction <add>, %42, %cst_16 [1] : vector<16x16xf32> to vector<16xf32>
    %44 = vector.shape_cast %43 : vector<16xf32> to vector<16x1xf32>
    %45 = tpu.reciprocal %44 {approx = true} : vector<16x1xf32> -> vector<16x1xf32>
    %46 = vector.broadcast %45 : vector<16x1xf32> to vector<16x16xf32>
    %47 = arith.mulf %42, %46 : vector<16x16xf32>
    %48 = arith.truncf %47 : vector<16x16xf32> to vector<16x16xbf16>
    %cst_17 = arith.constant dense<0.000000e+00> : vector<16x32xf32>
    %49 = tpu.matmul %48, %36, %cst_17 {dimension_numbers = #tpu.dot_dimension_numbers<[1], [0], [0], [1], [0, 0, 1, 1], [], []>} : vector<16x16xbf16>, vector<16x32xbf16>, vector<16x32xf32> -> vector<16x32xf32>
    %50 = arith.truncf %49 : vector<16x32xf32> to vector<16x32xbf16>
    %c32 = arith.constant 32 : index
    %c0_18 = arith.constant 0 : index
    %51 = vector.load %arg4[%c32, %c0_18] : memref<128x128xbf16, #tpu.memory_space<vmem>>, vector<32x128xbf16>
    %cst_19 = arith.constant dense<0.000000e+00> : vector<16x128xf32>
    %52 = tpu.matmul %50, %51, %cst_19 {dimension_numbers = #tpu.dot_dimension_numbers<[1], [0], [0], [1], [0, 0, 1, 1], [], []>} : vector<16x32xbf16>, vector<32x128xbf16>, vector<16x128xf32> -> vector<16x128xf32>
    %53 = arith.addf %30, %52 : vector<16x128xf32>
    %54 = vector.extract_strided_slice %6 {offsets = [0, 64], sizes = [16, 32], strides = [1, 1]} : vector<16x384xf32> to vector<16x32xf32>
    %55 = arith.truncf %54 : vector<16x32xf32> to vector<16x32xbf16>
    %56 = vector.extract_strided_slice %6 {offsets = [0, 192], sizes = [16, 32], strides = [1, 1]} : vector<16x384xf32> to vector<16x32xf32>
    %57 = arith.truncf %56 : vector<16x32xf32> to vector<16x32xbf16>
    %58 = vector.extract_strided_slice %6 {offsets = [0, 320], sizes = [16, 32], strides = [1, 1]} : vector<16x384xf32> to vector<16x32xf32>
    %59 = arith.truncf %58 : vector<16x32xf32> to vector<16x32xbf16>
    %cst_20 = arith.constant dense<0.000000e+00> : vector<16x16xf32>
    %60 = tpu.matmul %55, %57, %cst_20 {dimension_numbers = #tpu.dot_dimension_numbers<[1], [1], [0], [0], [0, 0, 1, 0], [], []>} : vector<16x32xbf16>, vector<16x32xbf16>, vector<16x16xf32> -> vector<16x16xf32>
    %cst_21 = arith.constant dense<0xFF800000> : vector<16xf32>
    %61 = vector.multi_reduction <maximumf>, %60, %cst_21 [1] : vector<16x16xf32> to vector<16xf32>
    %62 = vector.shape_cast %61 : vector<16xf32> to vector<16x1xf32>
    %63 = vector.broadcast %62 : vector<16x1xf32> to vector<16x16xf32>
    %64 = arith.subf %60, %63 : vector<16x16xf32>
    %65 = math.exp %64 : vector<16x16xf32>
    %cst_22 = arith.constant dense<0.000000e+00> : vector<16xf32>
    %66 = vector.multi_reduction <add>, %65, %cst_22 [1] : vector<16x16xf32> to vector<16xf32>
    %67 = vector.shape_cast %66 : vector<16xf32> to vector<16x1xf32>
    %68 = tpu.reciprocal %67 {approx = true} : vector<16x1xf32> -> vector<16x1xf32>
    %69 = vector.broadcast %68 : vector<16x1xf32> to vector<16x16xf32>
    %70 = arith.mulf %65, %69 : vector<16x16xf32>
    %71 = arith.truncf %70 : vector<16x16xf32> to vector<16x16xbf16>
    %cst_23 = arith.constant dense<0.000000e+00> : vector<16x32xf32>
    %72 = tpu.matmul %71, %59, %cst_23 {dimension_numbers = #tpu.dot_dimension_numbers<[1], [0], [0], [1], [0, 0, 1, 1], [], []>} : vector<16x16xbf16>, vector<16x32xbf16>, vector<16x32xf32> -> vector<16x32xf32>
    %73 = arith.truncf %72 : vector<16x32xf32> to vector<16x32xbf16>
    %c64 = arith.constant 64 : index
    %c0_24 = arith.constant 0 : index
    %74 = vector.load %arg4[%c64, %c0_24] : memref<128x128xbf16, #tpu.memory_space<vmem>>, vector<32x128xbf16>
    %cst_25 = arith.constant dense<0.000000e+00> : vector<16x128xf32>
    %75 = tpu.matmul %73, %74, %cst_25 {dimension_numbers = #tpu.dot_dimension_numbers<[1], [0], [0], [1], [0, 0, 1, 1], [], []>} : vector<16x32xbf16>, vector<32x128xbf16>, vector<16x128xf32> -> vector<16x128xf32>
    %76 = arith.addf %53, %75 : vector<16x128xf32>
    %77 = vector.extract_strided_slice %6 {offsets = [0, 96], sizes = [16, 32], strides = [1, 1]} : vector<16x384xf32> to vector<16x32xf32>
    %78 = arith.truncf %77 : vector<16x32xf32> to vector<16x32xbf16>
    %79 = vector.extract_strided_slice %6 {offsets = [0, 224], sizes = [16, 32], strides = [1, 1]} : vector<16x384xf32> to vector<16x32xf32>
    %80 = arith.truncf %79 : vector<16x32xf32> to vector<16x32xbf16>
    %81 = vector.extract_strided_slice %6 {offsets = [0, 352], sizes = [16, 32], strides = [1, 1]} : vector<16x384xf32> to vector<16x32xf32>
    %82 = arith.truncf %81 : vector<16x32xf32> to vector<16x32xbf16>
    %cst_26 = arith.constant dense<0.000000e+00> : vector<16x16xf32>
    %83 = tpu.matmul %78, %80, %cst_26 {dimension_numbers = #tpu.dot_dimension_numbers<[1], [1], [0], [0], [0, 0, 1, 0], [], []>} : vector<16x32xbf16>, vector<16x32xbf16>, vector<16x16xf32> -> vector<16x16xf32>
    %cst_27 = arith.constant dense<0xFF800000> : vector<16xf32>
    %84 = vector.multi_reduction <maximumf>, %83, %cst_27 [1] : vector<16x16xf32> to vector<16xf32>
    %85 = vector.shape_cast %84 : vector<16xf32> to vector<16x1xf32>
    %86 = vector.broadcast %85 : vector<16x1xf32> to vector<16x16xf32>
    %87 = arith.subf %83, %86 : vector<16x16xf32>
    %88 = math.exp %87 : vector<16x16xf32>
    %cst_28 = arith.constant dense<0.000000e+00> : vector<16xf32>
    %89 = vector.multi_reduction <add>, %88, %cst_28 [1] : vector<16x16xf32> to vector<16xf32>
    %90 = vector.shape_cast %89 : vector<16xf32> to vector<16x1xf32>
    %91 = tpu.reciprocal %90 {approx = true} : vector<16x1xf32> -> vector<16x1xf32>
    %92 = vector.broadcast %91 : vector<16x1xf32> to vector<16x16xf32>
    %93 = arith.mulf %88, %92 : vector<16x16xf32>
    %94 = arith.truncf %93 : vector<16x16xf32> to vector<16x16xbf16>
    %cst_29 = arith.constant dense<0.000000e+00> : vector<16x32xf32>
    %95 = tpu.matmul %94, %82, %cst_29 {dimension_numbers = #tpu.dot_dimension_numbers<[1], [0], [0], [1], [0, 0, 1, 1], [], []>} : vector<16x16xbf16>, vector<16x32xbf16>, vector<16x32xf32> -> vector<16x32xf32>
    %96 = arith.truncf %95 : vector<16x32xf32> to vector<16x32xbf16>
    %c96 = arith.constant 96 : index
    %c0_30 = arith.constant 0 : index
    %97 = vector.load %arg4[%c96, %c0_30] : memref<128x128xbf16, #tpu.memory_space<vmem>>, vector<32x128xbf16>
    %cst_31 = arith.constant dense<0.000000e+00> : vector<16x128xf32>
    %98 = tpu.matmul %96, %97, %cst_31 {dimension_numbers = #tpu.dot_dimension_numbers<[1], [0], [0], [1], [0, 0, 1, 1], [], []>} : vector<16x32xbf16>, vector<32x128xbf16>, vector<16x128xf32> -> vector<16x128xf32>
    %99 = arith.addf %76, %98 : vector<16x128xf32>
    %100 = arith.extf %1 : vector<16x128xbf16> to vector<16x128xf32>
    %101 = arith.addf %100, %99 : vector<16x128xf32>
    %c0_32 = arith.constant 0 : index
    %c0_33 = arith.constant 0 : index
    %102 = vector.load %arg5[%c0_32, %c0_33] : memref<1x128xf32, #tpu.memory_space<vmem>>, vector<1x128xf32>
    %103 = vector.broadcast %102 : vector<1x128xf32> to vector<16x128xf32>
    %104 = arith.addf %101, %103 : vector<16x128xf32>
    %cst_34 = arith.constant dense<0.000000e+00> : vector<16xf32>
    %105 = vector.multi_reduction <add>, %104, %cst_34 [1] : vector<16x128xf32> to vector<16xf32>
    %106 = vector.shape_cast %105 : vector<16xf32> to vector<16x1xf32>
    %cst_35 = arith.constant 1.280000e+02 : f32
    %107 = vector.broadcast %cst_35 : f32 to vector<16x1xf32>
    %108 = arith.divf %106, %107 : vector<16x1xf32>
    %109 = vector.broadcast %108 : vector<16x1xf32> to vector<16x128xf32>
    %110 = arith.subf %104, %109 : vector<16x128xf32>
    %111 = arith.mulf %110, %110 : vector<16x128xf32>
    %cst_36 = arith.constant dense<0.000000e+00> : vector<16xf32>
    %112 = vector.multi_reduction <add>, %111, %cst_36 [1] : vector<16x128xf32> to vector<16xf32>
    %113 = vector.shape_cast %112 : vector<16xf32> to vector<16x1xf32>
    %cst_37 = arith.constant 1.280000e+02 : f32
    %114 = vector.broadcast %cst_37 : f32 to vector<16x1xf32>
    %115 = arith.divf %113, %114 : vector<16x1xf32>
    %116 = vector.broadcast %108 : vector<16x1xf32> to vector<16x128xf32>
    %117 = arith.subf %104, %116 : vector<16x128xf32>
    %cst_38 = arith.constant 9.99999974E-6 : f32
    %118 = vector.broadcast %cst_38 : f32 to vector<16x1xf32>
    %119 = arith.addf %115, %118 : vector<16x1xf32>
    %120 = math.rsqrt %119 : vector<16x1xf32>
    %121 = vector.broadcast %120 : vector<16x1xf32> to vector<16x128xf32>
    %122 = arith.mulf %117, %121 : vector<16x128xf32>
    %c0_39 = arith.constant 0 : index
    %c0_40 = arith.constant 0 : index
    %123 = vector.load %arg6[%c0_39, %c0_40] : memref<1x128xf32, #tpu.memory_space<vmem>>, vector<1x128xf32>
    %124 = vector.broadcast %123 : vector<1x128xf32> to vector<16x128xf32>
    %125 = arith.mulf %122, %124 : vector<16x128xf32>
    %c0_41 = arith.constant 0 : index
    %c0_42 = arith.constant 0 : index
    %126 = vector.load %arg7[%c0_41, %c0_42] : memref<1x128xf32, #tpu.memory_space<vmem>>, vector<1x128xf32>
    %127 = vector.broadcast %126 : vector<1x128xf32> to vector<16x128xf32>
    %128 = arith.addf %125, %127 : vector<16x128xf32>
    %129 = arith.truncf %128 : vector<16x128xf32> to vector<16x128xbf16>
    %c0_43 = arith.constant 0 : index
    %c0_44 = arith.constant 0 : index
    %c0_45 = arith.constant 0 : index
    %130 = vector.load %arg8[%c0_43, %c0_44, %c0_45] : memref<1x16x128xbf16, #tpu.memory_space<vmem>>, vector<1x16x128xbf16>
    %131 = vector.shape_cast %130 : vector<1x16x128xbf16> to vector<16x128xbf16>
    %132 = vector.shape_cast %129 : vector<16x128xbf16> to vector<1x16x128xbf16>
    tpu.vector_store %arg8[%c0_43, %c0_44, %c0_45], %132 {strides = array<i32>} : memref<1x16x128xbf16, #tpu.memory_space<vmem>>, vector<1x16x128xbf16>,
    return
  }
  func.func @transform_0(%arg0: i32) -> (i32, i32, i32) {
    %c0_i32 = arith.constant 0 : i32
    %c0_i32_0 = arith.constant 0 : i32
    %c0_i32_1 = arith.constant 0 : i32
    return %arg0, %c0_i32, %c0_i32_0 : i32, i32, i32
  }
  func.func @transform_1(%arg0: i32) -> (i32, i32) {
    %c0_i32 = arith.constant 0 : i32
    %c0_i32_0 = arith.constant 0 : i32
    %c0_i32_1 = arith.constant 0 : i32
    return %c0_i32, %c0_i32_0 : i32, i32
  }
  func.func @transform_2(%arg0: i32) -> (i32, i32) {
    %c0_i32 = arith.constant 0 : i32
    %c0_i32_0 = arith.constant 0 : i32
    %c0_i32_1 = arith.constant 0 : i32
    return %c0_i32, %c0_i32_0 : i32, i32
  }
  func.func @transform_3(%arg0: i32) -> (i32, i32) {
    %c0_i32 = arith.constant 0 : i32
    %c0_i32_0 = arith.constant 0 : i32
    %c0_i32_1 = arith.constant 0 : i32
    return %c0_i32, %c0_i32_0 : i32, i32
  }
  func.func @transform_4(%arg0: i32) -> (i32, i32) {
    %c0_i32 = arith.constant 0 : i32
    %c0_i32_0 = arith.constant 0 : i32
    %c0_i32_1 = arith.constant 0 : i32
    return %c0_i32, %c0_i32_0 : i32, i32
  }
  func.func @transform_5(%arg0: i32) -> (i32, i32) {
    %c0_i32 = arith.constant 0 : i32
    %c0_i32_0 = arith.constant 0 : i32
    %c0_i32_1 = arith.constant 0 : i32
    return %c0_i32, %c0_i32_0 : i32, i32
  }
  func.func @transform_6(%arg0: i32) -> (i32, i32) {
    %c0_i32 = arith.constant 0 : i32
    %c0_i32_0 = arith.constant 0 : i32
    %c0_i32_1 = arith.constant 0 : i32
    return %c0_i32, %c0_i32_0 : i32, i32
  }
  func.func @transform_7(%arg0: i32) -> (i32, i32, i32) {
    %c0_i32 = arith.constant 0 : i32
    %c0_i32_0 = arith.constant 0 : i32
    %c0_i32_1 = arith.constant 0 : i32
    return %arg0, %c0_i32, %c0_i32_0 : i32, i32, i32
  }
}

module attributes {stable_mosaic.version = 11 : i64} {
  func.func @kernel(%arg0: i32, %arg1: memref<16x6xf32, #tpu.memory_space<vmem>>, %arg2: memref<6x128xbf16, #tpu.memory_space<vmem>>, %arg3: memref<1x128xf32, #tpu.memory_space<vmem>>, %arg4: memref<128x128xbf16, #tpu.memory_space<vmem>>, %arg5: memref<1x128xf32, #tpu.memory_space<vmem>>, %arg6: memref<128x128xbf16, #tpu.memory_space<vmem>>, %arg7: memref<1x128xf32, #tpu.memory_space<vmem>>, %arg8: memref<128x128xbf16, #tpu.memory_space<vmem>>, %arg9: memref<1x128xf32, #tpu.memory_space<vmem>>, %arg10: memref<16x128xbf16, #tpu.memory_space<vmem>>) attributes {dimension_semantics = [#tpu.dimension_semantics<parallel>], iteration_bounds = array<i64: 2>, scalar_prefetch = 0 : i64, scratch_operands = 0 : i64, tpu.core_type = #tpu.core_type<tc>, window_params = [{transform_indices = @transform_0, window_bounds = array<i64: 16, 6>}, {pipeline_mode = #tpu.pipeline_mode<synchronous>, transform_indices = @transform_1, window_bounds = array<i64: 6, 128>}, {pipeline_mode = #tpu.pipeline_mode<synchronous>, transform_indices = @transform_2, window_bounds = array<i64: 1, 128>}, {pipeline_mode = #tpu.pipeline_mode<synchronous>, transform_indices = @transform_3, window_bounds = array<i64: 128, 128>}, {pipeline_mode = #tpu.pipeline_mode<synchronous>, transform_indices = @transform_4, window_bounds = array<i64: 1, 128>}, {pipeline_mode = #tpu.pipeline_mode<synchronous>, transform_indices = @transform_5, window_bounds = array<i64: 128, 128>}, {pipeline_mode = #tpu.pipeline_mode<synchronous>, transform_indices = @transform_6, window_bounds = array<i64: 1, 128>}, {pipeline_mode = #tpu.pipeline_mode<synchronous>, transform_indices = @transform_7, window_bounds = array<i64: 128, 128>}, {pipeline_mode = #tpu.pipeline_mode<synchronous>, transform_indices = @transform_8, window_bounds = array<i64: 1, 128>}, {transform_indices = @transform_9, window_bounds = array<i64: 16, 128>}]} {
    %c0 = arith.constant 0 : index
    %c0_0 = arith.constant 0 : index
    %0 = vector.load %arg1[%c0, %c0_0] : memref<16x6xf32, #tpu.memory_space<vmem>>, vector<16x6xf32>
    %1 = arith.truncf %0 : vector<16x6xf32> to vector<16x6xbf16>
    %c0_1 = arith.constant 0 : index
    %c0_2 = arith.constant 0 : index
    %2 = vector.load %arg2[%c0_1, %c0_2] : memref<6x128xbf16, #tpu.memory_space<vmem>>, vector<6x128xbf16>
    %cst = arith.constant dense<0.000000e+00> : vector<16x128xf32>
    %3 = tpu.matmul %1, %2, %cst {dimension_numbers = #tpu.dot_dimension_numbers<[1], [0], [0], [1], [0, 0, 1, 1], [], []>} : vector<16x6xbf16>, vector<6x128xbf16>, vector<16x128xf32> -> vector<16x128xf32>
    %c0_3 = arith.constant 0 : index
    %c0_4 = arith.constant 0 : index
    %4 = vector.load %arg3[%c0_3, %c0_4] : memref<1x128xf32, #tpu.memory_space<vmem>>, vector<1x128xf32>
    %5 = vector.broadcast %4 : vector<1x128xf32> to vector<16x128xf32>
    %6 = arith.addf %3, %5 : vector<16x128xf32>
    %cst_5 = arith.constant 0.000000e+00 : f32
    %7 = vector.broadcast %cst_5 : f32 to vector<16x128xf32>
    %8 = arith.maximumf %6, %7 : vector<16x128xf32>
    %9 = arith.truncf %8 : vector<16x128xf32> to vector<16x128xbf16>
    %c0_6 = arith.constant 0 : index
    %c0_7 = arith.constant 0 : index
    %10 = vector.load %arg4[%c0_6, %c0_7] : memref<128x128xbf16, #tpu.memory_space<vmem>>, vector<128x128xbf16>
    %cst_8 = arith.constant dense<0.000000e+00> : vector<16x128xf32>
    %11 = tpu.matmul %9, %10, %cst_8 {dimension_numbers = #tpu.dot_dimension_numbers<[1], [0], [0], [1], [0, 0, 1, 1], [], []>} : vector<16x128xbf16>, vector<128x128xbf16>, vector<16x128xf32> -> vector<16x128xf32>
    %c0_9 = arith.constant 0 : index
    %c0_10 = arith.constant 0 : index
    %12 = vector.load %arg5[%c0_9, %c0_10] : memref<1x128xf32, #tpu.memory_space<vmem>>, vector<1x128xf32>
    %13 = vector.broadcast %12 : vector<1x128xf32> to vector<16x128xf32>
    %14 = arith.addf %11, %13 : vector<16x128xf32>
    %cst_11 = arith.constant 0.000000e+00 : f32
    %15 = vector.broadcast %cst_11 : f32 to vector<16x128xf32>
    %16 = arith.maximumf %14, %15 : vector<16x128xf32>
    %17 = arith.truncf %16 : vector<16x128xf32> to vector<16x128xbf16>
    %c0_12 = arith.constant 0 : index
    %c0_13 = arith.constant 0 : index
    %18 = vector.load %arg6[%c0_12, %c0_13] : memref<128x128xbf16, #tpu.memory_space<vmem>>, vector<128x128xbf16>
    %cst_14 = arith.constant dense<0.000000e+00> : vector<16x128xf32>
    %19 = tpu.matmul %17, %18, %cst_14 {dimension_numbers = #tpu.dot_dimension_numbers<[1], [0], [0], [1], [0, 0, 1, 1], [], []>} : vector<16x128xbf16>, vector<128x128xbf16>, vector<16x128xf32> -> vector<16x128xf32>
    %c0_15 = arith.constant 0 : index
    %c0_16 = arith.constant 0 : index
    %20 = vector.load %arg7[%c0_15, %c0_16] : memref<1x128xf32, #tpu.memory_space<vmem>>, vector<1x128xf32>
    %21 = vector.broadcast %20 : vector<1x128xf32> to vector<16x128xf32>
    %22 = arith.addf %19, %21 : vector<16x128xf32>
    %23 = arith.truncf %22 : vector<16x128xf32> to vector<16x128xbf16>
    %c0_17 = arith.constant 0 : index
    %c0_18 = arith.constant 0 : index
    %24 = vector.load %arg8[%c0_17, %c0_18] : memref<128x128xbf16, #tpu.memory_space<vmem>>, vector<128x128xbf16>
    %cst_19 = arith.constant dense<0.000000e+00> : vector<16x128xf32>
    %25 = tpu.matmul %23, %24, %cst_19 {dimension_numbers = #tpu.dot_dimension_numbers<[1], [0], [0], [1], [0, 0, 1, 1], [], []>} : vector<16x128xbf16>, vector<128x128xbf16>, vector<16x128xf32> -> vector<16x128xf32>
    %c0_20 = arith.constant 0 : index
    %c0_21 = arith.constant 0 : index
    %26 = vector.load %arg9[%c0_20, %c0_21] : memref<1x128xf32, #tpu.memory_space<vmem>>, vector<1x128xf32>
    %27 = vector.broadcast %26 : vector<1x128xf32> to vector<16x128xf32>
    %28 = arith.addf %25, %27 : vector<16x128xf32>
    %29 = arith.truncf %28 : vector<16x128xf32> to vector<16x128xbf16>
    %c0_22 = arith.constant 0 : index
    %c0_23 = arith.constant 0 : index
    %30 = vector.load %arg10[%c0_22, %c0_23] : memref<16x128xbf16, #tpu.memory_space<vmem>>, vector<16x128xbf16>
    tpu.vector_store %arg10[%c0_22, %c0_23], %29 {strides = array<i32>} : memref<16x128xbf16, #tpu.memory_space<vmem>>, vector<16x128xbf16>,
    return
  }
  func.func @transform_0(%arg0: i32) -> (i32, i32) {
    %c0_i32 = arith.constant 0 : i32
    %c0_i32_0 = arith.constant 0 : i32
    return %arg0, %c0_i32 : i32, i32
  }
  func.func @transform_1(%arg0: i32) -> (i32, i32) {
    %c0_i32 = arith.constant 0 : i32
    %c0_i32_0 = arith.constant 0 : i32
    %c0_i32_1 = arith.constant 0 : i32
    return %c0_i32, %c0_i32_0 : i32, i32
  }
  func.func @transform_2(%arg0: i32) -> (i32, i32) {
    %c0_i32 = arith.constant 0 : i32
    %c0_i32_0 = arith.constant 0 : i32
    %c0_i32_1 = arith.constant 0 : i32
    return %c0_i32, %c0_i32_0 : i32, i32
  }
  func.func @transform_3(%arg0: i32) -> (i32, i32) {
    %c0_i32 = arith.constant 0 : i32
    %c0_i32_0 = arith.constant 0 : i32
    %c0_i32_1 = arith.constant 0 : i32
    return %c0_i32, %c0_i32_0 : i32, i32
  }
  func.func @transform_4(%arg0: i32) -> (i32, i32) {
    %c0_i32 = arith.constant 0 : i32
    %c0_i32_0 = arith.constant 0 : i32
    %c0_i32_1 = arith.constant 0 : i32
    return %c0_i32, %c0_i32_0 : i32, i32
  }
  func.func @transform_5(%arg0: i32) -> (i32, i32) {
    %c0_i32 = arith.constant 0 : i32
    %c0_i32_0 = arith.constant 0 : i32
    %c0_i32_1 = arith.constant 0 : i32
    return %c0_i32, %c0_i32_0 : i32, i32
  }
  func.func @transform_6(%arg0: i32) -> (i32, i32) {
    %c0_i32 = arith.constant 0 : i32
    %c0_i32_0 = arith.constant 0 : i32
    %c0_i32_1 = arith.constant 0 : i32
    return %c0_i32, %c0_i32_0 : i32, i32
  }
  func.func @transform_7(%arg0: i32) -> (i32, i32) {
    %c0_i32 = arith.constant 0 : i32
    %c0_i32_0 = arith.constant 0 : i32
    %c0_i32_1 = arith.constant 0 : i32
    return %c0_i32, %c0_i32_0 : i32, i32
  }
  func.func @transform_8(%arg0: i32) -> (i32, i32) {
    %c0_i32 = arith.constant 0 : i32
    %c0_i32_0 = arith.constant 0 : i32
    %c0_i32_1 = arith.constant 0 : i32
    return %c0_i32, %c0_i32_0 : i32, i32
  }
  func.func @transform_9(%arg0: i32) -> (i32, i32) {
    %c0_i32 = arith.constant 0 : i32
    %c0_i32_0 = arith.constant 0 : i32
    return %arg0, %c0_i32 : i32, i32
  }
}

module attributes {stable_mosaic.version = 11 : i64} {
  func.func @kernel(%arg0: i32, %arg1: memref<16x128xbf16, #tpu.memory_space<vmem>>, %arg2: memref<128x256xbf16, #tpu.memory_space<vmem>>, %arg3: memref<1x256xf32, #tpu.memory_space<vmem>>, %arg4: memref<256x128xbf16, #tpu.memory_space<vmem>>, %arg5: memref<1x128xf32, #tpu.memory_space<vmem>>, %arg6: memref<1x128xf32, #tpu.memory_space<vmem>>, %arg7: memref<1x128xf32, #tpu.memory_space<vmem>>, %arg8: memref<16x128xbf16, #tpu.memory_space<vmem>>) attributes {dimension_semantics = [#tpu.dimension_semantics<parallel>], iteration_bounds = array<i64: 2>, scalar_prefetch = 0 : i64, scratch_operands = 0 : i64, tpu.core_type = #tpu.core_type<tc>, window_params = [{transform_indices = @transform_0, window_bounds = array<i64: 16, 128>}, {pipeline_mode = #tpu.pipeline_mode<synchronous>, transform_indices = @transform_1, window_bounds = array<i64: 128, 256>}, {pipeline_mode = #tpu.pipeline_mode<synchronous>, transform_indices = @transform_2, window_bounds = array<i64: 1, 256>}, {pipeline_mode = #tpu.pipeline_mode<synchronous>, transform_indices = @transform_3, window_bounds = array<i64: 256, 128>}, {pipeline_mode = #tpu.pipeline_mode<synchronous>, transform_indices = @transform_4, window_bounds = array<i64: 1, 128>}, {pipeline_mode = #tpu.pipeline_mode<synchronous>, transform_indices = @transform_5, window_bounds = array<i64: 1, 128>}, {pipeline_mode = #tpu.pipeline_mode<synchronous>, transform_indices = @transform_6, window_bounds = array<i64: 1, 128>}, {transform_indices = @transform_7, window_bounds = array<i64: 16, 128>}]} {
    %c0 = arith.constant 0 : index
    %c0_0 = arith.constant 0 : index
    %0 = vector.load %arg1[%c0, %c0_0] : memref<16x128xbf16, #tpu.memory_space<vmem>>, vector<16x128xbf16>
    %c0_1 = arith.constant 0 : index
    %c0_2 = arith.constant 0 : index
    %1 = vector.load %arg2[%c0_1, %c0_2] : memref<128x256xbf16, #tpu.memory_space<vmem>>, vector<128x256xbf16>
    %cst = arith.constant dense<0.000000e+00> : vector<16x256xf32>
    %2 = tpu.matmul %0, %1, %cst {dimension_numbers = #tpu.dot_dimension_numbers<[1], [0], [0], [1], [0, 0, 1, 1], [], []>} : vector<16x128xbf16>, vector<128x256xbf16>, vector<16x256xf32> -> vector<16x256xf32>
    %c0_3 = arith.constant 0 : index
    %c0_4 = arith.constant 0 : index
    %3 = vector.load %arg3[%c0_3, %c0_4] : memref<1x256xf32, #tpu.memory_space<vmem>>, vector<1x256xf32>
    %4 = vector.broadcast %3 : vector<1x256xf32> to vector<16x256xf32>
    %5 = arith.addf %2, %4 : vector<16x256xf32>
    %cst_5 = arith.constant 0.000000e+00 : f32
    %6 = vector.broadcast %cst_5 : f32 to vector<16x256xf32>
    %7 = arith.maximumf %5, %6 : vector<16x256xf32>
    %8 = arith.truncf %7 : vector<16x256xf32> to vector<16x256xbf16>
    %c0_6 = arith.constant 0 : index
    %c0_7 = arith.constant 0 : index
    %9 = vector.load %arg4[%c0_6, %c0_7] : memref<256x128xbf16, #tpu.memory_space<vmem>>, vector<256x128xbf16>
    %cst_8 = arith.constant dense<0.000000e+00> : vector<16x128xf32>
    %10 = tpu.matmul %8, %9, %cst_8 {dimension_numbers = #tpu.dot_dimension_numbers<[1], [0], [0], [1], [0, 0, 1, 1], [], []>} : vector<16x256xbf16>, vector<256x128xbf16>, vector<16x128xf32> -> vector<16x128xf32>
    %c0_9 = arith.constant 0 : index
    %c0_10 = arith.constant 0 : index
    %11 = vector.load %arg5[%c0_9, %c0_10] : memref<1x128xf32, #tpu.memory_space<vmem>>, vector<1x128xf32>
    %12 = vector.broadcast %11 : vector<1x128xf32> to vector<16x128xf32>
    %13 = arith.addf %10, %12 : vector<16x128xf32>
    %14 = arith.extf %0 : vector<16x128xbf16> to vector<16x128xf32>
    %15 = arith.addf %14, %13 : vector<16x128xf32>
    %cst_11 = arith.constant dense<0.000000e+00> : vector<16xf32>
    %16 = vector.multi_reduction <add>, %15, %cst_11 [1] : vector<16x128xf32> to vector<16xf32>
    %17 = vector.shape_cast %16 : vector<16xf32> to vector<16x1xf32>
    %cst_12 = arith.constant 1.280000e+02 : f32
    %18 = vector.broadcast %cst_12 : f32 to vector<16x1xf32>
    %19 = arith.divf %17, %18 : vector<16x1xf32>
    %20 = vector.broadcast %19 : vector<16x1xf32> to vector<16x128xf32>
    %21 = arith.subf %15, %20 : vector<16x128xf32>
    %22 = arith.mulf %21, %21 : vector<16x128xf32>
    %cst_13 = arith.constant dense<0.000000e+00> : vector<16xf32>
    %23 = vector.multi_reduction <add>, %22, %cst_13 [1] : vector<16x128xf32> to vector<16xf32>
    %24 = vector.shape_cast %23 : vector<16xf32> to vector<16x1xf32>
    %cst_14 = arith.constant 1.280000e+02 : f32
    %25 = vector.broadcast %cst_14 : f32 to vector<16x1xf32>
    %26 = arith.divf %24, %25 : vector<16x1xf32>
    %27 = vector.broadcast %19 : vector<16x1xf32> to vector<16x128xf32>
    %28 = arith.subf %15, %27 : vector<16x128xf32>
    %cst_15 = arith.constant 9.99999974E-6 : f32
    %29 = vector.broadcast %cst_15 : f32 to vector<16x1xf32>
    %30 = arith.addf %26, %29 : vector<16x1xf32>
    %31 = math.rsqrt %30 : vector<16x1xf32>
    %32 = vector.broadcast %31 : vector<16x1xf32> to vector<16x128xf32>
    %33 = arith.mulf %28, %32 : vector<16x128xf32>
    %c0_16 = arith.constant 0 : index
    %c0_17 = arith.constant 0 : index
    %34 = vector.load %arg6[%c0_16, %c0_17] : memref<1x128xf32, #tpu.memory_space<vmem>>, vector<1x128xf32>
    %35 = vector.broadcast %34 : vector<1x128xf32> to vector<16x128xf32>
    %36 = arith.mulf %33, %35 : vector<16x128xf32>
    %c0_18 = arith.constant 0 : index
    %c0_19 = arith.constant 0 : index
    %37 = vector.load %arg7[%c0_18, %c0_19] : memref<1x128xf32, #tpu.memory_space<vmem>>, vector<1x128xf32>
    %38 = vector.broadcast %37 : vector<1x128xf32> to vector<16x128xf32>
    %39 = arith.addf %36, %38 : vector<16x128xf32>
    %40 = arith.truncf %39 : vector<16x128xf32> to vector<16x128xbf16>
    %c0_20 = arith.constant 0 : index
    %c0_21 = arith.constant 0 : index
    %41 = vector.load %arg8[%c0_20, %c0_21] : memref<16x128xbf16, #tpu.memory_space<vmem>>, vector<16x128xbf16>
    tpu.vector_store %arg8[%c0_20, %c0_21], %40 {strides = array<i32>} : memref<16x128xbf16, #tpu.memory_space<vmem>>, vector<16x128xbf16>,
    return
  }
  func.func @transform_0(%arg0: i32) -> (i32, i32) {
    %c0_i32 = arith.constant 0 : i32
    %c0_i32_0 = arith.constant 0 : i32
    return %arg0, %c0_i32 : i32, i32
  }
  func.func @transform_1(%arg0: i32) -> (i32, i32) {
    %c0_i32 = arith.constant 0 : i32
    %c0_i32_0 = arith.constant 0 : i32
    %c0_i32_1 = arith.constant 0 : i32
    return %c0_i32, %c0_i32_0 : i32, i32
  }
  func.func @transform_2(%arg0: i32) -> (i32, i32) {
    %c0_i32 = arith.constant 0 : i32
    %c0_i32_0 = arith.constant 0 : i32
    %c0_i32_1 = arith.constant 0 : i32
    return %c0_i32, %c0_i32_0 : i32, i32
  }
  func.func @transform_3(%arg0: i32) -> (i32, i32) {
    %c0_i32 = arith.constant 0 : i32
    %c0_i32_0 = arith.constant 0 : i32
    %c0_i32_1 = arith.constant 0 : i32
    return %c0_i32, %c0_i32_0 : i32, i32
  }
  func.func @transform_4(%arg0: i32) -> (i32, i32) {
    %c0_i32 = arith.constant 0 : i32
    %c0_i32_0 = arith.constant 0 : i32
    %c0_i32_1 = arith.constant 0 : i32
    return %c0_i32, %c0_i32_0 : i32, i32
  }
  func.func @transform_5(%arg0: i32) -> (i32, i32) {
    %c0_i32 = arith.constant 0 : i32
    %c0_i32_0 = arith.constant 0 : i32
    %c0_i32_1 = arith.constant 0 : i32
    return %c0_i32, %c0_i32_0 : i32, i32
  }
  func.func @transform_6(%arg0: i32) -> (i32, i32) {
    %c0_i32 = arith.constant 0 : i32
    %c0_i32_0 = arith.constant 0 : i32
    %c0_i32_1 = arith.constant 0 : i32
    return %c0_i32, %c0_i32_0 : i32, i32
  }
  func.func @transform_7(%arg0: i32) -> (i32, i32) {
    %c0_i32 = arith.constant 0 : i32
    %c0_i32_0 = arith.constant 0 : i32
    return %arg0, %c0_i32 : i32, i32
  }
}

module attributes {stable_mosaic.version = 11 : i64} {
  func.func @kernel(%arg0: i32, %arg1: memref<1x16x128xbf16, #tpu.memory_space<vmem>>, %arg2: memref<128x384xbf16, #tpu.memory_space<vmem>>, %arg3: memref<1x384xf32, #tpu.memory_space<vmem>>, %arg4: memref<128x128xbf16, #tpu.memory_space<vmem>>, %arg5: memref<1x128xf32, #tpu.memory_space<vmem>>, %arg6: memref<1x128xf32, #tpu.memory_space<vmem>>, %arg7: memref<1x128xf32, #tpu.memory_space<vmem>>, %arg8: memref<1x16x128xbf16, #tpu.memory_space<vmem>>) attributes {dimension_semantics = [#tpu.dimension_semantics<parallel>], iteration_bounds = array<i64: 2>, scalar_prefetch = 0 : i64, scratch_operands = 0 : i64, tpu.core_type = #tpu.core_type<tc>, window_params = [{transform_indices = @transform_0, window_bounds = array<i64: 1, 16, 128>}, {pipeline_mode = #tpu.pipeline_mode<synchronous>, transform_indices = @transform_1, window_bounds = array<i64: 128, 384>}, {pipeline_mode = #tpu.pipeline_mode<synchronous>, transform_indices = @transform_2, window_bounds = array<i64: 1, 384>}, {pipeline_mode = #tpu.pipeline_mode<synchronous>, transform_indices = @transform_3, window_bounds = array<i64: 128, 128>}, {pipeline_mode = #tpu.pipeline_mode<synchronous>, transform_indices = @transform_4, window_bounds = array<i64: 1, 128>}, {pipeline_mode = #tpu.pipeline_mode<synchronous>, transform_indices = @transform_5, window_bounds = array<i64: 1, 128>}, {pipeline_mode = #tpu.pipeline_mode<synchronous>, transform_indices = @transform_6, window_bounds = array<i64: 1, 128>}, {transform_indices = @transform_7, window_bounds = array<i64: 1, 16, 128>}]} {
    %c0 = arith.constant 0 : index
    %c0_0 = arith.constant 0 : index
    %c0_1 = arith.constant 0 : index
    %0 = vector.load %arg1[%c0, %c0_0, %c0_1] : memref<1x16x128xbf16, #tpu.memory_space<vmem>>, vector<1x16x128xbf16>
    %1 = vector.shape_cast %0 : vector<1x16x128xbf16> to vector<16x128xbf16>
    %c0_2 = arith.constant 0 : index
    %c0_3 = arith.constant 0 : index
    %2 = vector.load %arg2[%c0_2, %c0_3] : memref<128x384xbf16, #tpu.memory_space<vmem>>, vector<128x384xbf16>
    %cst = arith.constant dense<0.000000e+00> : vector<16x384xf32>
    %3 = tpu.matmul %1, %2, %cst {dimension_numbers = #tpu.dot_dimension_numbers<[1], [0], [0], [1], [0, 0, 1, 1], [], []>} : vector<16x128xbf16>, vector<128x384xbf16>, vector<16x384xf32> -> vector<16x384xf32>
    %c0_4 = arith.constant 0 : index
    %c0_5 = arith.constant 0 : index
    %4 = vector.load %arg3[%c0_4, %c0_5] : memref<1x384xf32, #tpu.memory_space<vmem>>, vector<1x384xf32>
    %5 = vector.broadcast %4 : vector<1x384xf32> to vector<16x384xf32>
    %6 = arith.addf %3, %5 : vector<16x384xf32>
    %cst_6 = arith.constant 0.000000e+00 : f32
    %7 = vector.broadcast %cst_6 : f32 to vector<16x128xf32>
    %8 = vector.extract_strided_slice %6 {offsets = [0, 0], sizes = [16, 32], strides = [1, 1]} : vector<16x384xf32> to vector<16x32xf32>
    %9 = arith.truncf %8 : vector<16x32xf32> to vector<16x32xbf16>
    %10 = vector.extract_strided_slice %6 {offsets = [0, 128], sizes = [16, 32], strides = [1, 1]} : vector<16x384xf32> to vector<16x32xf32>
    %11 = arith.truncf %10 : vector<16x32xf32> to vector<16x32xbf16>
    %12 = vector.extract_strided_slice %6 {offsets = [0, 256], sizes = [16, 32], strides = [1, 1]} : vector<16x384xf32> to vector<16x32xf32>
    %13 = arith.truncf %12 : vector<16x32xf32> to vector<16x32xbf16>
    %cst_7 = arith.constant dense<0.000000e+00> : vector<16x16xf32>
    %14 = tpu.matmul %9, %11, %cst_7 {dimension_numbers = #tpu.dot_dimension_numbers<[1], [1], [0], [0], [0, 0, 1, 0], [], []>} : vector<16x32xbf16>, vector<16x32xbf16>, vector<16x16xf32> -> vector<16x16xf32>
    %cst_8 = arith.constant dense<0xFF800000> : vector<16xf32>
    %15 = vector.multi_reduction <maximumf>, %14, %cst_8 [1] : vector<16x16xf32> to vector<16xf32>
    %16 = vector.shape_cast %15 : vector<16xf32> to vector<16x1xf32>
    %17 = vector.broadcast %16 : vector<16x1xf32> to vector<16x16xf32>
    %18 = arith.subf %14, %17 : vector<16x16xf32>
    %19 = math.exp %18 : vector<16x16xf32>
    %cst_9 = arith.constant dense<0.000000e+00> : vector<16xf32>
    %20 = vector.multi_reduction <add>, %19, %cst_9 [1] : vector<16x16xf32> to vector<16xf32>
    %21 = vector.shape_cast %20 : vector<16xf32> to vector<16x1xf32>
    %22 = tpu.reciprocal %21 {approx = true} : vector<16x1xf32> -> vector<16x1xf32>
    %23 = vector.broadcast %22 : vector<16x1xf32> to vector<16x16xf32>
    %24 = arith.mulf %19, %23 : vector<16x16xf32>
    %25 = arith.truncf %24 : vector<16x16xf32> to vector<16x16xbf16>
    %cst_10 = arith.constant dense<0.000000e+00> : vector<16x32xf32>
    %26 = tpu.matmul %25, %13, %cst_10 {dimension_numbers = #tpu.dot_dimension_numbers<[1], [0], [0], [1], [0, 0, 1, 1], [], []>} : vector<16x16xbf16>, vector<16x32xbf16>, vector<16x32xf32> -> vector<16x32xf32>
    %27 = arith.truncf %26 : vector<16x32xf32> to vector<16x32xbf16>
    %c0_11 = arith.constant 0 : index
    %c0_12 = arith.constant 0 : index
    %28 = vector.load %arg4[%c0_11, %c0_12] : memref<128x128xbf16, #tpu.memory_space<vmem>>, vector<32x128xbf16>
    %cst_13 = arith.constant dense<0.000000e+00> : vector<16x128xf32>
    %29 = tpu.matmul %27, %28, %cst_13 {dimension_numbers = #tpu.dot_dimension_numbers<[1], [0], [0], [1], [0, 0, 1, 1], [], []>} : vector<16x32xbf16>, vector<32x128xbf16>, vector<16x128xf32> -> vector<16x128xf32>
    %30 = arith.addf %7, %29 : vector<16x128xf32>
    %31 = vector.extract_strided_slice %6 {offsets = [0, 32], sizes = [16, 32], strides = [1, 1]} : vector<16x384xf32> to vector<16x32xf32>
    %32 = arith.truncf %31 : vector<16x32xf32> to vector<16x32xbf16>
    %33 = vector.extract_strided_slice %6 {offsets = [0, 160], sizes = [16, 32], strides = [1, 1]} : vector<16x384xf32> to vector<16x32xf32>
    %34 = arith.truncf %33 : vector<16x32xf32> to vector<16x32xbf16>
    %35 = vector.extract_strided_slice %6 {offsets = [0, 288], sizes = [16, 32], strides = [1, 1]} : vector<16x384xf32> to vector<16x32xf32>
    %36 = arith.truncf %35 : vector<16x32xf32> to vector<16x32xbf16>
    %cst_14 = arith.constant dense<0.000000e+00> : vector<16x16xf32>
    %37 = tpu.matmul %32, %34, %cst_14 {dimension_numbers = #tpu.dot_dimension_numbers<[1], [1], [0], [0], [0, 0, 1, 0], [], []>} : vector<16x32xbf16>, vector<16x32xbf16>, vector<16x16xf32> -> vector<16x16xf32>
    %cst_15 = arith.constant dense<0xFF800000> : vector<16xf32>
    %38 = vector.multi_reduction <maximumf>, %37, %cst_15 [1] : vector<16x16xf32> to vector<16xf32>
    %39 = vector.shape_cast %38 : vector<16xf32> to vector<16x1xf32>
    %40 = vector.broadcast %39 : vector<16x1xf32> to vector<16x16xf32>
    %41 = arith.subf %37, %40 : vector<16x16xf32>
    %42 = math.exp %41 : vector<16x16xf32>
    %cst_16 = arith.constant dense<0.000000e+00> : vector<16xf32>
    %43 = vector.multi_reduction <add>, %42, %cst_16 [1] : vector<16x16xf32> to vector<16xf32>
    %44 = vector.shape_cast %43 : vector<16xf32> to vector<16x1xf32>
    %45 = tpu.reciprocal %44 {approx = true} : vector<16x1xf32> -> vector<16x1xf32>
    %46 = vector.broadcast %45 : vector<16x1xf32> to vector<16x16xf32>
    %47 = arith.mulf %42, %46 : vector<16x16xf32>
    %48 = arith.truncf %47 : vector<16x16xf32> to vector<16x16xbf16>
    %cst_17 = arith.constant dense<0.000000e+00> : vector<16x32xf32>
    %49 = tpu.matmul %48, %36, %cst_17 {dimension_numbers = #tpu.dot_dimension_numbers<[1], [0], [0], [1], [0, 0, 1, 1], [], []>} : vector<16x16xbf16>, vector<16x32xbf16>, vector<16x32xf32> -> vector<16x32xf32>
    %50 = arith.truncf %49 : vector<16x32xf32> to vector<16x32xbf16>
    %c32 = arith.constant 32 : index
    %c0_18 = arith.constant 0 : index
    %51 = vector.load %arg4[%c32, %c0_18] : memref<128x128xbf16, #tpu.memory_space<vmem>>, vector<32x128xbf16>
    %cst_19 = arith.constant dense<0.000000e+00> : vector<16x128xf32>
    %52 = tpu.matmul %50, %51, %cst_19 {dimension_numbers = #tpu.dot_dimension_numbers<[1], [0], [0], [1], [0, 0, 1, 1], [], []>} : vector<16x32xbf16>, vector<32x128xbf16>, vector<16x128xf32> -> vector<16x128xf32>
    %53 = arith.addf %30, %52 : vector<16x128xf32>
    %54 = vector.extract_strided_slice %6 {offsets = [0, 64], sizes = [16, 32], strides = [1, 1]} : vector<16x384xf32> to vector<16x32xf32>
    %55 = arith.truncf %54 : vector<16x32xf32> to vector<16x32xbf16>
    %56 = vector.extract_strided_slice %6 {offsets = [0, 192], sizes = [16, 32], strides = [1, 1]} : vector<16x384xf32> to vector<16x32xf32>
    %57 = arith.truncf %56 : vector<16x32xf32> to vector<16x32xbf16>
    %58 = vector.extract_strided_slice %6 {offsets = [0, 320], sizes = [16, 32], strides = [1, 1]} : vector<16x384xf32> to vector<16x32xf32>
    %59 = arith.truncf %58 : vector<16x32xf32> to vector<16x32xbf16>
    %cst_20 = arith.constant dense<0.000000e+00> : vector<16x16xf32>
    %60 = tpu.matmul %55, %57, %cst_20 {dimension_numbers = #tpu.dot_dimension_numbers<[1], [1], [0], [0], [0, 0, 1, 0], [], []>} : vector<16x32xbf16>, vector<16x32xbf16>, vector<16x16xf32> -> vector<16x16xf32>
    %cst_21 = arith.constant dense<0xFF800000> : vector<16xf32>
    %61 = vector.multi_reduction <maximumf>, %60, %cst_21 [1] : vector<16x16xf32> to vector<16xf32>
    %62 = vector.shape_cast %61 : vector<16xf32> to vector<16x1xf32>
    %63 = vector.broadcast %62 : vector<16x1xf32> to vector<16x16xf32>
    %64 = arith.subf %60, %63 : vector<16x16xf32>
    %65 = math.exp %64 : vector<16x16xf32>
    %cst_22 = arith.constant dense<0.000000e+00> : vector<16xf32>
    %66 = vector.multi_reduction <add>, %65, %cst_22 [1] : vector<16x16xf32> to vector<16xf32>
    %67 = vector.shape_cast %66 : vector<16xf32> to vector<16x1xf32>
    %68 = tpu.reciprocal %67 {approx = true} : vector<16x1xf32> -> vector<16x1xf32>
    %69 = vector.broadcast %68 : vector<16x1xf32> to vector<16x16xf32>
    %70 = arith.mulf %65, %69 : vector<16x16xf32>
    %71 = arith.truncf %70 : vector<16x16xf32> to vector<16x16xbf16>
    %cst_23 = arith.constant dense<0.000000e+00> : vector<16x32xf32>
    %72 = tpu.matmul %71, %59, %cst_23 {dimension_numbers = #tpu.dot_dimension_numbers<[1], [0], [0], [1], [0, 0, 1, 1], [], []>} : vector<16x16xbf16>, vector<16x32xbf16>, vector<16x32xf32> -> vector<16x32xf32>
    %73 = arith.truncf %72 : vector<16x32xf32> to vector<16x32xbf16>
    %c64 = arith.constant 64 : index
    %c0_24 = arith.constant 0 : index
    %74 = vector.load %arg4[%c64, %c0_24] : memref<128x128xbf16, #tpu.memory_space<vmem>>, vector<32x128xbf16>
    %cst_25 = arith.constant dense<0.000000e+00> : vector<16x128xf32>
    %75 = tpu.matmul %73, %74, %cst_25 {dimension_numbers = #tpu.dot_dimension_numbers<[1], [0], [0], [1], [0, 0, 1, 1], [], []>} : vector<16x32xbf16>, vector<32x128xbf16>, vector<16x128xf32> -> vector<16x128xf32>
    %76 = arith.addf %53, %75 : vector<16x128xf32>
    %77 = vector.extract_strided_slice %6 {offsets = [0, 96], sizes = [16, 32], strides = [1, 1]} : vector<16x384xf32> to vector<16x32xf32>
    %78 = arith.truncf %77 : vector<16x32xf32> to vector<16x32xbf16>
    %79 = vector.extract_strided_slice %6 {offsets = [0, 224], sizes = [16, 32], strides = [1, 1]} : vector<16x384xf32> to vector<16x32xf32>
    %80 = arith.truncf %79 : vector<16x32xf32> to vector<16x32xbf16>
    %81 = vector.extract_strided_slice %6 {offsets = [0, 352], sizes = [16, 32], strides = [1, 1]} : vector<16x384xf32> to vector<16x32xf32>
    %82 = arith.truncf %81 : vector<16x32xf32> to vector<16x32xbf16>
    %cst_26 = arith.constant dense<0.000000e+00> : vector<16x16xf32>
    %83 = tpu.matmul %78, %80, %cst_26 {dimension_numbers = #tpu.dot_dimension_numbers<[1], [1], [0], [0], [0, 0, 1, 0], [], []>} : vector<16x32xbf16>, vector<16x32xbf16>, vector<16x16xf32> -> vector<16x16xf32>
    %cst_27 = arith.constant dense<0xFF800000> : vector<16xf32>
    %84 = vector.multi_reduction <maximumf>, %83, %cst_27 [1] : vector<16x16xf32> to vector<16xf32>
    %85 = vector.shape_cast %84 : vector<16xf32> to vector<16x1xf32>
    %86 = vector.broadcast %85 : vector<16x1xf32> to vector<16x16xf32>
    %87 = arith.subf %83, %86 : vector<16x16xf32>
    %88 = math.exp %87 : vector<16x16xf32>
    %cst_28 = arith.constant dense<0.000000e+00> : vector<16xf32>
    %89 = vector.multi_reduction <add>, %88, %cst_28 [1] : vector<16x16xf32> to vector<16xf32>
    %90 = vector.shape_cast %89 : vector<16xf32> to vector<16x1xf32>
    %91 = tpu.reciprocal %90 {approx = true} : vector<16x1xf32> -> vector<16x1xf32>
    %92 = vector.broadcast %91 : vector<16x1xf32> to vector<16x16xf32>
    %93 = arith.mulf %88, %92 : vector<16x16xf32>
    %94 = arith.truncf %93 : vector<16x16xf32> to vector<16x16xbf16>
    %cst_29 = arith.constant dense<0.000000e+00> : vector<16x32xf32>
    %95 = tpu.matmul %94, %82, %cst_29 {dimension_numbers = #tpu.dot_dimension_numbers<[1], [0], [0], [1], [0, 0, 1, 1], [], []>} : vector<16x16xbf16>, vector<16x32xbf16>, vector<16x32xf32> -> vector<16x32xf32>
    %96 = arith.truncf %95 : vector<16x32xf32> to vector<16x32xbf16>
    %c96 = arith.constant 96 : index
    %c0_30 = arith.constant 0 : index
    %97 = vector.load %arg4[%c96, %c0_30] : memref<128x128xbf16, #tpu.memory_space<vmem>>, vector<32x128xbf16>
    %cst_31 = arith.constant dense<0.000000e+00> : vector<16x128xf32>
    %98 = tpu.matmul %96, %97, %cst_31 {dimension_numbers = #tpu.dot_dimension_numbers<[1], [0], [0], [1], [0, 0, 1, 1], [], []>} : vector<16x32xbf16>, vector<32x128xbf16>, vector<16x128xf32> -> vector<16x128xf32>
    %99 = arith.addf %76, %98 : vector<16x128xf32>
    %100 = arith.extf %1 : vector<16x128xbf16> to vector<16x128xf32>
    %101 = arith.addf %100, %99 : vector<16x128xf32>
    %c0_32 = arith.constant 0 : index
    %c0_33 = arith.constant 0 : index
    %102 = vector.load %arg5[%c0_32, %c0_33] : memref<1x128xf32, #tpu.memory_space<vmem>>, vector<1x128xf32>
    %103 = vector.broadcast %102 : vector<1x128xf32> to vector<16x128xf32>
    %104 = arith.addf %101, %103 : vector<16x128xf32>
    %cst_34 = arith.constant dense<0.000000e+00> : vector<16xf32>
    %105 = vector.multi_reduction <add>, %104, %cst_34 [1] : vector<16x128xf32> to vector<16xf32>
    %106 = vector.shape_cast %105 : vector<16xf32> to vector<16x1xf32>
    %cst_35 = arith.constant 1.280000e+02 : f32
    %107 = vector.broadcast %cst_35 : f32 to vector<16x1xf32>
    %108 = arith.divf %106, %107 : vector<16x1xf32>
    %109 = vector.broadcast %108 : vector<16x1xf32> to vector<16x128xf32>
    %110 = arith.subf %104, %109 : vector<16x128xf32>
    %111 = arith.mulf %110, %110 : vector<16x128xf32>
    %cst_36 = arith.constant dense<0.000000e+00> : vector<16xf32>
    %112 = vector.multi_reduction <add>, %111, %cst_36 [1] : vector<16x128xf32> to vector<16xf32>
    %113 = vector.shape_cast %112 : vector<16xf32> to vector<16x1xf32>
    %cst_37 = arith.constant 1.280000e+02 : f32
    %114 = vector.broadcast %cst_37 : f32 to vector<16x1xf32>
    %115 = arith.divf %113, %114 : vector<16x1xf32>
    %116 = vector.broadcast %108 : vector<16x1xf32> to vector<16x128xf32>
    %117 = arith.subf %104, %116 : vector<16x128xf32>
    %cst_38 = arith.constant 9.99999974E-6 : f32
    %118 = vector.broadcast %cst_38 : f32 to vector<16x1xf32>
    %119 = arith.addf %115, %118 : vector<16x1xf32>
    %120 = math.rsqrt %119 : vector<16x1xf32>
    %121 = vector.broadcast %120 : vector<16x1xf32> to vector<16x128xf32>
    %122 = arith.mulf %117, %121 : vector<16x128xf32>
    %c0_39 = arith.constant 0 : index
    %c0_40 = arith.constant 0 : index
    %123 = vector.load %arg6[%c0_39, %c0_40] : memref<1x128xf32, #tpu.memory_space<vmem>>, vector<1x128xf32>
    %124 = vector.broadcast %123 : vector<1x128xf32> to vector<16x128xf32>
    %125 = arith.mulf %122, %124 : vector<16x128xf32>
    %c0_41 = arith.constant 0 : index
    %c0_42 = arith.constant 0 : index
    %126 = vector.load %arg7[%c0_41, %c0_42] : memref<1x128xf32, #tpu.memory_space<vmem>>, vector<1x128xf32>
    %127 = vector.broadcast %126 : vector<1x128xf32> to vector<16x128xf32>
    %128 = arith.addf %125, %127 : vector<16x128xf32>
    %129 = arith.truncf %128 : vector<16x128xf32> to vector<16x128xbf16>
    %c0_43 = arith.constant 0 : index
    %c0_44 = arith.constant 0 : index
    %c0_45 = arith.constant 0 : index
    %130 = vector.load %arg8[%c0_43, %c0_44, %c0_45] : memref<1x16x128xbf16, #tpu.memory_space<vmem>>, vector<1x16x128xbf16>
    %131 = vector.shape_cast %130 : vector<1x16x128xbf16> to vector<16x128xbf16>
    %132 = vector.shape_cast %129 : vector<16x128xbf16> to vector<1x16x128xbf16>
    tpu.vector_store %arg8[%c0_43, %c0_44, %c0_45], %132 {strides = array<i32>} : memref<1x16x128xbf16, #tpu.memory_space<vmem>>, vector<1x16x128xbf16>,
    return
  }
  func.func @transform_0(%arg0: i32) -> (i32, i32, i32) {
    %c0_i32 = arith.constant 0 : i32
    %c0_i32_0 = arith.constant 0 : i32
    %c0_i32_1 = arith.constant 0 : i32
    return %arg0, %c0_i32, %c0_i32_0 : i32, i32, i32
  }
  func.func @transform_1(%arg0: i32) -> (i32, i32) {
    %c0_i32 = arith.constant 0 : i32
    %c0_i32_0 = arith.constant 0 : i32
    %c0_i32_1 = arith.constant 0 : i32
    return %c0_i32, %c0_i32_0 : i32, i32
  }
  func.func @transform_2(%arg0: i32) -> (i32, i32) {
    %c0_i32 = arith.constant 0 : i32
    %c0_i32_0 = arith.constant 0 : i32
    %c0_i32_1 = arith.constant 0 : i32
    return %c0_i32, %c0_i32_0 : i32, i32
  }
  func.func @transform_3(%arg0: i32) -> (i32, i32) {
    %c0_i32 = arith.constant 0 : i32
    %c0_i32_0 = arith.constant 0 : i32
    %c0_i32_1 = arith.constant 0 : i32
    return %c0_i32, %c0_i32_0 : i32, i32
  }
  func.func @transform_4(%arg0: i32) -> (i32, i32) {
    %c0_i32 = arith.constant 0 : i32
    %c0_i32_0 = arith.constant 0 : i32
    %c0_i32_1 = arith.constant 0 : i32
    return %c0_i32, %c0_i32_0 : i32, i32
  }
  func.func @transform_5(%arg0: i32) -> (i32, i32) {
    %c0_i32 = arith.constant 0 : i32
    %c0_i32_0 = arith.constant 0 : i32
    %c0_i32_1 = arith.constant 0 : i32
    return %c0_i32, %c0_i32_0 : i32, i32
  }
  func.func @transform_6(%arg0: i32) -> (i32, i32) {
    %c0_i32 = arith.constant 0 : i32
    %c0_i32_0 = arith.constant 0 : i32
    %c0_i32_1 = arith.constant 0 : i32
    return %c0_i32, %c0_i32_0 : i32, i32
  }
  func.func @transform_7(%arg0: i32) -> (i32, i32, i32) {
    %c0_i32 = arith.constant 0 : i32
    %c0_i32_0 = arith.constant 0 : i32
    %c0_i32_1 = arith.constant 0 : i32
    return %arg0, %c0_i32, %c0_i32_0 : i32, i32, i32
  }
}

module attributes {stable_mosaic.version = 11 : i64} {
  func.func @kernel(%arg0: i32, %arg1: memref<2x16x128xbf16, #tpu.memory_space<vmem>>, %arg2: memref<128x128xbf16, #tpu.memory_space<vmem>>, %arg3: memref<1x128xf32, #tpu.memory_space<vmem>>, %arg4: memref<2x128xf32, #tpu.memory_space<vmem>>) attributes {dimension_semantics = [#tpu.dimension_semantics<parallel>], iteration_bounds = array<i64: 1>, scalar_prefetch = 0 : i64, scratch_operands = 0 : i64, tpu.core_type = #tpu.core_type<tc>, window_params = [{pipeline_mode = #tpu.pipeline_mode<synchronous>, transform_indices = @transform_0, window_bounds = array<i64: 2, 16, 128>}, {pipeline_mode = #tpu.pipeline_mode<synchronous>, transform_indices = @transform_1, window_bounds = array<i64: 128, 128>}, {pipeline_mode = #tpu.pipeline_mode<synchronous>, transform_indices = @transform_2, window_bounds = array<i64: 1, 128>}, {pipeline_mode = #tpu.pipeline_mode<synchronous>, transform_indices = @transform_3, window_bounds = array<i64: 2, 128>}]} {
    %c0 = arith.constant 0 : index
    %c0_0 = arith.constant 0 : index
    %c0_1 = arith.constant 0 : index
    %0 = vector.load %arg1[%c0, %c0_0, %c0_1] : memref<2x16x128xbf16, #tpu.memory_space<vmem>>, vector<2x16x128xbf16>
    %1 = arith.extf %0 : vector<2x16x128xbf16> to vector<2x16x128xf32>
    %cst = arith.constant dense<0xFF800000> : vector<2x128xf32>
    %2 = vector.multi_reduction <maximumf>, %1, %cst [1] : vector<2x16x128xf32> to vector<2x128xf32>
    %3 = arith.truncf %2 : vector<2x128xf32> to vector<2x128xbf16>
    %c0_2 = arith.constant 0 : index
    %c0_3 = arith.constant 0 : index
    %4 = vector.load %arg2[%c0_2, %c0_3] : memref<128x128xbf16, #tpu.memory_space<vmem>>, vector<128x128xbf16>
    %cst_4 = arith.constant dense<0.000000e+00> : vector<2x128xf32>
    %5 = tpu.matmul %3, %4, %cst_4 {dimension_numbers = #tpu.dot_dimension_numbers<[1], [0], [0], [1], [0, 0, 1, 1], [], []>} : vector<2x128xbf16>, vector<128x128xbf16>, vector<2x128xf32> -> vector<2x128xf32>
    %c0_5 = arith.constant 0 : index
    %c0_6 = arith.constant 0 : index
    %6 = vector.load %arg3[%c0_5, %c0_6] : memref<1x128xf32, #tpu.memory_space<vmem>>, vector<1x128xf32>
    %7 = vector.broadcast %6 : vector<1x128xf32> to vector<2x128xf32>
    %8 = arith.addf %5, %7 : vector<2x128xf32>
    %c0_7 = arith.constant 0 : index
    %c0_8 = arith.constant 0 : index
    %9 = vector.load %arg4[%c0_7, %c0_8] : memref<2x128xf32, #tpu.memory_space<vmem>>, vector<2x128xf32>
    tpu.vector_store %arg4[%c0_7, %c0_8], %8 {strides = array<i32>} : memref<2x128xf32, #tpu.memory_space<vmem>>, vector<2x128xf32>,
    return
  }
  func.func @transform_0(%arg0: i32) -> (i32, i32, i32) {
    %c0_i32 = arith.constant 0 : i32
    %c0_i32_0 = arith.constant 0 : i32
    %c0_i32_1 = arith.constant 0 : i32
    %c0_i32_2 = arith.constant 0 : i32
    return %c0_i32, %c0_i32_0, %c0_i32_1 : i32, i32, i32
  }
  func.func @transform_1(%arg0: i32) -> (i32, i32) {
    %c0_i32 = arith.constant 0 : i32
    %c0_i32_0 = arith.constant 0 : i32
    %c0_i32_1 = arith.constant 0 : i32
    return %c0_i32, %c0_i32_0 : i32, i32
  }
  func.func @transform_2(%arg0: i32) -> (i32, i32) {
    %c0_i32 = arith.constant 0 : i32
    %c0_i32_0 = arith.constant 0 : i32
    %c0_i32_1 = arith.constant 0 : i32
    return %c0_i32, %c0_i32_0 : i32, i32
  }
  func.func @transform_3(%arg0: i32) -> (i32, i32) {
    %c0_i32 = arith.constant 0 : i32
    %c0_i32_0 = arith.constant 0 : i32
    %c0_i32_1 = arith.constant 0 : i32
    return %c0_i32, %c0_i32_0 : i32, i32
  }
}

</mosaic_0001>

<bundles_post_ra>
// kernel: nemesis_vae_forward.6
= control target key start
LH: loop header
LB: loop body
LE: loop exit
PB: predicated region body
PF: predicated region fallthrough
CT: control target
= control target key end

     0   :  { %14 = vsyncpa [#allocation3], 0  ;;  %s1662_s0 = inlined_call_operand.vmem [shape: f32[32,6], index: 0, kind: input, shape index: {}]   ;;  %s1663_s1 = inlined_call_operand.hbm [shape: bf16[6,128], index: 1, kind: input, shape index: {}]   ;;  %s1664_s2 = inlined_call_operand.hbm [shape: f32[1,128], index: 2, kind: input, shape index: {}]   ;;  %s1665_s3 = inlined_call_operand.vmem [shape: bf16[128,128], index: 3, kind: input, shape index: {}]   ;;  %s1666_s4 = inlined_call_operand.hbm [shape: f32[1,128], index: 4, kind: input, shape index: {}]   ;;  %s1667_s5 = inlined_call_operand.vmem [shape: bf16[128,128], index: 5, kind: input, shape index: {}]   ;;  %s1668_s6 = inlined_call_operand.hbm [shape: f32[1,128], index: 6, kind: input, shape index: {}]   ;;  %s1669_s7 = inlined_call_operand.vmem [shape: bf16[128,128], index: 7, kind: input, shape index: {}]   ;;  %s1670_s8 = inlined_call_operand.hbm [shape: f32[1,128], index: 8, kind: input, shape index: {}]   ;;  %s1671_s9 = inlined_call_operand.vmem [shape: bf16[32,128], index: 9, kind: output, shape index: {}]  }
   0x1   :  { %15 = vsyncpa [#allocation5], 0 }
   0x2   :  { %16 = vsyncpa [#allocation8], 0  ;;  %s1375_s30 = smov 0  }
   0x3 LB: > { %s1318_s10 = smov [#allocation4]   ;;  %s919_s12 = sadd.s32 4294967295, %s1316_s30   ;;  %s1316_s30 = sphi %s1375_s30, %s22_s30  }
   0x4   : > { %s271_s11 = sshll.u32 %s1318_s10, 4  ;;  %p921_p0 = scmp.ge.s32.totalorder %s1316_s30, 1  ;;  %s1389_s11 = int_to_ptr.vmem [resolvable:$true] %s271_s11 }
   0x5   : > { %p247_p1 = scmp.lt.s32.totalorder %s1316_s30, 3  ;;  %p1385_p2 = scmp.eq.s32.totalorder %s919_s12, 0 }
   0x6   : > { %s1319_s15 = smov [#allocation7]   ;;  %s1320_s17 = smov [#allocation2]  }
   0x7   : > { %s1675_s13 = scalar_select %p1385_p2, 1, 0 }
   0x8   : > { %p1391_p3 = pnand %p921_p0, %p247_p1  ;;  %s299_s16 = sshll.u32 %s1319_s15, 4  ;;  %s1397_s16 = int_to_ptr.vmem [resolvable:$true] %s299_s16 }
   0x9   : > { %s260_s18 = sshll.u32 %s1320_s17, 4  ;;  %s1321_s20 = smov [#allocation6]   ;;  %s1405_s18 = int_to_ptr.vmem [resolvable:$true] %s260_s18 }
   0xa   : > { %s1676_s14 = scalar_select %p1391_p3, 1, 0 }
   0xb   : > { %p1093_p4 = pneg %p1391_p3  ;;  %s285_s21 = sshll.u32 %s1321_s20, 4  ;;  %s1407_s21 = int_to_ptr.vmem [resolvable:$true] %s285_s21 }
   0xc   : > { %s1158_s24 = scalar_lea.hbm %s1664_s2, 16 }
   0xd   : > { %p1401_p5 = pnand %p1385_p2, %p1093_p4  ;;  %p1159_p6 = scmp.ne.s32.totalorder %s1664_s2, %s1158_s24 }
   0xe   : > { %p1165_p10 = scmp.lt.u32.totalorder %s1158_s24, %s1664_s2 }
   0xf   : > { %p1417_p7 = pneg %p1401_p5 }
  0x11   : > { %p1161_p8 = pnand %p1417_p7, %p1159_p6 }
  0x13   : > { %p1162_p9 = pneg %p1161_p8 }
  0x15   : > { %p1167_p11 = pnand %p1165_p10, %p1162_p9 }
  0x17   : > { %1170 = shalt.err (!%p1167_p11)
}
  0x18   : > { %s1171_s10 = scalar_lea.vmem %s1389_s11, 16  ;;  %s1178_s15 = scalar_lea.vmem %s1389_s11, 32 }
  0x19   : > { %p1172_p12 = scmp.ne.s32.totalorder %s1389_s11, %s1171_s10  ;;  %p1179_p1 = scmp.lt.s32.totalorder %s1389_s11, %s1389_s11 }
  0x1a   : > { %p1180_p4 = scmp.lt.s32.totalorder %s1178_s15, %s1171_s10 }
  0x1b   : > { %p1174_p13 = pnand %p1172_p12, %p1417_p7 }
  0x1c   : > { %p1181_p6 = por %p1180_p4, %p1179_p1 }
  0x1d   : > { %p1175_p0 = pneg %p1174_p13 }
  0x1f   : > { %p1182_p8 = pnand %p1181_p6, %p1175_p0 }
  0x21   : > { %1185 = shalt.err (!%p1182_p8)
}
  0x22   : > { %1099 = dma.hbm_to_vmem [thread:$0]  (!%p1401_p5), %s1664_s2, 16, %s1389_s11, [#allocation5]  }
  0x23   : > { %s1186_s24 = scalar_lea.hbm %s1668_s6, 16 }
  0x24   : > { %p1187_p9 = scmp.ne.s32.totalorder %s1668_s6, %s1186_s24  ;;  %p1193_p12 = scmp.lt.u32.totalorder %s1186_s24, %s1668_s6 }
  0x26   : > { %p1189_p10 = pnand %p1187_p9, %p1417_p7 }
  0x28   : > { %p1190_p11 = pneg %p1189_p10 }
  0x2a   : > { %p1195_p13 = pnand %p1193_p12, %p1190_p11 }
  0x2c   : > { %1198 = shalt.err (!%p1195_p13)
}
  0x2d   : > { %s1199_s11 = scalar_lea.vmem %s1397_s16, 16  ;;  %s1206_s10 = scalar_lea.vmem %s1397_s16, 32 }
  0x2e   : > { %p1200_p0 = scmp.ne.s32.totalorder %s1397_s16, %s1199_s11  ;;  %p1207_p6 = scmp.lt.s32.totalorder %s1397_s16, %s1397_s16 }
  0x2f   : > { %p1208_p8 = scmp.lt.s32.totalorder %s1206_s10, %s1199_s11 }
  0x30   : > { %p1202_p1 = pnand %p1200_p0, %p1417_p7 }
  0x31   : > { %p1209_p9 = por %p1208_p8, %p1207_p6 }
  0x32   : > { %p1203_p4 = pneg %p1202_p1 }
  0x34   : > { %p1210_p10 = pnand %p1209_p9, %p1203_p4 }
  0x36   : > { %1213 = shalt.err (!%p1210_p10)
}
  0x37   : > { %1105 = dma.hbm_to_vmem [thread:$0]  (!%p1401_p5), %s1668_s6, 16, %s1397_s16, [#allocation8]  }
  0x38   : > { %s1214_s23 = scalar_lea.hbm %s1663_s1, 64 }
  0x39   : > { %p1215_p11 = scmp.ne.s32.totalorder %s1663_s1, %s1214_s23  ;;  %p1221_p0 = scmp.lt.u32.totalorder %s1214_s23, %s1663_s1 }
  0x3b   : > { %p1217_p12 = pnand %p1215_p11, %p1417_p7 }
  0x3d   : > { %p1218_p13 = pneg %p1217_p12 }
  0x3f   : > { %p1223_p1 = pnand %p1221_p0, %p1218_p13 }
  0x41   : > { %1226 = shalt.err (!%p1223_p1)
}
  0x42   : > { %s1227_s16 = scalar_lea.vmem %s1405_s18, 64  ;;  %p1235_p9 = scmp.lt.s32.totalorder %s1405_s18, %s1405_s18 }
  0x43   : > { %p1228_p4 = scmp.ne.s32.totalorder %s1405_s18, %s1227_s16  ;;  %p1236_p10 = scmp.lt.s32.totalorder %s1227_s16, %s1227_s16 }
  0x45   : > { %p1230_p6 = pnand %p1228_p4, %p1417_p7  ;;  %p1237_p11 = por %p1236_p10, %p1235_p9 }
  0x47   : > { %p1231_p8 = pneg %p1230_p6 }
  0x49   : > { %p1238_p12 = pnand %p1237_p11, %p1231_p8 }
  0x4b   : > { %1241 = shalt.err (!%p1238_p12)
}
  0x4c   : > { %1096 = dma.hbm_to_vmem [thread:$0]  (!%p1401_p5), %s1663_s1, 64, %s1405_s18, [#allocation3]  }
  0x4d   : > { %s1242_s17 = scalar_lea.hbm %s1666_s4, 16 }
  0x4e   : > { %p1243_p13 = scmp.ne.s32.totalorder %s1666_s4, %s1242_s17  ;;  %p1249_p4 = scmp.lt.u32.totalorder %s1242_s17, %s1666_s4 }
  0x50   : > { %p1245_p0 = pnand %p1243_p13, %p1417_p7 }
  0x52   : > { %p1246_p1 = pneg %p1245_p0 }
  0x54   : > { %p1251_p6 = pnand %p1249_p4, %p1246_p1 }
  0x56   : > { %1254 = shalt.err (!%p1251_p6)
}
  0x57   : > { %s1255_s18 = scalar_lea.vmem %s1407_s21, 16  ;;  %s1262_s25 = scalar_lea.vmem %s1407_s21, 32 }
  0x58   : > { %p1256_p8 = scmp.ne.s32.totalorder %s1407_s21, %s1255_s18  ;;  %p1263_p11 = scmp.lt.s32.totalorder %s1407_s21, %s1407_s21 }
  0x59   : > { %p1264_p12 = scmp.lt.s32.totalorder %s1262_s25, %s1255_s18 }
  0x5a   : > { %p1258_p9 = pnand %p1256_p8, %p1417_p7 }
  0x5b   : > { %p1265_p13 = por %p1264_p12, %p1263_p11 }
  0x5c   : > { %p1259_p10 = pneg %p1258_p9 }
  0x5e   : > { %p1266_p0 = pnand %p1265_p13, %p1259_p10 }
  0x60   : > { %1269 = shalt.err (!%p1266_p0)
}
  0x61   : > { %1102 = dma.hbm_to_vmem [thread:$0]  (!%p1401_p5), %s1666_s4, 16, %s1407_s21, [#allocation5]  }
  0x62   : > { %s1322_s16 = smov [#allocation9]   ;;  %s1270_s15 = scalar_lea.hbm %s1670_s8, 16 }
  0x63   : > { %s313_s29 = sshll.u32 %s1322_s16, 4  ;;  %p1271_p1 = scmp.ne.s32.totalorder %s1670_s8, %s1270_s15  ;;  %s314_s29 = int_to_ptr.vmem [resolvable:$true] %s313_s29 }
  0x64   : > { %p1277_p8 = scmp.lt.u32.totalorder %s1270_s15, %s1670_s8 }
  0x65   : > { %p1273_p4 = pnand %p1271_p1, %p1417_p7 }
  0x67   : > { %p1274_p6 = pneg %p1273_p4 }
  0x69   : > { %p1279_p9 = pnand %p1277_p8, %p1274_p6 }
  0x6b   : > { %1282 = shalt.err (!%p1279_p9)
}
  0x6c   : > { %s1283_s21 = scalar_lea.vmem %s314_s29, 16  ;;  %s1290_s24 = scalar_lea.vmem %s314_s29, 32 }
  0x6d   : > { %p1284_p10 = scmp.ne.s32.totalorder %s314_s29, %s1283_s21  ;;  %p1291_p13 = scmp.lt.s32.totalorder %s314_s29, %s314_s29 }
  0x6e   : > { %p1292_p0 = scmp.lt.s32.totalorder %s1290_s24, %s1283_s21 }
  0x6f   : > { %p1286_p11 = pnand %p1284_p10, %p1417_p7 }
  0x70   : > { %p1293_p2 = por %p1292_p0, %p1291_p13 }
  0x71   : > { %p1287_p12 = pneg %p1286_p11 }
  0x73   : > { %p1294_p3 = pnand %p1293_p2, %p1287_p12 }
  0x75   : > { %1297 = shalt.err (!%p1294_p3)
}
  0x76   : > { %1108 = dma.hbm_to_vmem [thread:$0]  (!%p1401_p5), %s1670_s8, 16, %s314_s29, [#allocation8]  }
  0x77   : > { %p1679_p1 = scmp.ne.s32.totalorder %s1676_s14, 0 }
  0x78   : > { %p1680_p4 = scmp.ne.s32.totalorder (!%p1679_p1), %s1675_s13, 0 }
  0x79   : > { %335 = sbr.rel (%p1679_p1) target bundleno = 1019 (0x3fb), region = 56 }
  0x80   : > { %1303 = dma.done.wait (%p1680_p4), [#allocation3], 64  }
  0x81   : > { %1305 = vsyncadd (%p1680_p4), [#allocation3], 4294967232 }
  0x82   : > { %1307 = dma.done.wait (%p1680_p4), [#allocation5], 32  }
  0x83   : > { %1309 = vsyncadd (%p1680_p4), [#allocation5], 4294967264 }
  0x84   : > { %1311 = dma.done.wait (%p1680_p4), [#allocation8], 32  }
  0x85   : > { %1313 = vsyncadd (%p1680_p4), [#allocation8], 4294967264  ;;  %s934_s14 = sshll.u32 %s919_s12, 1  ;;  %v1323_v0 = vmov 0.0   ;;  %vm1324_vm0 = vmmov 0   ;;  %vm415_vm1 = vcmask 1042432  }
  0x86   : > { %1007 = vmatprep.subr.bf16.mxu0 %v1323_v0  ;;  %1009 = vmatprep.mubr.msk.bf16.mxu0 %vm1324_vm0, %v1323_v0  ;;  %p388_p2 = scmp.lt.s32.totalorder %s934_s14, 3  ;;  %v403_v1 = vld [vmem:[#allocation2] sm:$0x7]  ;;  %vm411_vm2 = vcmask 48128   ;;  %v1135_v7 = vld [vmem:[%s1665_s3 + $0x8] sm:$0xff]   ;;  %v1136_v8 = vld [vmem:[%s1665_s3 + $0x10] sm:$0xff]  }
  0x87   : > { %1013 = vmatprep.subr.bf16.mxu1 %v1323_v0  ;;  %1029 = vmatprep.mubr.msk.bf16.mxu1 %vm1324_vm0, %v1323_v0  ;;  %v417_v4 = vsel %vm415_vm1, %v403_v1, 0  ;;  %v1134_v6 = vld [vmem:[%s1665_s3] sm:$0xff]   ;;  %v1137_v9 = vld [vmem:[%s1665_s3 + $0x18] sm:$0xff]   ;;  %v1139_v11 = vld [vmem:[%s1665_s3 + $0x28] sm:$0xff]  }
  0x88   : > { %s1682_s14 = smov (!%p388_p2, %s934_s14), 3  ;;  %1008 = vmatpush3.bf16.msra.mxu0 %v417_v4  ;;  %1014 = vmatpush3.bf16.msra.mxu1 %v1134_v6  ;;  %v1138_v10 = vld [vmem:[%s1665_s3 + $0x20] sm:$0xff]   ;;  %v1140_v12 = vld [vmem:[%s1665_s3 + $0x30] sm:$0xff]   ;;  %v1141_v13 = vld [vmem:[%s1665_s3 + $0x38] sm:$0xff]  }
  0x89   : > { %s935_s13 = sshll.u32 %s1682_s14, 3  ;;  %1033 = vmatprep.subr.bf16.mxu0 %v1323_v0  ;;  %1015 = vmatprep.subr.bf16.mxu1 %v1323_v0  ;;  %v1142_v14 = vld [vmem:[%s1667_s5] sm:$0xff]   ;;  %v1143_v15 = vld [vmem:[%s1667_s5 + $0x8] sm:$0xff]   ;;  %v1144_v16 = vld [vmem:[%s1667_s5 + $0x10] sm:$0xff]   ;;  %s937_s23 = sshll.u32 %s1682_s14, 2 }
  0x8a   : > { %s391_s27 = scalar_lea.vmem %s1662_s0, %s935_s13  ;;  %v1145_v17 = vld [vmem:[%s1667_s5 + $0x18] sm:$0xff]   ;;  %v1146_v18 = vld [vmem:[%s1667_s5 + $0x20] sm:$0xff]   ;;  %v1147_v19 = vld [vmem:[%s1667_s5 + $0x28] sm:$0xff]   ;;  %s397_s18 = scalar_lea.vmem %s1671_s9, %s937_s23 }
  0x8b   : > { %v400_v2 = vld [vmem:[%s391_s27] sm:$0xff]  ;;  %v401_v3 = vld [vmem:[%s391_s27 + $0x8] sm:$0xff]  ;;  %v1148_v30 = vld [vmem:[%s1667_s5 + $0x30] sm:$0xff]  }
  0x8c   : > { %v402_v5 = vpack.c.bf16 %v401_v3, %v400_v2  ;;  %1016 = vmatpush3.bf16.msra.mxu1 %v1135_v7  ;;  %v938_v20 = vld [vmem:[#allocation4] ss:$0 sm:$0xff]  ;;  %v1149_v31 = vld [vmem:[%s1667_s5 + $0x38] sm:$0xff]   ;;  %v1151_v33 = vld [vmem:[%s1669_s7 + $0x8] sm:$0xff]  }
  0x8d   : > { %1017 = vmatprep.subr.bf16.mxu1 %v1323_v0  ;;  %v1150_v32 = vld [vmem:[%s1669_s7] sm:$0xff]   ;;  %v1152_v34 = vld [vmem:[%s1669_s7 + $0x10] sm:$0xff]   ;;  %v1153_v35 = vld [vmem:[%s1669_s7 + $0x18] sm:$0xff]  }
  0x8e   : > { %1010 = vmatmul.mubr.msk.bf16.vlgmr.msra.gmra.mrb[0].mxu0 %vm411_vm2, %v402_v5  ;;  %v1154_v36 = vld [vmem:[%s1669_s7 + $0x20] sm:$0xff]   ;;  %v1155_v37 = vld [vmem:[%s1669_s7 + $0x28] sm:$0xff]   ;;  %v1156_v48 = vld [vmem:[%s1669_s7 + $0x30] sm:$0xff]  }
  0x8f   : > { %1049 = vmatprep.mubr.msk.bf16.mxu0 %vm1324_vm0, %v1323_v0  ;;  %1034 = vmatpush3.bf16.msra.mxu0 %v1142_v14  ;;  %v940_v38 = vld [vmem:[#allocation6] ss:$0 sm:$0xff]  ;;  %v1157_v49 = vld [vmem:[%s1669_s7 + $0x38] sm:$0xff]   ;;  %v949_v50 = vld [vmem:[#allocation7] ss:$0 sm:$0xff] }
  0x90   : > { %1018 = vmatpush3.bf16.msra.mxu1 %v1136_v8  ;;  %1035 = vmatprep.subr.bf16.mxu0 %v1323_v0  ;;  %v958_v58 = vld [vmem:[#allocation9] ss:$0 sm:$0xff] }
  0x91   : > { %1019 = vmatprep.subr.bf16.mxu1 %v1323_v0 }
  0x93   : > { %1036 = vmatpush3.bf16.msra.mxu0 %v1143_v15 }
  0x94   : > { %1020 = vmatpush3.bf16.msra.mxu1 %v1137_v9  ;;  %1037 = vmatprep.subr.bf16.mxu0 %v1323_v0 }
  0x95   : > { %1021 = vmatprep.subr.bf16.mxu1 %v1323_v0 }
  0x97   : > { %1038 = vmatpush3.bf16.msra.mxu0 %v1144_v16 }
  0x98   : > { %1022 = vmatpush3.bf16.msra.mxu1 %v1138_v10  ;;  %1039 = vmatprep.subr.bf16.mxu0 %v1323_v0 }
  0x99   : > { %1023 = vmatprep.subr.bf16.mxu1 %v1323_v0 }
  0x9b   : > { %1040 = vmatpush3.bf16.msra.mxu0 %v1145_v17 }
  0x9c   : > { %1024 = vmatpush3.bf16.msra.mxu1 %v1139_v11  ;;  %1041 = vmatprep.subr.bf16.mxu0 %v1323_v0 }
  0x9d   : > { %1025 = vmatprep.subr.bf16.mxu1 %v1323_v0 }
  0x9f   : > { %1042 = vmatpush3.bf16.msra.mxu0 %v1146_v18 }
  0xa0   : > { %1026 = vmatpush3.bf16.msra.mxu1 %v1140_v12  ;;  %1043 = vmatprep.subr.bf16.mxu0 %v1323_v0 }
  0xa1   : > { %1027 = vmatprep.subr.bf16.mxu1 %v1323_v0 }
  0xa3   : > { %1044 = vmatpush3.bf16.msra.mxu0 %v1147_v19 }
  0xa4   : > { %1028 = vmatpush3.bf16.msra.mxu1 %v1141_v13  ;;  %1045 = vmatprep.subr.bf16.mxu0 %v1323_v0 }
  0xa5   : > { %1053 = vmatprep.subr.bf16.mxu1 %v1323_v0 }
  0xa7   : > { %1046 = vmatpush3.bf16.msra.mxu0 %v1148_v30 }
  0xa8   : > { %1047 = vmatprep.subr.bf16.mxu0 %v1323_v0 }
  0xab   : > { %1048 = vmatpush3.bf16.msra.mxu0 %v1149_v31 }
 0x161   : > { %v453_v21 = vpop.f32.mrb[0].mxu0 }
 0x162   : > { %v454_v22 = vadd.f32 %v938_v20, %v453_v21  ;;  %v1011_v23 = vpop.f32.mrb[1].mxu0 }
 0x163   : > { %v456_v24 = vpop.f32.mrb[2].mxu0 }
 0x164   : > { %v457_v25 = vadd.f32 %v938_v20, %v456_v24  ;;  %v1012_v26 = vpop.f32.mrb[3].mxu0  ;;  %v460_v27 = vmax.f32 %v454_v22, 0.0 }
 0x166   : > { %v461_v28 = vmax.f32 %v457_v25, 0.0 }
 0x168   : > { %v462_v29 = vpack.c.bf16 %v461_v28, %v460_v27 }
 0x16a   : > { %1030 = vmatmul.mubr.bf16.vlgmr.msra.gmra.mrb[0].mxu1 %v462_v29 }
 0x16b   : > { %1069 = vmatprep.mubr.msk.bf16.mxu1 %vm1324_vm0, %v1323_v0  ;;  %1054 = vmatpush3.bf16.msra.mxu1 %v1150_v32 }
 0x16c   : > { %1055 = vmatprep.subr.bf16.mxu1 %v1323_v0 }
 0x16f   : > { %1056 = vmatpush3.bf16.msra.mxu1 %v1151_v33 }
 0x170   : > { %1057 = vmatprep.subr.bf16.mxu1 %v1323_v0 }
 0x173   : > { %1058 = vmatpush3.bf16.msra.mxu1 %v1152_v34 }
 0x174   : > { %1059 = vmatprep.subr.bf16.mxu1 %v1323_v0 }
 0x177   : > { %1060 = vmatpush3.bf16.msra.mxu1 %v1153_v35 }
 0x178   : > { %1061 = vmatprep.subr.bf16.mxu1 %v1323_v0 }
 0x17b   : > { %1062 = vmatpush3.bf16.msra.mxu1 %v1154_v36 }
 0x17c   : > { %1063 = vmatprep.subr.bf16.mxu1 %v1323_v0 }
 0x17f   : > { %1064 = vmatpush3.bf16.msra.mxu1 %v1155_v37 }
 0x180   : > { %1065 = vmatprep.subr.bf16.mxu1 %v1323_v0 }
 0x183   : > { %1066 = vmatpush3.bf16.msra.mxu1 %v1156_v48 }
 0x184   : > { %1067 = vmatprep.subr.bf16.mxu1 %v1323_v0 }
 0x187   : > { %1068 = vmatpush3.bf16.msra.mxu1 %v1157_v49 }
 0x23d   : > { %v568_v39 = vpop.f32.mrb[0].mxu1 }
 0x23e   : > { %v569_v40 = vadd.f32 %v940_v38, %v568_v39  ;;  %v1031_v41 = vpop.f32.mrb[1].mxu1 }
 0x23f   : > { %v571_v42 = vpop.f32.mrb[2].mxu1 }
 0x240   : > { %v572_v43 = vadd.f32 %v940_v38, %v571_v42  ;;  %v1032_v44 = vpop.f32.mrb[3].mxu1  ;;  %v575_v45 = vmax.f32 %v569_v40, 0.0 }
 0x242   : > { %v576_v46 = vmax.f32 %v572_v43, 0.0 }
 0x244   : > { %v577_v47 = vpack.c.bf16 %v576_v46, %v575_v45 }
 0x246   : > { %1050 = vmatmul.mubr.bf16.vlgmr.msra.gmra.mrb[4].mxu0 %v577_v47 }
 0x319   : > { %v683_v51 = vpop.f32.mrb[4].mxu0 }
 0x31a   : > { %v1051_v52 = vpop.f32.mrb[5].mxu0  ;;  %v684_v54 = vadd.f32 %v949_v50, %v683_v51 }
 0x31b   : > { %v686_v53 = vpop.f32.mrb[6].mxu0 }
 0x31c   : > { %v687_v55 = vadd.f32 %v949_v50, %v686_v53  ;;  %v1052_v56 = vpop.f32.mrb[7].mxu0 }
 0x31e   : > { %v690_v57 = vpack.c.bf16 %v687_v55, %v684_v54 }
 0x320   : > { %1070 = vmatmul.mubr.bf16.vlgmr.msra.gmra.mrb[4].mxu1 %v690_v57 }
 0x3f3   : > { %v796_v59 = vpop.f32.mrb[4].mxu1 }
 0x3f4   : > { %v1071_v60 = vpop.f32.mrb[5].mxu1  ;;  %v797_v62 = vadd.f32 %v958_v58, %v796_v59 }
 0x3f5   : > { %v799_v61 = vpop.f32.mrb[6].mxu1 }
 0x3f6   : > { %v800_v63 = vadd.f32 %v958_v58, %v799_v61  ;;  %v1072_v0 = vpop.f32.mrb[7].mxu1 }
 0x3f8   : > { %v976_v1 = vpack.c.bf16 %v800_v63, %v797_v62 }
 0x3fa   : > { %977 = vst [vmem:[%s397_s18] sm:$0xff] %v976_v1  }
 0x3fb PF: > { %s22_s30 = sadd.s32 1, %s1316_s30  }
 0x3fc   : > { %p19_p3 = scmp.ge.s32.totalorder %s22_s30, 4  }
 0x3fe   :  { %21 = sbr.rel (!%p19_p3) target bundleno = 3 (0x3), region = 107 }
 0x405   :  { %835 = vsyncpa [#allocation3], 1 }
 0x406   :  { %837 = vsyncpa [#allocation3 + $0x1], 1 }
 0x407   :  { %838 = vsyncpa [#allocation5], 1 }
 0x408   :  { %839 = vsyncpa [#allocation8], 1 }

// kernel: nemesis_vae_forward.8
= control target key start
LH: loop header
LB: loop body
LE: loop exit
PB: predicated region body
PF: predicated region fallthrough
CT: control target
= control target key end

     0   :  { %s917_s24 = smov 0   ;;  %s1049_s0 = inlined_call_operand.vmem [shape: bf16[32,128], index: 0, kind: input, shape index: {}]   ;;  %s1050_s1 = inlined_call_operand.vmem [shape: bf16[128,256], index: 1, kind: input, shape index: {}]   ;;  %s1051_s2 = inlined_call_operand.vmem [shape: f32[1,256], index: 2, kind: input, shape index: {}]   ;;  %s1052_s3 = inlined_call_operand.vmem [shape: bf16[256,128], index: 3, kind: input, shape index: {}]   ;;  %s1053_s4 = inlined_call_operand.vmem [shape: f32[1,128], index: 4, kind: input, shape index: {}]   ;;  %s1054_s5 = inlined_call_operand.vmem [shape: f32[1,128], index: 5, kind: input, shape index: {}]   ;;  %s1055_s6 = inlined_call_operand.vmem [shape: f32[1,128], index: 6, kind: input, shape index: {}]   ;;  %s1056_s7 = inlined_call_operand.vmem [shape: bf16[32,128], index: 7, kind: output, shape index: {}]  }
   0x1 LB: > { %s735_s25 = sadd.s32 4294967295, %s874_s24   ;;  %p739_p0 = scmp.ge.s32.totalorder %s874_s24, 1  ;;  %s874_s24 = sphi %s917_s24, %s17_s24  }
   0x2   : > { %p238_p1 = scmp.lt.s32.totalorder %s874_s24, 3 }
   0x4   : > { %p239_p2 = pnand %p739_p0, %p238_p1 }
   0x5   : > { %v822_v0 = vld [vmem:[%s1050_s1 + $0x4] ss:$8 sps:$4 sm:$0xff] (!%p239_p2)   ;;  %v824_v1 = vld [vmem:[%s1050_s1] ss:$8 sps:$4 sm:$0xff] (!%p239_p2)   ;;  %v876_v2 = vmov (!%p239_p2), 0   ;;  %s740_s17 = sshll.u32 (!%p239_p2), %s735_s25, 1  ;;  %v303_v34 = vlaneseq (!%p239_p2) }
   0x6   : > { %242 = sbr.rel (%p239_p2) target bundleno = 797 (0x31d), region = 48  ;;  %431 = vmatprep.mubr.bf16.mxu0 (!%p239_p2), %v876_v2  ;;  %399 = vmatprep.subr.bf16.mxu0 (!%p239_p2), %v822_v0  ;;  %v825_v3 = vld [vmem:[%s1050_s1 + $0x14] ss:$8 sps:$4 sm:$0xff] (!%p239_p2)   ;;  %v827_v4 = vld [vmem:[%s1050_s1 + $0x10] ss:$8 sps:$4 sm:$0xff] (!%p239_p2)   ;;  %p271_p3 = scmp.lt.s32.totalorder (!%p239_p2), %s740_s17, 3 }
   0x7   : > { %400 = vmatpush1.bf16.msra.mxu0 (!%p239_p2), %v824_v1  ;;  %v828_v5 = vld [vmem:[%s1050_s1 + $0x24] ss:$8 sps:$4 sm:$0xff] (!%p239_p2)   ;;  %v830_v6 = vld [vmem:[%s1050_s1 + $0x20] ss:$8 sps:$4 sm:$0xff] (!%p239_p2)   ;;  %v831_v7 = vld [vmem:[%s1050_s1 + $0x34] ss:$8 sps:$4 sm:$0xff] (!%p239_p2)  }
   0x8   : > { %401 = vmatprep.subr.bf16.mxu0 (!%p239_p2), %v825_v3  ;;  %v833_v8 = vld [vmem:[%s1050_s1 + $0x30] ss:$8 sps:$4 sm:$0xff] (!%p239_p2)   ;;  %v834_v9 = vld [vmem:[%s1050_s1 + $0x44] ss:$8 sps:$4 sm:$0xff] (!%p239_p2)   ;;  %v836_v12 = vld [vmem:[%s1050_s1 + $0x40] ss:$8 sps:$4 sm:$0xff] (!%p239_p2)  }
   0x9   : > { %v847_v10 = vld [vmem:[%s1052_s3 + $0x40] sm:$0xff] (!%p239_p2)   ;;  %v849_v13 = vld [vmem:[%s1052_s3 + $0x48] sm:$0xff] (!%p239_p2)   ;;  %v851_v15 = vld [vmem:[%s1052_s3 + $0x50] sm:$0xff] (!%p239_p2)   ;;  %v304_v35 = vshrl.u32 (!%p239_p2), %v303_v34, 7 }
   0xa   : > { %v848_v11 = vld [vmem:[%s1052_s3] sm:$0xff] (!%p239_p2)   ;;  %791 = vmatprep.subr.bf16.mxu1 (!%p239_p2), %v847_v10  ;;  %v850_v14 = vld [vmem:[%s1052_s3 + $0x8] sm:$0xff] (!%p239_p2)   ;;  %v837_v16 = vld [vmem:[%s1050_s1 + $0x54] ss:$8 sps:$4 sm:$0xff] (!%p239_p2)  }
   0xb   : > { %402 = vmatpush1.bf16.msra.mxu0 (!%p239_p2), %v827_v4  ;;  %792 = vmatpush3.bf16.msra.mxu1 (!%p239_p2), %v848_v11  ;;  %v839_v17 = vld [vmem:[%s1050_s1 + $0x50] ss:$8 sps:$4 sm:$0xff] (!%p239_p2)   ;;  %v840_v20 = vld [vmem:[%s1050_s1 + $0x64] ss:$8 sps:$4 sm:$0xff] (!%p239_p2)   ;;  %v842_v21 = vld [vmem:[%s1050_s1 + $0x60] ss:$8 sps:$4 sm:$0xff] (!%p239_p2)  }
   0xc   : > { %403 = vmatprep.subr.bf16.mxu0 (!%p239_p2), %v828_v5  ;;  %793 = vmatprep.subr.bf16.mxu1 (!%p239_p2), %v849_v13  ;;  %v852_v18 = vld [vmem:[%s1052_s3 + $0x10] sm:$0xff] (!%p239_p2)   ;;  %v853_v19 = vld [vmem:[%s1052_s3 + $0x58] sm:$0xff] (!%p239_p2)   ;;  %v855_v24 = vld [vmem:[%s1052_s3 + $0x60] sm:$0xff] (!%p239_p2)   ;;  %v305_v36 = vsub.s32 (!%p239_p2), 0, %v304_v35  ;;  %v309_v38 = vsub.s32 (!%p239_p2), 1, %v304_v35 }
   0xd   : > { %s1058_s17 = smov (!%p271_p3, %s740_s17), 3  ;;  %v854_v22 = vld [vmem:[%s1052_s3 + $0x18] sm:$0xff]   ;;  %v856_v25 = vld [vmem:[%s1052_s3 + $0x20] sm:$0xff]   ;;  %v857_v28 = vld [vmem:[%s1052_s3 + $0x68] sm:$0xff]  }
   0xe   : > { %s741_s27 = sshll.u32 %s1058_s17, 2  ;;  %v843_v23 = vld [vmem:[%s1050_s1 + $0x74] ss:$8 sps:$4 sm:$0xff]   ;;  %v845_v26 = vld [vmem:[%s1050_s1 + $0x70] ss:$8 sps:$4 sm:$0xff]   ;;  %v858_v29 = vld [vmem:[%s1052_s3 + $0x28] sm:$0xff]  }
   0xf   : > { %404 = vmatpush1.bf16.msra.mxu0 %v830_v6  ;;  %794 = vmatpush3.bf16.msra.mxu1 %v850_v14  ;;  %s274_s12 = scalar_lea.vmem %s1049_s0, %s741_s27  ;;  %v859_v30 = vld [vmem:[%s1052_s3 + $0x70] sm:$0xff]   ;;  %v861_v32 = vld [vmem:[%s1052_s3 + $0x78] sm:$0xff]   ;;  %v301_v37 = vld [vmem:[%s1051_s2] sm:$0x3]  ;;  %s280_s20 = scalar_lea.vmem %s1056_s7, %s741_s27 }
  0x10   : > { %405 = vmatprep.subr.bf16.mxu0 %v831_v7  ;;  %795 = vmatprep.subr.bf16.mxu1 %v851_v15  ;;  %v283_v27 = vld [vmem:[%s274_s12] sm:$0xff]   ;;  %v860_v31 = vld [vmem:[%s1052_s3 + $0x30] sm:$0xff]   ;;  %v862_v33 = vld [vmem:[%s1052_s3 + $0x38] sm:$0xff]   ;;  %v306_v39 = vrot.slane %v301_v37, %v305_v36  ;;  %v310_v40 = vrot.slane %v301_v37, %v309_v38 }
  0x11   : > { %v761_v56 = vld [vmem:[%s1053_s4] ss:$0 sm:$0xff]  ;;  %v624_v60 = vunpack.c.l.bf16 %v283_v27  ;;  %v625_v2 = vunpack.c.h.bf16 %v283_v27 }
  0x13   : > { %406 = vmatpush1.bf16.msra.mxu0 %v833_v8  ;;  %796 = vmatpush3.bf16.msra.mxu1 %v852_v18 }
  0x14   : > { %407 = vmatprep.subr.bf16.mxu0 %v834_v9  ;;  %797 = vmatprep.subr.bf16.mxu1 %v853_v19 }
  0x17   : > { %408 = vmatpush1.bf16.msra.mxu0 %v836_v12  ;;  %798 = vmatpush3.bf16.msra.mxu1 %v854_v22 }
  0x18   : > { %409 = vmatprep.subr.bf16.mxu0 %v837_v16  ;;  %799 = vmatprep.subr.bf16.mxu1 %v855_v24  ;;  %v779_v24 = vld [vmem:[%s1055_s6] ss:$0 sm:$0xff] }
  0x1b   : > { %410 = vmatpush1.bf16.msra.mxu0 %v839_v17  ;;  %800 = vmatpush3.bf16.msra.mxu1 %v856_v25 }
  0x1c   : > { %411 = vmatprep.subr.bf16.mxu0 %v840_v20  ;;  %801 = vmatprep.subr.bf16.mxu1 %v857_v28  ;;  %v778_v20 = vld [vmem:[%s1054_s5] ss:$0 sm:$0xff] }
  0x1f   : > { %412 = vmatpush1.bf16.msra.mxu0 %v842_v21  ;;  %802 = vmatpush3.bf16.msra.mxu1 %v858_v29 }
  0x20   : > { %413 = vmatprep.subr.bf16.mxu0 %v843_v23  ;;  %803 = vmatprep.subr.bf16.mxu1 %v859_v30 }
  0x23   : > { %414 = vmatpush1.bf16.msra.mxu0 %v845_v26  ;;  %804 = vmatpush3.bf16.msra.mxu1 %v860_v31 }
  0x24   : > { %805 = vmatprep.subr.bf16.mxu1 %v861_v32 }
  0x26   : > { %432 = vmatmul.mubr.bf16.vlgmr.msra.gmra.mrb[0].mxu0 %v283_v27 }
  0x27   : > { %806 = vmatpush3.bf16.msra.mxu1 %v862_v33 }
  0xf9   : > { %v433_v41 = vpop.f32.mrb[0].mxu0 }
  0xfa   : > { %v434_v42 = vadd.f32 %v433_v41, %v306_v39  ;;  %v435_v43 = vpop.f32.mrb[1].mxu0 }
  0xfb   : > { %v436_v44 = vadd.f32 %v435_v43, %v310_v40  ;;  %v437_v45 = vpop.f32.mrb[2].mxu0 }
  0xfc   : > { %v438_v46 = vadd.f32 %v437_v45, %v306_v39  ;;  %v439_v47 = vpop.f32.mrb[3].mxu0  ;;  %v442_v49 = vmax.f32 %v434_v42, 0.0 }
  0xfd   : > { %v440_v48 = vadd.f32 %v439_v47, %v310_v40  ;;  %v443_v51 = vmax.f32 %v436_v44, 0.0 }
  0xfe   : > { %v444_v50 = vmax.f32 %v438_v46, 0.0 }
  0xff   : > { %v445_v52 = vmax.f32 %v440_v48, 0.0 }
 0x100   : > { %v446_v53 = vpack.c.bf16 %v444_v50, %v442_v49 }
 0x101   : > { %v447_v54 = vpack.c.bf16 %v445_v52, %v443_v51 }
 0x103   : > { %615 = vmatprep.mubr.bf16.mxu1 %v447_v54 }
 0x104   : > { %616 = vmatmul.mubr.bf16.vlgmr.msra.gmra.mrb[0].mxu1 %v446_v53 }
 0x1d7   : > { %v807_v55 = vpop.f32.mrb[0].mxu1 }
 0x1d8   : > { %v808_v57 = vpop.f32.mrb[1].mxu1 }
 0x1d9   : > { %v809_v58 = vadd.f32 %v808_v57, %v807_v55  ;;  %v810_v59 = vpop.f32.mrb[2].mxu1 }
 0x1da   : > { %v811_v61 = vpop.f32.mrb[3].mxu1 }
 0x1db   : > { %v618_v62 = vadd.f32 %v809_v58, %v761_v56  ;;  %v812_v63 = vadd.f32 %v811_v61, %v810_v59 }
 0x1dd   : > { %v621_v0 = vadd.f32 %v812_v63, %v761_v56  ;;  %v626_v1 = vadd.f32 %v624_v60, %v618_v62 }
 0x1df   : > { %628 = vadd.xlane.f32.xlu0 %v626_v1  ;;  %v627_v3 = vadd.f32 %v625_v2, %v621_v0 }
 0x1e3   : > { %630 = vadd.xlane.f32.xlu0 %v627_v3 }
 0x26c   : > { %v629_v4 = vpop.xlane.xlu0 %628 }
 0x26d   : > { %v633_v5 = vmul.f32 0.0078125, %v629_v4 }
 0x26f   : > { %v635_v6 = vsub.f32 %v626_v1, %v633_v5 }
 0x270   : > { %v631_v7 = vpop.xlane.xlu0 %630 }
 0x271   : > { %v634_v8 = vmul.f32 0.0078125, %v631_v7  ;;  %v637_v9 = vmul.f32 %v635_v6, %v635_v6 }
 0x273   : > { %v636_v10 = vsub.f32 %v627_v3, %v634_v8  ;;  %639 = vadd.xlane.f32.xlu1 %v637_v9 }
 0x275   : > { %v638_v11 = vmul.f32 %v636_v10, %v636_v10 }
 0x277   : > { %641 = vadd.xlane.f32.xlu1 %v638_v11 }
 0x300   : > { %v640_v12 = vpop.xlane.xlu1 %639 }
 0x301   : > { %v643_v13 = vmul.f32 0.0078125, %v640_v12 }
 0x303   : > { %v645_v14 = vadd.f32 1e-05, %v643_v13 }
 0x304   : > { %v642_v15 = vpop.xlane.xlu1 %641 }
 0x305   : > { %864 = vrsqrt.f32 %v645_v14  ;;  %v644_v16 = vmul.f32 0.0078125, %v642_v15 }
 0x307   : > { %v646_v17 = vadd.f32 1e-05, %v644_v16 }
 0x309   : > { %866 = vrsqrt.f32 %v646_v17 }
 0x30f   : > { %v865_v18 = vpop.eup %864 }
 0x310   : > { %v649_v19 = vmul.f32 %v865_v18, %v635_v6 }
 0x312   : > { %v658_v22 = vmul.f32 %v778_v20, %v649_v19 }
 0x313   : > { %v867_v21 = vpop.eup %866 }
 0x314   : > { %v650_v23 = vmul.f32 %v867_v21, %v636_v10  ;;  %v667_v26 = vadd.f32 %v779_v24, %v658_v22 }
 0x316   : > { %v659_v25 = vmul.f32 %v778_v20, %v650_v23 }
 0x318   : > { %v668_v27 = vadd.f32 %v779_v24, %v659_v25 }
 0x31a   : > { %v789_v28 = vpack.c.bf16 %v668_v27, %v667_v26 }
 0x31c   : > { %790 = vst [vmem:[%s280_s20] sm:$0xff] %v789_v28  }
 0x31d PF: > { %s17_s24 = sadd.s32 1, %s874_s24  }
 0x31e   : > { %p14_p4 = scmp.ge.s32.totalorder %s17_s24, 4  }
 0x320   :  { %16 = sbr.rel (!%p14_p4) target bundleno = 1 (0x1), region = 78 }

// kernel: nemesis_vae_forward.7
= control target key start
LH: loop header
LB: loop body
LE: loop exit
PB: predicated region body
PF: predicated region fallthrough
CT: control target
= control target key end

     0   :  { %12 = vsyncpa [#allocation3], 0  ;;  %s1831_s24 = smov 0   ;;  %s2109_s0 = inlined_call_operand.vmem [shape: bf16[2,16,128], index: 0, kind: input, shape index: {}]   ;;  %s2110_s1 = inlined_call_operand.vmem [shape: bf16[128,384], index: 1, kind: input, shape index: {}]   ;;  %s2111_s2 = inlined_call_operand.vmem [shape: f32[1,384], index: 2, kind: input, shape index: {}]   ;;  %s2112_s3 = inlined_call_operand.hbm [shape: bf16[128,128], index: 3, kind: input, shape index: {}]   ;;  %s2113_s4 = inlined_call_operand.vmem [shape: f32[1,128], index: 4, kind: input, shape index: {}]   ;;  %s2114_s5 = inlined_call_operand.vmem [shape: f32[1,128], index: 5, kind: input, shape index: {}]   ;;  %s2115_s6 = inlined_call_operand.vmem [shape: f32[1,128], index: 6, kind: input, shape index: {}]   ;;  %s2116_s7 = inlined_call_operand.vmem [shape: bf16[2,16,128], index: 7, kind: output, shape index: {}]  }
   0x1 LB: > { %s1837_s25 = sadd.s32 4294967295, %s1780_s24   ;;  %p1430_p0 = scmp.ge.s32.totalorder %s1780_s24, 1  ;;  %s1780_s24 = sphi %s1831_s24, %s18_s24  }
   0x2   : > { %p201_p1 = scmp.lt.s32.totalorder %s1780_s24, 3  ;;  %s1782_s26 = smov [#allocation2]  }
   0x3   : > { %s219_s27 = sshll.u32 %s1782_s26, 4  ;;  %p2117_p3 = scmp.eq.s32.totalorder %s1837_s25, 0  ;;  %s220_s27 = int_to_ptr.vmem [resolvable:$true] %s219_s27 }
   0x4   : > { %p1841_p2 = pnand %p1430_p0, %p201_p1  ;;  %s1742_s9 = scalar_lea.hbm %s2112_s3, 1024 }
   0x5   : > { %p1743_p6 = scmp.ne.s32.totalorder %s2112_s3, %s1742_s9  ;;  %p1749_p10 = scmp.lt.u32.totalorder %s1742_s9, %s2112_s3 }
   0x6   : > { %s2119_s28 = scalar_select %p1841_p2, 1, 0 }
   0x7   : > { %p1641_p4 = pneg %p1841_p2 }
   0x9   : > { %p1850_p5 = pnand %p2117_p3, %p1641_p4 }
   0xb   : > { %p1744_p7 = pneg %p1850_p5 }
   0xd   : > { %p1745_p8 = pnand %p1744_p7, %p1743_p6 }
   0xf   : > { %p1746_p9 = pneg %p1745_p8 }
  0x11   : > { %p1751_p11 = pnand %p1749_p10, %p1746_p9 }
  0x13   : > { %1754 = shalt.err (!%p1751_p11)
}
  0x14   : > { %s1755_s14 = scalar_lea.vmem %s220_s27, 1024  ;;  %p1763_p1 = scmp.lt.s32.totalorder %s220_s27, %s220_s27 }
  0x15   : > { %p1756_p12 = scmp.ne.s32.totalorder %s220_s27, %s1755_s14  ;;  %p1764_p4 = scmp.lt.s32.totalorder %s1755_s14, %s1755_s14 }
  0x17   : > { %p1758_p13 = pnand %p1756_p12, %p1744_p7  ;;  %p1765_p3 = por %p1764_p4, %p1763_p1 }
  0x19   : > { %p1759_p0 = pneg %p1758_p13 }
  0x1b   : > { %p1766_p2 = pnand %p1765_p3, %p1759_p0 }
  0x1d   : > { %1769 = shalt.err (!%p1766_p2)
}
  0x1e   : > { %s1783_s15 = smov 64   ;;  %s1784_s16 = smov 4  }
  0x1f   : > { %1644 = dma.hbm_to_vmem [thread:$0]  (!%p1850_p5), %s2112_s3, 1024, %s220_s27, [#allocation3], %s1783_s15, %s1783_s15, %s1784_s16  }
  0x20   : > { %p2121_p6 = scmp.ne.s32.totalorder %s2119_s28, 0 }
  0x21   : > { %p2122_p8 = scmp.eq.s32.totalorder (!%p2121_p6), %s1837_s25, 0 }
  0x22   : > { %252 = sbr.rel (%p2121_p6) target bundleno = 2997 (0xbb5), region = 48 }
  0x29   : > { %1775 = dma.done.wait (%p2122_p8), [#allocation3], 1024   ;;  %p2123_p7 = pmov %p2122_p8 }
  0x2a   : > { %v1785_v0 = vmov 0   ;;  %v1664_v1 = vld [vmem:[%s2110_s1 + $0x4] ss:$12 sps:$4 sm:$0xff]   ;;  %v1666_v2 = vld [vmem:[%s2110_s1] ss:$12 sps:$4 sm:$0xff]   ;;  %p284_p2 = scmp.lt.s32.totalorder %s1837_s25, 1  ;;  %v331_v19 = vlaneseq }
  0x2b   : > { %1777 = vsyncadd (%p2123_p7), [#allocation3], 4294966272  ;;  %512 = vmatprep.mubr.bf16.mxu0 %v1785_v0  ;;  %480 = vmatprep.subr.bf16.mxu0 %v1664_v1  ;;  %v1667_v3 = vld [vmem:[%s2110_s1 + $0x1c] ss:$12 sps:$4 sm:$0xff]   ;;  %v1669_v4 = vld [vmem:[%s2110_s1 + $0x18] ss:$12 sps:$4 sm:$0xff]  }
  0x2c   : > { %481 = vmatpush1.bf16.msra.mxu0 %v1666_v2  ;;  %v1670_v5 = vld [vmem:[%s2110_s1 + $0x34] ss:$12 sps:$4 sm:$0xff]   ;;  %s2125_s25 = smov (!%p284_p2, %s1837_s25), 1  ;;  %v1672_v6 = vld [vmem:[%s2110_s1 + $0x30] ss:$12 sps:$4 sm:$0xff]   ;;  %v1786_v18 = vmov 0.0  }
  0x2d   : > { %482 = vmatprep.subr.bf16.mxu0 %v1667_v3  ;;  %v1673_v7 = vld [vmem:[%s2110_s1 + $0x4c] ss:$12 sps:$4 sm:$0xff]   ;;  %v1675_v8 = vld [vmem:[%s2110_s1 + $0x48] ss:$12 sps:$4 sm:$0xff]   ;;  %s1491_s14 = sshll.u32 %s2125_s25, 3  ;;  %1537 = vmatprep.subr.bf16.mxu1 %v1786_v18  ;;  %vm1787_vm0 = vmmov 0  }
  0x2e   : > { %v1676_v9 = vld [vmem:[%s2110_s1 + $0x64] ss:$12 sps:$4 sm:$0xff]   ;;  %v1678_v10 = vld [vmem:[%s2110_s1 + $0x60] ss:$12 sps:$4 sm:$0xff]   ;;  %v1679_v11 = vld [vmem:[%s2110_s1 + $0x7c] ss:$12 sps:$4 sm:$0xff]   ;;  %s288_s10 = scalar_lea.vmem %s2109_s0, %s1491_s14  ;;  %1553 = vmatprep.mubr.msk.bf16.mxu1 %vm1787_vm0, %v1786_v18  ;;  %s293_s23 = scalar_lea.vmem %s2116_s7, %s1491_s14 }
  0x2f   : > { %v1681_v12 = vld [vmem:[%s2110_s1 + $0x78] ss:$12 sps:$4 sm:$0xff]   ;;  %v1682_v13 = vld [vmem:[%s2110_s1 + $0x94] ss:$12 sps:$4 sm:$0xff]   ;;  %v1684_v14 = vld [vmem:[%s2110_s1 + $0x90] ss:$12 sps:$4 sm:$0xff]  }
  0x30   : > { %483 = vmatpush1.bf16.msra.mxu0 %v1669_v4  ;;  %v1685_v15 = vld [vmem:[%s2110_s1 + $0xac] ss:$12 sps:$4 sm:$0xff]   ;;  %v1687_v16 = vld [vmem:[%s2110_s1 + $0xa8] ss:$12 sps:$4 sm:$0xff]   ;;  %v1934_v17 = vld [vmem:[%s288_s10] sm:$0xff]   ;;  %v1943_v20 = vshrl.u32 %v331_v19, 7 }
  0x31   : > { %484 = vmatprep.subr.bf16.mxu0 %v1670_v5  ;;  %v1949_v22 = vld [vmem:[%s2111_s2] sm:$0x7]  ;;  %vm567_vm1 = vcmask 261120   ;;  %s1788_s16 = smov 96   ;;  %v1689_v37 = vld [vmem:[%s2110_s1 + $0x8] ss:$12 sps:$4 sm:$0xff]  }
  0x32   : > { %v333_v21 = vsub.s32 0, %v1943_v20  ;;  %v337_v23 = vsub.s32 1, %v1943_v20  ;;  %1538 = vmatpush3.bf16.msra.mxu1 %v1689_v37  ;;  %v1690_v38 = vld [vmem:[%s2110_s1 + $0x20] ss:$12 sps:$4 sm:$0xff]   ;;  %v1691_v39 = vld [vmem:[%s2110_s1 + $0x38] ss:$12 sps:$4 sm:$0xff]  }
  0x33   : > { %1539 = vmatprep.subr.bf16.mxu1 %v1786_v18  ;;  %v1692_v40 = vld [vmem:[%s2110_s1 + $0x50] ss:$12 sps:$4 sm:$0xff]   ;;  %v1693_v41 = vld [vmem:[%s2110_s1 + $0x68] ss:$12 sps:$4 sm:$0xff]   ;;  %v1694_v44 = vld [vmem:[%s2110_s1 + $0x80] ss:$12 sps:$4 sm:$0xff]  }
  0x34   : > { %485 = vmatpush1.bf16.msra.mxu0 %v1672_v6  ;;  %v334_v24 = vrot.slane %v1949_v22, %v333_v21  ;;  %v338_v26 = vrot.slane %v1949_v22, %v337_v23  ;;  %v1695_v45 = vld [vmem:[%s2110_s1 + $0x98] ss:$12 sps:$4 sm:$0xff]   ;;  %v1696_v47 = vld [vmem:[%s2110_s1 + $0xb0] ss:$12 sps:$4 sm:$0xff]   ;;  %vm615_vm2 = vcmask 130048   ;;  %s1789_s12 = smov 64  }
  0x35   : > { %486 = vmatprep.subr.bf16.mxu0 %v1673_v7  ;;  %v341_v2 = vsub.s32 2, %v1943_v20  ;;  %v1700_v37 = vld [vmem:[#allocation2 + $0x18] sm:$0xff]   ;;  %s1790_s13 = smov 32  }
  0x36   : > { %1540 = vmatpush3.bf16.msra.mxu1 %v1690_v38 }
  0x37   : > { %1541 = vmatprep.subr.bf16.mxu1 %v1786_v18  ;;  %v342_v5 = vrot.slane %v1949_v22, %v341_v2 }
  0x38   : > { %487 = vmatpush1.bf16.msra.mxu0 %v1675_v8 }
  0x39   : > { %488 = vmatprep.subr.bf16.mxu0 %v1676_v9 }
  0x3a   : > { %1542 = vmatpush3.bf16.msra.mxu1 %v1691_v39 }
  0x3b   : > { %1543 = vmatprep.subr.bf16.mxu1 %v1786_v18 }
  0x3c   : > { %489 = vmatpush1.bf16.msra.mxu0 %v1678_v10 }
  0x3d   : > { %490 = vmatprep.subr.bf16.mxu0 %v1679_v11 }
  0x3e   : > { %1544 = vmatpush3.bf16.msra.mxu1 %v1692_v40 }
  0x3f   : > { %1545 = vmatprep.subr.bf16.mxu1 %v1786_v18 }
  0x40   : > { %491 = vmatpush1.bf16.msra.mxu0 %v1681_v12 }
  0x41   : > { %492 = vmatprep.subr.bf16.mxu0 %v1682_v13 }
  0x42   : > { %1546 = vmatpush3.bf16.msra.mxu1 %v1693_v41 }
  0x43   : > { %1547 = vmatprep.subr.bf16.mxu1 %v1786_v18 }
  0x44   : > { %493 = vmatpush1.bf16.msra.mxu0 %v1684_v14 }
  0x45   : > { %494 = vmatprep.subr.bf16.mxu0 %v1685_v15 }
  0x46   : > { %1548 = vmatpush3.bf16.msra.mxu1 %v1694_v44 }
  0x47   : > { %1549 = vmatprep.subr.bf16.mxu1 %v1786_v18 }
  0x48   : > { %495 = vmatpush1.bf16.msra.mxu0 %v1687_v16 }
  0x49   : > { %1557 = vmatprep.subr.bf16.mxu0 %v1786_v18 }
  0x4a   : > { %1550 = vmatpush3.bf16.msra.mxu1 %v1695_v45  ;;  %v1697_v45 = vld [vmem:[#allocation2] sm:$0xff]  }
  0x4b   : > { %513 = vmatmul.mubr.bf16.vlgmr.msra.gmra.mrb[0].mxu0 %v1934_v17  ;;  %1551 = vmatprep.subr.bf16.mxu1 %v1786_v18 }
  0x4c   : > { %1559 = vmatprep.mubr.msk.bf16.mxu0 %vm1787_vm0, %v1786_v18 }
  0x4e   : > { %1552 = vmatpush3.bf16.msra.mxu1 %v1696_v47  ;;  %v1698_v47 = vld [vmem:[#allocation2 + $0x8] sm:$0xff]  }
  0x4f   : > { %1563 = vmatprep.subr.bf16.mxu1 %v1786_v18 }
  0x51   : > { %1554 = vmatmul.mubr.bf16.vlgmr.msra.gmra.mrb[0].mxu1 %v1934_v17 }
  0x52   : > { %1565 = vmatprep.mubr.msk.bf16.mxu1 %vm1787_vm0, %v1786_v18 }
 0x11e   : > { %v514_v25 = vpop.f32.mrb[0].mxu0 }
 0x11f   : > { %v516_v27 = vpop.f32.mrb[1].mxu0  ;;  %v515_v29 = vadd.f32 %v514_v25, %v334_v24 }
 0x120   : > { %v518_v28 = vpop.f32.mrb[2].mxu0  ;;  %v517_v32 = vadd.f32 %v516_v27, %v338_v26 }
 0x121   : > { %v519_v30 = vadd.f32 %v518_v28, %v334_v24  ;;  %v520_v31 = vpop.f32.mrb[3].mxu0 }
 0x122   : > { %v521_v33 = vadd.f32 %v520_v31, %v338_v26 }
 0x123   : > { %v1954_v34 = vpack.c.bf16 %v519_v30, %v515_v29 }
 0x124   : > { %v1956_v35 = vpack.c.bf16 %v521_v33, %v517_v32  ;;  %v557_v3 = vpop.f32.mrb[0].mxu1 }
 0x125   : > { %v1555_v4 = vpop.f32.mrb[1].mxu1  ;;  %v558_v8 = vadd.f32 %v557_v3, %v342_v5 }
 0x126   : > { %692 = vrot.lane.b32.xlu0 %v1956_v35, %s1788_s16  ;;  %v572_v36 = vsel %vm567_vm1, %v1956_v35, 0  ;;  %v560_v6 = vpop.f32.mrb[2].mxu1 }
 0x127   : > { %1558 = vmatpush3.bf16.xpose.msra.mxu0 %v572_v36  ;;  %v1556_v7 = vpop.f32.mrb[3].mxu1  ;;  %v561_v9 = vadd.f32 %v560_v6, %v342_v5  ;;  %v1699_v36 = vld [vmem:[#allocation2 + $0x10] sm:$0xff]  }
 0x128   : > { %1569 = vmatprep.subr.bf16.mxu0 %v1786_v18 }
 0x129   : > { %v2017_v10 = vpack.c.bf16 %v561_v9, %v558_v8 }
 0x12a   : > { %689 = vrot.lane.b32.xlu0 %v1954_v34, %s1788_s16 }
 0x12b   : > { %1564 = vmatpush3.bf16.msra.mxu1 %v2017_v10 }
 0x12c   : > { %1575 = vmatprep.subr.bf16.mxu1 %v1786_v18 }
 0x12e   : > { %1560 = vmatmul.mubr.msk.bf16.vlgmr.msra.gmra.mrb[4].mxu0 %vm567_vm1, %v1954_v34 }
 0x12f   : > { %1571 = vmatprep.mubr.msk.bf16.mxu0 %vm1787_vm0, %v1786_v18 }
 0x198   : > { %v693_v42 = vpop.permute.xlu0 %692 }
 0x199   : > { %v698_v43 = vsel %vm567_vm1, %v693_v42, 0 }
 0x19a   : > { %1570 = vmatpush3.bf16.xpose.msra.mxu0 %v698_v43 }
 0x19b   : > { %1581 = vmatprep.subr.bf16.mxu0 %v1786_v18 }
 0x19c   : > { %v690_v46 = vpop.permute.xlu0 %689 }
 0x1a1   : > { %1572 = vmatmul.mubr.msk.bf16.vlgmr.msra.gmra.mrb[8].mxu0 %vm567_vm1, %v690_v46 }
 0x1a2   : > { %1585 = vmatprep.mubr.msk.bf16.mxu0 %vm1787_vm0, %v1786_v18  ;;  %1582 = vmatpush3.bf16.msra.mxu0 %v1699_v36 }
 0x1a3   : > { %1583 = vmatprep.subr.bf16.mxu0 %v1786_v18 }
 0x1a6   : > { %1584 = vmatpush3.bf16.msra.mxu0 %v1700_v37 }
 0x1a7   : > { %1597 = vmatprep.subr.bf16.mxu0 %v1786_v18 }
 0x201   : > { %v608_v48 = vpop.f32.mrb[4].mxu0 }
 0x202   : > { %v1561_v49 = vpop.f32.mrb[5].mxu0  ;;  %v616_v50 = vsel %vm615_vm2, %v608_v48, -inf }
 0x203   : > { %617 = vmax.xlane.f32.xlu1 %v616_v50  ;;  %v611_v51 = vpop.f32.mrb[6].mxu0 }
 0x204   : > { %v1562_v52 = vpop.f32.mrb[7].mxu0  ;;  %v619_v53 = vsel %vm615_vm2, %v611_v51, -inf }
 0x207   : > { %620 = vmax.xlane.f32.xlu1 %v619_v53 }
 0x274   : > { %v734_v54 = vpop.f32.mrb[8].mxu0 }
 0x275   : > { %v1573_v55 = vpop.f32.mrb[9].mxu0  ;;  %v741_v56 = vsel %vm615_vm2, %v734_v54, -inf }
 0x276   : > { %742 = vmax.xlane.f32.xlu0 %v741_v56  ;;  %v737_v57 = vpop.f32.mrb[10].mxu0 }
 0x277   : > { %v1574_v58 = vpop.f32.mrb[11].mxu0  ;;  %v744_v59 = vsel %vm615_vm2, %v737_v57, -inf }
 0x278   : > { %745 = vmax.xlane.f32.xlu1 %v744_v59 }
 0x28c   : > { %931 = vrot.lane.b32.xlu0 %v1956_v35, %s1789_s12 }
 0x290   : > { %v618_v60 = vpop.xlane.xlu1 %617 }
 0x291   : > { %v622_v61 = vsub.f32 %v608_v48, %v618_v60 }
 0x293   : > { %v624_v62 = vmul.f32 1.442695, %v622_v61 }
 0x294   : > { %v621_v63 = vpop.xlane.xlu1 %620 }
 0x295   : > { %1706 = vpow2.f32 %v624_v62  ;;  %v623_v0 = vsub.f32 %v611_v51, %v621_v63 }
 0x297   : > { %v626_v1 = vmul.f32 1.442695, %v623_v0 }
 0x299   : > { %1708 = vpow2.f32 %v626_v1 }
 0x29f   : > { %v1707_v11 = vpop.eup %1706 }
 0x2a0   : > { %v628_v12 = vsel %vm615_vm2, %v1707_v11, 0.0 }
 0x2a1   : > { %629 = vadd.xlane.f32.xlu1 %v628_v12 }
 0x2a3   : > { %v1709_v13 = vpop.eup %1708 }
 0x2a4   : > { %v631_v14 = vsel %vm615_vm2, %v1709_v13, 0.0 }
 0x2a5   : > { %632 = vadd.xlane.f32.xlu1 %v631_v14 }
 0x303   : > { %v743_v15 = vpop.xlane.xlu0 %742 }
 0x304   : > { %v747_v16 = vsub.f32 %v734_v54, %v743_v15 }
 0x305   : > { %v746_v19 = vpop.xlane.xlu1 %745 }
 0x306   : > { %v749_v20 = vmul.f32 1.442695, %v747_v16  ;;  %v748_v21 = vsub.f32 %v737_v57, %v746_v19 }
 0x307   : > { %v932_v55 = vpop.permute.xlu0 %931 }
 0x308   : > { %1710 = vpow2.f32 %v749_v20  ;;  %v751_v22 = vmul.f32 1.442695, %v748_v21  ;;  %v937_v59 = vsel %vm567_vm1, %v932_v55, 0 }
 0x30a   : > { %1712 = vpow2.f32 %v751_v22 }
 0x312   : > { %v1711_v23 = vpop.eup %1710 }
 0x313   : > { %v753_v24 = vsel %vm615_vm2, %v1711_v23, 0.0 }
 0x314   : > { %v1713_v25 = vpop.eup %1712  ;;  %754 = vadd.xlane.f32.xlu1 %v753_v24 }
 0x315   : > { %v756_v26 = vsel %vm615_vm2, %v1713_v25, 0.0 }
 0x318   : > { %757 = vadd.xlane.f32.xlu1 %v756_v26 }
 0x329   : > { %765 = vrot.lane.b32.xlu1 %v2017_v10, %s1788_s16 }
 0x32d   : > { %929 = vrot.lane.b32.xlu1 %v1954_v34, %s1789_s12 }
 0x32e   : > { %v630_v27 = vpop.xlane.xlu1 %629 }
 0x32f   : > { %1714 = vrcp.f32 %v630_v27  ;;  %v1701_v27 = vld [vmem:[#allocation2 + $0x20] sm:$0xff]  }
 0x332   : > { %v633_v28 = vpop.xlane.xlu1 %632 }
 0x333   : > { %1716 = vrcp.f32 %v633_v28 }
 0x339   : > { %v1715_v29 = vpop.eup %1714 }
 0x33a   : > { %v636_v31 = vmul.f32 %v1715_v29, %v1707_v11 }
 0x33d   : > { %v1717_v30 = vpop.eup %1716 }
 0x33e   : > { %v637_v32 = vmul.f32 %v1717_v30, %v1709_v13 }
 0x340   : > { %v638_v33 = vpack.c.bf16 %v637_v32, %v636_v31 }
 0x342   : > { %1566 = vmatmul.mubr.msk.bf16.vlgmr.msra.gmra.mrb[4].mxu1 %vm615_vm2, %v638_v33 }
 0x343   : > { %1577 = vmatprep.mubr.msk.bf16.mxu1 %vm1787_vm0, %v1786_v18 }
 0x3a1   : > { %v755_v38 = vpop.xlane.xlu1 %754 }
 0x3a2   : > { %1718 = vrcp.f32 %v755_v38 }
 0x3a5   : > { %v758_v39 = vpop.xlane.xlu1 %757 }
 0x3a6   : > { %1720 = vrcp.f32 %v758_v39 }
 0x3a9   : > { %v766_v40 = vpop.permute.xlu1 %765 }
 0x3aa   : > { %1576 = vmatpush3.bf16.msra.mxu1 %v766_v40 }
 0x3ab   : > { %1589 = vmatprep.subr.bf16.mxu1 %v1786_v18 }
 0x3ac   : > { %v1719_v41 = vpop.eup %1718 }
 0x3ad   : > { %v761_v43 = vmul.f32 %v1719_v41, %v1711_v23  ;;  %v930_v60 = vpop.permute.xlu1 %929 }
 0x3b0   : > { %v1721_v42 = vpop.eup %1720 }
 0x3b1   : > { %v762_v44 = vmul.f32 %v1721_v42, %v1713_v25 }
 0x3b3   : > { %v763_v46 = vpack.c.bf16 %v762_v44, %v761_v43 }
 0x3b5   : > { %1578 = vmatmul.mubr.msk.bf16.vlgmr.msra.gmra.mrb[8].mxu1 %vm615_vm2, %v763_v46 }
 0x3b6   : > { %1590 = vmatpush3.bf16.msra.mxu1 %v1697_v45  ;;  %1593 = vmatprep.mubr.msk.bf16.mxu1 %vm1787_vm0, %v1786_v18 }
 0x3b7   : > { %1591 = vmatprep.subr.bf16.mxu1 %v1786_v18 }
 0x3ba   : > { %1592 = vmatpush3.bf16.msra.mxu1 %v1698_v47 }
 0x3bb   : > { %1603 = vmatprep.subr.bf16.mxu1 %v1786_v18 }
 0x415   : > { %v676_v48 = vpop.f32.mrb[4].mxu1 }
 0x416   : > { %v1567_v49 = vpop.f32.mrb[5].mxu1 }
 0x417   : > { %v679_v50 = vpop.f32.mrb[6].mxu1 }
 0x418   : > { %v683_v51 = vpack.c.bf16 %v679_v50, %v676_v48  ;;  %v1568_v52 = vpop.f32.mrb[7].mxu1 }
 0x41a   : > { %1594 = vmatmul.mubr.msk.bf16.vlgmr.msra.gmra.mrb[12].mxu1 %vm567_vm1, %v683_v51 }
 0x41b   : > { %1605 = vmatprep.mubr.msk.bf16.mxu1 %vm1787_vm0, %v1786_v18 }
 0x488   : > { %v805_v53 = vpop.f32.mrb[8].mxu1 }
 0x489   : > { %v1579_v54 = vpop.f32.mrb[9].mxu1 }
 0x48a   : > { %v808_v56 = vpop.f32.mrb[10].mxu1 }
 0x48b   : > { %v812_v57 = vpack.c.bf16 %v808_v56, %v805_v53  ;;  %v1580_v58 = vpop.f32.mrb[11].mxu1 }
 0x48d   : > { %1586 = vmatmul.mubr.msk.bf16.vlgmr.msra.gmra.mrb[12].mxu0 %vm567_vm1, %v812_v57 }
 0x48e   : > { %1598 = vmatpush3.bf16.xpose.msra.mxu0 %v937_v59  ;;  %1599 = vmatprep.mubr.msk.bf16.mxu0 %vm1787_vm0, %v1786_v18 }
 0x48f   : > { %1609 = vmatprep.subr.bf16.mxu0 %v1786_v18 }
 0x495   : > { %1600 = vmatmul.mubr.msk.bf16.vlgmr.msra.gmra.mrb[16].mxu0 %vm567_vm1, %v930_v60 }
 0x496   : > { %1613 = vmatprep.mubr.msk.bf16.mxu0 %vm1787_vm0, %v1786_v18  ;;  %1610 = vmatpush3.bf16.msra.mxu0 %v1701_v27 }
 0x497   : > { %1611 = vmatprep.subr.bf16.mxu0 %v1786_v18 }
 0x4ed   : > { %v922_v61 = vpop.f32.mrb[12].mxu1 }
 0x4ee   : > { %v1595_v62 = vpop.f32.mrb[13].mxu1 }
 0x4ef   : > { %v925_v63 = vpop.f32.mrb[14].mxu1 }
 0x4f0   : > { %v1596_v0 = vpop.f32.mrb[15].mxu1 }
 0x560   : > { %v866_v1 = vpop.f32.mrb[12].mxu0 }
 0x561   : > { %v2051_v2 = vadd.f32 %v922_v61, %v866_v1  ;;  %v1587_v3 = vpop.f32.mrb[13].mxu0  ;;  %v1703_v61 = vld [vmem:[#allocation2 + $0x30] sm:$0xff]  }
 0x562   : > { %v869_v4 = vpop.f32.mrb[14].mxu0 }
 0x563   : > { %v2053_v5 = vadd.f32 %v925_v63, %v869_v4  ;;  %v1588_v6 = vpop.f32.mrb[15].mxu0 }
 0x568   : > { %v973_v7 = vpop.f32.mrb[16].mxu0 }
 0x569   : > { %v1601_v8 = vpop.f32.mrb[17].mxu0  ;;  %v980_v9 = vsel %vm615_vm2, %v973_v7, -inf }
 0x56a   : > { %981 = vmax.xlane.f32.xlu1 %v980_v9  ;;  %v976_v11 = vpop.f32.mrb[18].mxu0 }
 0x56b   : > { %v1602_v12 = vpop.f32.mrb[19].mxu0  ;;  %v983_v13 = vsel %vm615_vm2, %v976_v11, -inf }
 0x56c   : > { %984 = vmax.xlane.f32.xlu0 %v983_v13 }
 0x582   : > { %1003 = vrot.lane.b32.xlu0 %v2017_v10, %s1789_s12 }
 0x5f7   : > { %v982_v14 = vpop.xlane.xlu1 %981 }
 0x5f8   : > { %v986_v15 = vsub.f32 %v973_v7, %v982_v14 }
 0x5f9   : > { %v985_v16 = vpop.xlane.xlu0 %984 }
 0x5fa   : > { %v988_v19 = vmul.f32 1.442695, %v986_v15  ;;  %v987_v20 = vsub.f32 %v976_v11, %v985_v16 }
 0x5fc   : > { %1722 = vpow2.f32 %v988_v19  ;;  %v990_v21 = vmul.f32 1.442695, %v987_v20 }
 0x5fd   : > { %v1004_v22 = vpop.permute.xlu0 %1003 }
 0x5fe   : > { %1724 = vpow2.f32 %v990_v21  ;;  %1604 = vmatpush3.bf16.msra.mxu1 %v1004_v22  ;;  %v1298_v22 = vunpack.c.h.bf16 %v1934_v17 }
 0x5ff   : > { %1617 = vmatprep.subr.bf16.mxu1 %v1786_v18 }
 0x606   : > { %v1723_v23 = vpop.eup %1722 }
 0x607   : > { %v992_v24 = vsel %vm615_vm2, %v1723_v23, 0.0 }
 0x608   : > { %v1725_v25 = vpop.eup %1724  ;;  %993 = vadd.xlane.f32.xlu1 %v992_v24  ;;  %v1484_v24 = vld [vmem:[%s2113_s4] ss:$0 sm:$0xff] }
 0x609   : > { %v995_v26 = vsel %vm615_vm2, %v1725_v25, 0.0 }
 0x60c   : > { %996 = vadd.xlane.f32.xlu1 %v995_v26 }
 0x61d   : > { %1115 = vrot.lane.b32.xlu1 %v1956_v35, %s1790_s13  ;;  %v1702_v35 = vld [vmem:[#allocation2 + $0x28] sm:$0xff]  }
 0x61e   : > { %1612 = vmatpush3.bf16.msra.mxu0 %v1702_v35 }
 0x61f   : > { %1623 = vmatprep.subr.bf16.mxu0 %v1786_v18 }
 0x621   : > { %1113 = vrot.lane.b32.xlu1 %v1954_v34, %s1790_s13 }
 0x695   : > { %v994_v28 = vpop.xlane.xlu1 %993 }
 0x696   : > { %1726 = vrcp.f32 %v994_v28 }
 0x699   : > { %v997_v29 = vpop.xlane.xlu1 %996 }
 0x69a   : > { %1728 = vrcp.f32 %v997_v29 }
 0x69d   : > { %v1116_v36 = vpop.permute.xlu1 %1115 }
 0x69e   : > { %v1121_v38 = vsel %vm567_vm1, %v1116_v36, 0 }
 0x6a0   : > { %v1727_v30 = vpop.eup %1726 }
 0x6a1   : > { %v1000_v32 = vmul.f32 %v1727_v30, %v1723_v23  ;;  %v1114_v34 = vpop.permute.xlu1 %1113 }
 0x6a4   : > { %v1729_v31 = vpop.eup %1728 }
 0x6a5   : > { %v1001_v33 = vmul.f32 %v1729_v31, %v1725_v25 }
 0x6a7   : > { %v1002_v37 = vpack.c.bf16 %v1001_v33, %v1000_v32 }
 0x6a9   : > { %1606 = vmatmul.mubr.msk.bf16.vlgmr.msra.gmra.mrb[16].mxu1 %vm615_vm2, %v1002_v37 }
 0x6aa   : > { %1618 = vmatpush3.bf16.xpose.msra.mxu1 %v1121_v38  ;;  %1619 = vmatprep.mubr.msk.bf16.mxu1 %vm1787_vm0, %v1786_v18 }
 0x6ab   : > { %1629 = vmatprep.subr.bf16.mxu1 %v1786_v18 }
 0x6b1   : > { %1620 = vmatmul.mubr.msk.bf16.vlgmr.msra.gmra.mrb[20].mxu1 %vm567_vm1, %v1114_v34 }
 0x6b2   : > { %1633 = vmatprep.mubr.msk.bf16.mxu1 %vm1787_vm0, %v1786_v18  ;;  %1630 = vmatpush3.bf16.msra.mxu1 %v1703_v61 }
 0x6b3   : > { %1631 = vmatprep.subr.bf16.mxu1 %v1786_v18 }
 0x77c   : > { %v1043_v39 = vpop.f32.mrb[16].mxu1 }
 0x77d   : > { %v1607_v40 = vpop.f32.mrb[17].mxu1 }
 0x77e   : > { %v1046_v41 = vpop.f32.mrb[18].mxu1 }
 0x77f   : > { %v1050_v42 = vpack.c.bf16 %v1046_v41, %v1043_v39  ;;  %v1608_v43 = vpop.f32.mrb[19].mxu1 }
 0x781   : > { %1614 = vmatmul.mubr.msk.bf16.vlgmr.msra.gmra.mrb[20].mxu0 %vm567_vm1, %v1050_v42 }
 0x782   : > { %1625 = vmatprep.mubr.msk.bf16.mxu0 %vm1787_vm0, %v1786_v18  ;;  %v1704_v18 = vld [vmem:[#allocation2 + $0x38] sm:$0xff]  }
 0x783   : > { %1632 = vmatpush3.bf16.msra.mxu1 %v1704_v18 }
 0x784   : > { %v1157_v44 = vpop.f32.mrb[20].mxu1 }
 0x785   : > { %v1621_v45 = vpop.f32.mrb[21].mxu1  ;;  %v1164_v46 = vsel %vm615_vm2, %v1157_v44, -inf }
 0x786   : > { %1165 = vmax.xlane.f32.xlu0 %v1164_v46  ;;  %v1160_v47 = vpop.f32.mrb[22].mxu1  ;;  %v1485_v46 = vld [vmem:[%s2114_s5] ss:$0 sm:$0xff] }
 0x787   : > { %v1622_v48 = vpop.f32.mrb[23].mxu1  ;;  %v1167_v49 = vsel %vm615_vm2, %v1160_v47, -inf }
 0x788   : > { %1168 = vmax.xlane.f32.xlu1 %v1167_v49 }
 0x799   : > { %1187 = vrot.lane.b32.xlu1 %v2017_v10, %s1790_s13 }
 0x813   : > { %v1166_v50 = vpop.xlane.xlu0 %1165 }
 0x814   : > { %v1170_v51 = vsub.f32 %v1157_v44, %v1166_v50  ;;  %v1486_v50 = vld [vmem:[%s2115_s6] ss:$0 sm:$0xff] }
 0x815   : > { %v1169_v52 = vpop.xlane.xlu1 %1168 }
 0x816   : > { %v1172_v53 = vmul.f32 1.442695, %v1170_v51  ;;  %v1171_v54 = vsub.f32 %v1160_v47, %v1169_v52 }
 0x818   : > { %1730 = vpow2.f32 %v1172_v53  ;;  %v1174_v55 = vmul.f32 1.442695, %v1171_v54 }
 0x819   : > { %v1188_v56 = vpop.permute.xlu1 %1187 }
 0x81a   : > { %1732 = vpow2.f32 %v1174_v55  ;;  %1624 = vmatpush3.bf16.msra.mxu0 %v1188_v56 }
 0x822   : > { %v1731_v57 = vpop.eup %1730 }
 0x823   : > { %v1176_v58 = vsel %vm615_vm2, %v1731_v57, 0.0 }
 0x824   : > { %v1733_v59 = vpop.eup %1732  ;;  %1177 = vadd.xlane.f32.xlu0 %v1176_v58 }
 0x825   : > { %v1179_v60 = vsel %vm615_vm2, %v1733_v59, 0.0 }
 0x828   : > { %1180 = vadd.xlane.f32.xlu0 %v1179_v60 }
 0x854   : > { %v1104_v10 = vpop.f32.mrb[20].mxu0 }
 0x855   : > { %v1111_v62 = vadd.f32 %v1104_v10, %v2051_v2  ;;  %v1615_v63 = vpop.f32.mrb[21].mxu0 }
 0x856   : > { %v1107_v0 = vpop.f32.mrb[22].mxu0 }
 0x857   : > { %v1112_v1 = vadd.f32 %v1107_v0, %v2053_v5  ;;  %v1616_v3 = vpop.f32.mrb[23].mxu0  ;;  %v1297_v5 = vunpack.c.l.bf16 %v1934_v17 }
 0x8b1   : > { %v1178_v4 = vpop.xlane.xlu0 %1177 }
 0x8b2   : > { %1734 = vrcp.f32 %v1178_v4 }
 0x8b5   : > { %v1181_v6 = vpop.xlane.xlu0 %1180 }
 0x8b6   : > { %1736 = vrcp.f32 %v1181_v6 }
 0x8bc   : > { %v1735_v7 = vpop.eup %1734 }
 0x8bd   : > { %v1184_v9 = vmul.f32 %v1735_v7, %v1731_v57 }
 0x8c0   : > { %v1737_v8 = vpop.eup %1736 }
 0x8c1   : > { %v1185_v11 = vmul.f32 %v1737_v8, %v1733_v59 }
 0x8c3   : > { %v1186_v12 = vpack.c.bf16 %v1185_v11, %v1184_v9 }
 0x8c5   : > { %1626 = vmatmul.mubr.msk.bf16.vlgmr.msra.gmra.mrb[24].mxu0 %vm615_vm2, %v1186_v12 }
 0x998   : > { %v1227_v13 = vpop.f32.mrb[24].mxu0 }
 0x999   : > { %v1627_v2 = vpop.f32.mrb[25].mxu0 }
 0x99a   : > { %v1230_v14 = vpop.f32.mrb[26].mxu0 }
 0x99b   : > { %v1234_v15 = vpack.c.bf16 %v1230_v14, %v1227_v13  ;;  %v1628_v16 = vpop.f32.mrb[27].mxu0 }
 0x99d   : > { %1634 = vmatmul.mubr.msk.bf16.vlgmr.msra.gmra.mrb[24].mxu1 %vm567_vm1, %v1234_v15 }
 0xa70   : > { %v1288_v19 = vpop.f32.mrb[24].mxu1 }
 0xa71   : > { %v1295_v20 = vadd.f32 %v1288_v19, %v1111_v62  ;;  %v1635_v21 = vpop.f32.mrb[25].mxu1 }
 0xa72   : > { %v1291_v23 = vpop.f32.mrb[26].mxu1 }
 0xa73   : > { %v1299_v25 = vadd.f32 %v1297_v5, %v1295_v20  ;;  %v1296_v26 = vadd.f32 %v1291_v23, %v1112_v1  ;;  %v1636_v27 = vpop.f32.mrb[27].mxu1 }
 0xa75   : > { %v1300_v28 = vadd.f32 %v1298_v22, %v1296_v26  ;;  %v1308_v29 = vadd.f32 %v1484_v24, %v1299_v25 }
 0xa77   : > { %1310 = vadd.xlane.f32.xlu0 %v1308_v29  ;;  %v1309_v30 = vadd.f32 %v1484_v24, %v1300_v28 }
 0xa7b   : > { %1312 = vadd.xlane.f32.xlu0 %v1309_v30 }
 0xb04   : > { %v1311_v31 = vpop.xlane.xlu0 %1310 }
 0xb05   : > { %v1315_v32 = vmul.f32 0.0078125, %v1311_v31 }
 0xb07   : > { %v1317_v33 = vsub.f32 %v1308_v29, %v1315_v32 }
 0xb08   : > { %v1313_v36 = vpop.xlane.xlu0 %1312 }
 0xb09   : > { %v1316_v37 = vmul.f32 0.0078125, %v1313_v36  ;;  %v1319_v38 = vmul.f32 %v1317_v33, %v1317_v33 }
 0xb0b   : > { %v1318_v17 = vsub.f32 %v1309_v30, %v1316_v37  ;;  %1321 = vadd.xlane.f32.xlu0 %v1319_v38 }
 0xb0d   : > { %v1320_v34 = vmul.f32 %v1318_v17, %v1318_v17 }
 0xb0f   : > { %1323 = vadd.xlane.f32.xlu0 %v1320_v34 }
 0xb98   : > { %v1322_v35 = vpop.xlane.xlu0 %1321 }
 0xb99   : > { %v1325_v39 = vmul.f32 0.0078125, %v1322_v35 }
 0xb9b   : > { %v1327_v40 = vadd.f32 1e-05, %v1325_v39 }
 0xb9c   : > { %v1324_v41 = vpop.xlane.xlu0 %1323 }
 0xb9d   : > { %1738 = vrsqrt.f32 %v1327_v40  ;;  %v1326_v42 = vmul.f32 0.0078125, %v1324_v41 }
 0xb9f   : > { %v1328_v43 = vadd.f32 1e-05, %v1326_v42 }
 0xba1   : > { %1740 = vrsqrt.f32 %v1328_v43 }
 0xba7   : > { %v1739_v44 = vpop.eup %1738 }
 0xba8   : > { %v1331_v45 = vmul.f32 %v1739_v44, %v1317_v33 }
 0xbaa   : > { %v1340_v48 = vmul.f32 %v1485_v46, %v1331_v45 }
 0xbab   : > { %v1741_v47 = vpop.eup %1740 }
 0xbac   : > { %v1332_v49 = vmul.f32 %v1741_v47, %v1318_v17  ;;  %v1349_v52 = vadd.f32 %v1486_v50, %v1340_v48 }
 0xbae   : > { %v1341_v51 = vmul.f32 %v1485_v46, %v1332_v49 }
 0xbb0   : > { %v1350_v53 = vadd.f32 %v1486_v50, %v1341_v51 }
 0xbb2   : > { %v1498_v54 = vpack.c.bf16 %v1350_v53, %v1349_v52 }
 0xbb4   : > { %1499 = vst [vmem:[%s293_s23] sm:$0xff] %v1498_v54  }
 0xbb5 PF: > { %s18_s24 = sadd.s32 1, %s1780_s24  }
 0xbb6   : > { %p15_p3 = scmp.ge.s32.totalorder %s18_s24, 4  }
 0xbb8   :  { %17 = sbr.rel (!%p15_p3) target bundleno = 1 (0x1), region = 83 }
 0xbbf   :  { %1382 = vsyncpa [#allocation3], 1 }
 0xbc0   :  { %1384 = vsyncpa [#allocation3 + $0x1], 1 }

// kernel: nemesis_vae_forward.9
= control target key start
LH: loop header
LB: loop body
LE: loop exit
PB: predicated region body
PF: predicated region fallthrough
CT: control target
= control target key end

     0   :  { %s1754_s24 = smov 0   ;;  %s2017_s0 = inlined_call_operand.vmem [shape: bf16[2,16,128], index: 0, kind: input, shape index: {}]   ;;  %s2018_s1 = inlined_call_operand.vmem [shape: bf16[128,384], index: 1, kind: input, shape index: {}]   ;;  %s2019_s2 = inlined_call_operand.vmem [shape: f32[1,384], index: 2, kind: input, shape index: {}]   ;;  %s2020_s3 = inlined_call_operand.vmem [shape: bf16[128,128], index: 3, kind: input, shape index: {}]   ;;  %s2021_s4 = inlined_call_operand.vmem [shape: f32[1,128], index: 4, kind: input, shape index: {}]   ;;  %s2022_s5 = inlined_call_operand.vmem [shape: f32[1,128], index: 5, kind: input, shape index: {}]   ;;  %s2023_s6 = inlined_call_operand.vmem [shape: f32[1,128], index: 6, kind: input, shape index: {}]   ;;  %s2024_s7 = inlined_call_operand.vmem [shape: bf16[2,16,128], index: 7, kind: output, shape index: {}]  }
   0x1 LB: > { %s1401_s25 = sadd.s32 4294967295, %s1706_s24   ;;  %p1405_p0 = scmp.ge.s32.totalorder %s1706_s24, 1  ;;  %s1706_s24 = sphi %s1754_s24, %s17_s24  }
   0x2   : > { %p237_p1 = scmp.lt.s32.totalorder %s1706_s24, 3 }
   0x4   : > { %p238_p2 = pnand %p1405_p0, %p237_p1 }
   0x5   : > { %v1622_v0 = vld [vmem:[%s2018_s1 + $0x4] ss:$12 sps:$4 sm:$0xff] (!%p238_p2)   ;;  %v1624_v1 = vld [vmem:[%s2018_s1] ss:$12 sps:$4 sm:$0xff] (!%p238_p2)   ;;  %v1708_v2 = vmov (!%p238_p2), 0   ;;  %p269_p3 = scmp.lt.s32.totalorder (!%p238_p2), %s1401_s25, 1  ;;  %v316_v19 = vlaneseq (!%p238_p2) }
   0x6   : > { %241 = sbr.rel (%p238_p2) target bundleno = 2960 (0xb90), region = 48  ;;  %497 = vmatprep.mubr.bf16.mxu0 (!%p238_p2), %v1708_v2  ;;  %465 = vmatprep.subr.bf16.mxu0 (!%p238_p2), %v1622_v0  ;;  %v1625_v3 = vld [vmem:[%s2018_s1 + $0x1c] ss:$12 sps:$4 sm:$0xff] (!%p238_p2)   ;;  %v1627_v4 = vld [vmem:[%s2018_s1 + $0x18] ss:$12 sps:$4 sm:$0xff] (!%p238_p2)   ;;  %v1709_v18 = vmov (!%p238_p2), 0.0  }
   0x7   : > { %466 = vmatpush1.bf16.msra.mxu0 (!%p238_p2), %v1624_v1  ;;  %v1628_v5 = vld [vmem:[%s2018_s1 + $0x34] ss:$12 sps:$4 sm:$0xff] (!%p238_p2)   ;;  %v1630_v6 = vld [vmem:[%s2018_s1 + $0x30] ss:$12 sps:$4 sm:$0xff] (!%p238_p2)   ;;  %v1631_v7 = vld [vmem:[%s2018_s1 + $0x4c] ss:$12 sps:$4 sm:$0xff] (!%p238_p2)   ;;  %1508 = vmatprep.subr.bf16.mxu1 (!%p238_p2), %v1709_v18 }
   0x8   : > { %467 = vmatprep.subr.bf16.mxu0 (!%p238_p2), %v1625_v3  ;;  %v1633_v8 = vld [vmem:[%s2018_s1 + $0x48] ss:$12 sps:$4 sm:$0xff] (!%p238_p2)   ;;  %v1634_v9 = vld [vmem:[%s2018_s1 + $0x64] ss:$12 sps:$4 sm:$0xff] (!%p238_p2)   ;;  %v1636_v10 = vld [vmem:[%s2018_s1 + $0x60] ss:$12 sps:$4 sm:$0xff] (!%p238_p2)  }
   0x9   : > { %v1637_v11 = vld [vmem:[%s2018_s1 + $0x7c] ss:$12 sps:$4 sm:$0xff] (!%p238_p2)   ;;  %v1639_v12 = vld [vmem:[%s2018_s1 + $0x78] ss:$12 sps:$4 sm:$0xff] (!%p238_p2)   ;;  %v1640_v13 = vld [vmem:[%s2018_s1 + $0x94] ss:$12 sps:$4 sm:$0xff] (!%p238_p2)  }
   0xa   : > { %v1642_v14 = vld [vmem:[%s2018_s1 + $0x90] ss:$12 sps:$4 sm:$0xff] (!%p238_p2)   ;;  %v1643_v15 = vld [vmem:[%s2018_s1 + $0xac] ss:$12 sps:$4 sm:$0xff] (!%p238_p2)   ;;  %v1645_v16 = vld [vmem:[%s2018_s1 + $0xa8] ss:$12 sps:$4 sm:$0xff] (!%p238_p2)  }
   0xb   : > { %468 = vmatpush1.bf16.msra.mxu0 (!%p238_p2), %v1627_v4  ;;  %vm1710_vm0 = vmmov (!%p238_p2), 0   ;;  %v1827_v20 = vshrl.u32 (!%p238_p2), %v316_v19, 7  ;;  %v1833_v22 = vld [vmem:[%s2019_s2] sm:$0x7] (!%p238_p2)  ;;  %vm552_vm1 = vcmask (!%p238_p2), 261120   ;;  %s1711_s21 = smov (!%p238_p2), 96  }
   0xc   : > { %469 = vmatprep.subr.bf16.mxu0 (!%p238_p2), %v1628_v5  ;;  %1524 = vmatprep.mubr.msk.bf16.mxu1 (!%p238_p2), %vm1710_vm0, %v1709_v18  ;;  %v1647_v37 = vld [vmem:[%s2018_s1 + $0x8] ss:$12 sps:$4 sm:$0xff] (!%p238_p2)   ;;  %v1648_v38 = vld [vmem:[%s2018_s1 + $0x20] ss:$12 sps:$4 sm:$0xff] (!%p238_p2)   ;;  %v1649_v39 = vld [vmem:[%s2018_s1 + $0x38] ss:$12 sps:$4 sm:$0xff] (!%p238_p2)  }
   0xd   : > { %s2026_s25 = smov (!%p269_p3, %s1401_s25), 1  ;;  %v318_v21 = vsub.s32 0, %v1827_v20  ;;  %v322_v23 = vsub.s32 1, %v1827_v20  ;;  %1509 = vmatpush3.bf16.msra.mxu1 %v1647_v37  ;;  %v1650_v40 = vld [vmem:[%s2018_s1 + $0x50] ss:$12 sps:$4 sm:$0xff]   ;;  %vm600_vm2 = vcmask 130048  }
   0xe   : > { %s1462_s19 = sshll.u32 %s2026_s25, 3  ;;  %1510 = vmatprep.subr.bf16.mxu1 %v1709_v18  ;;  %v1651_v41 = vld [vmem:[%s2018_s1 + $0x68] ss:$12 sps:$4 sm:$0xff]   ;;  %v1652_v44 = vld [vmem:[%s2018_s1 + $0x80] ss:$12 sps:$4 sm:$0xff]   ;;  %s1712_s17 = smov 64  }
   0xf   : > { %470 = vmatpush1.bf16.msra.mxu0 %v1630_v6  ;;  %s273_s15 = scalar_lea.vmem %s2017_s0, %s1462_s19  ;;  %v319_v24 = vrot.slane %v1833_v22, %v318_v21  ;;  %v323_v26 = vrot.slane %v1833_v22, %v322_v23  ;;  %v1653_v45 = vld [vmem:[%s2018_s1 + $0x98] ss:$12 sps:$4 sm:$0xff]   ;;  %v1654_v47 = vld [vmem:[%s2018_s1 + $0xb0] ss:$12 sps:$4 sm:$0xff]   ;;  %v326_v2 = vsub.s32 2, %v1827_v20  ;;  %s1713_s29 = smov 32  }
  0x10   : > { %471 = vmatprep.subr.bf16.mxu0 %v1631_v7  ;;  %v1818_v17 = vld [vmem:[%s273_s15] sm:$0xff]   ;;  %v1658_v37 = vld [vmem:[%s2020_s3 + $0x18] sm:$0xff]   ;;  %s278_s26 = scalar_lea.vmem %s2024_s7, %s1462_s19 }
  0x11   : > { %1511 = vmatpush3.bf16.msra.mxu1 %v1648_v38  ;;  %v327_v5 = vrot.slane %v1833_v22, %v326_v2 }
  0x12   : > { %1512 = vmatprep.subr.bf16.mxu1 %v1709_v18 }
  0x13   : > { %472 = vmatpush1.bf16.msra.mxu0 %v1633_v8 }
  0x14   : > { %473 = vmatprep.subr.bf16.mxu0 %v1634_v9 }
  0x15   : > { %1513 = vmatpush3.bf16.msra.mxu1 %v1649_v39 }
  0x16   : > { %1514 = vmatprep.subr.bf16.mxu1 %v1709_v18 }
  0x17   : > { %474 = vmatpush1.bf16.msra.mxu0 %v1636_v10 }
  0x18   : > { %475 = vmatprep.subr.bf16.mxu0 %v1637_v11 }
  0x19   : > { %1515 = vmatpush3.bf16.msra.mxu1 %v1650_v40 }
  0x1a   : > { %1516 = vmatprep.subr.bf16.mxu1 %v1709_v18 }
  0x1b   : > { %476 = vmatpush1.bf16.msra.mxu0 %v1639_v12 }
  0x1c   : > { %477 = vmatprep.subr.bf16.mxu0 %v1640_v13 }
  0x1d   : > { %1517 = vmatpush3.bf16.msra.mxu1 %v1651_v41 }
  0x1e   : > { %1518 = vmatprep.subr.bf16.mxu1 %v1709_v18 }
  0x1f   : > { %478 = vmatpush1.bf16.msra.mxu0 %v1642_v14 }
  0x20   : > { %479 = vmatprep.subr.bf16.mxu0 %v1643_v15 }
  0x21   : > { %1519 = vmatpush3.bf16.msra.mxu1 %v1652_v44 }
  0x22   : > { %1520 = vmatprep.subr.bf16.mxu1 %v1709_v18 }
  0x23   : > { %480 = vmatpush1.bf16.msra.mxu0 %v1645_v16 }
  0x24   : > { %1528 = vmatprep.subr.bf16.mxu0 %v1709_v18 }
  0x25   : > { %1521 = vmatpush3.bf16.msra.mxu1 %v1653_v45  ;;  %v1655_v45 = vld [vmem:[%s2020_s3] sm:$0xff]  }
  0x26   : > { %498 = vmatmul.mubr.bf16.vlgmr.msra.gmra.mrb[0].mxu0 %v1818_v17  ;;  %1522 = vmatprep.subr.bf16.mxu1 %v1709_v18 }
  0x27   : > { %1530 = vmatprep.mubr.msk.bf16.mxu0 %vm1710_vm0, %v1709_v18 }
  0x29   : > { %1523 = vmatpush3.bf16.msra.mxu1 %v1654_v47  ;;  %v1656_v47 = vld [vmem:[%s2020_s3 + $0x8] sm:$0xff]  }
  0x2a   : > { %1534 = vmatprep.subr.bf16.mxu1 %v1709_v18 }
  0x2c   : > { %1525 = vmatmul.mubr.bf16.vlgmr.msra.gmra.mrb[0].mxu1 %v1818_v17 }
  0x2d   : > { %1536 = vmatprep.mubr.msk.bf16.mxu1 %vm1710_vm0, %v1709_v18 }
  0xf9   : > { %v499_v25 = vpop.f32.mrb[0].mxu0 }
  0xfa   : > { %v501_v27 = vpop.f32.mrb[1].mxu0  ;;  %v500_v29 = vadd.f32 %v499_v25, %v319_v24 }
  0xfb   : > { %v503_v28 = vpop.f32.mrb[2].mxu0  ;;  %v502_v32 = vadd.f32 %v501_v27, %v323_v26 }
  0xfc   : > { %v504_v30 = vadd.f32 %v503_v28, %v319_v24  ;;  %v505_v31 = vpop.f32.mrb[3].mxu0 }
  0xfd   : > { %v506_v33 = vadd.f32 %v505_v31, %v323_v26 }
  0xfe   : > { %v1838_v34 = vpack.c.bf16 %v504_v30, %v500_v29 }
  0xff   : > { %v1840_v35 = vpack.c.bf16 %v506_v33, %v502_v32  ;;  %v542_v3 = vpop.f32.mrb[0].mxu1 }
 0x100   : > { %v1526_v4 = vpop.f32.mrb[1].mxu1  ;;  %v543_v8 = vadd.f32 %v542_v3, %v327_v5 }
 0x101   : > { %677 = vrot.lane.b32.xlu0 %v1840_v35, %s1711_s21  ;;  %v557_v36 = vsel %vm552_vm1, %v1840_v35, 0  ;;  %v545_v6 = vpop.f32.mrb[2].mxu1 }
 0x102   : > { %1529 = vmatpush3.bf16.xpose.msra.mxu0 %v557_v36  ;;  %v1527_v7 = vpop.f32.mrb[3].mxu1  ;;  %v546_v9 = vadd.f32 %v545_v6, %v327_v5  ;;  %v1657_v36 = vld [vmem:[%s2020_s3 + $0x10] sm:$0xff]  }
 0x103   : > { %1540 = vmatprep.subr.bf16.mxu0 %v1709_v18 }
 0x104   : > { %v1901_v10 = vpack.c.bf16 %v546_v9, %v543_v8 }
 0x105   : > { %674 = vrot.lane.b32.xlu0 %v1838_v34, %s1711_s21 }
 0x106   : > { %1535 = vmatpush3.bf16.msra.mxu1 %v1901_v10 }
 0x107   : > { %1546 = vmatprep.subr.bf16.mxu1 %v1709_v18 }
 0x109   : > { %1531 = vmatmul.mubr.msk.bf16.vlgmr.msra.gmra.mrb[4].mxu0 %vm552_vm1, %v1838_v34 }
 0x10a   : > { %1542 = vmatprep.mubr.msk.bf16.mxu0 %vm1710_vm0, %v1709_v18 }
 0x173   : > { %v678_v42 = vpop.permute.xlu0 %677 }
 0x174   : > { %v683_v43 = vsel %vm552_vm1, %v678_v42, 0 }
 0x175   : > { %1541 = vmatpush3.bf16.xpose.msra.mxu0 %v683_v43 }
 0x176   : > { %1552 = vmatprep.subr.bf16.mxu0 %v1709_v18 }
 0x177   : > { %v675_v46 = vpop.permute.xlu0 %674 }
 0x17c   : > { %1543 = vmatmul.mubr.msk.bf16.vlgmr.msra.gmra.mrb[8].mxu0 %vm552_vm1, %v675_v46 }
 0x17d   : > { %1556 = vmatprep.mubr.msk.bf16.mxu0 %vm1710_vm0, %v1709_v18  ;;  %1553 = vmatpush3.bf16.msra.mxu0 %v1657_v36 }
 0x17e   : > { %1554 = vmatprep.subr.bf16.mxu0 %v1709_v18 }
 0x181   : > { %1555 = vmatpush3.bf16.msra.mxu0 %v1658_v37 }
 0x182   : > { %1568 = vmatprep.subr.bf16.mxu0 %v1709_v18 }
 0x1dc   : > { %v593_v48 = vpop.f32.mrb[4].mxu0 }
 0x1dd   : > { %v1532_v49 = vpop.f32.mrb[5].mxu0  ;;  %v601_v50 = vsel %vm600_vm2, %v593_v48, -inf }
 0x1de   : > { %602 = vmax.xlane.f32.xlu1 %v601_v50  ;;  %v596_v51 = vpop.f32.mrb[6].mxu0 }
 0x1df   : > { %v1533_v52 = vpop.f32.mrb[7].mxu0  ;;  %v604_v53 = vsel %vm600_vm2, %v596_v51, -inf }
 0x1e2   : > { %605 = vmax.xlane.f32.xlu1 %v604_v53 }
 0x24f   : > { %v719_v54 = vpop.f32.mrb[8].mxu0 }
 0x250   : > { %v1544_v55 = vpop.f32.mrb[9].mxu0  ;;  %v726_v56 = vsel %vm600_vm2, %v719_v54, -inf }
 0x251   : > { %727 = vmax.xlane.f32.xlu0 %v726_v56  ;;  %v722_v57 = vpop.f32.mrb[10].mxu0 }
 0x252   : > { %v1545_v58 = vpop.f32.mrb[11].mxu0  ;;  %v729_v59 = vsel %vm600_vm2, %v722_v57, -inf }
 0x253   : > { %730 = vmax.xlane.f32.xlu1 %v729_v59 }
 0x267   : > { %916 = vrot.lane.b32.xlu0 %v1840_v35, %s1712_s17 }
 0x26b   : > { %v603_v60 = vpop.xlane.xlu1 %602 }
 0x26c   : > { %v607_v61 = vsub.f32 %v593_v48, %v603_v60 }
 0x26e   : > { %v609_v62 = vmul.f32 1.442695, %v607_v61 }
 0x26f   : > { %v606_v63 = vpop.xlane.xlu1 %605 }
 0x270   : > { %1664 = vpow2.f32 %v609_v62  ;;  %v608_v0 = vsub.f32 %v596_v51, %v606_v63 }
 0x272   : > { %v611_v1 = vmul.f32 1.442695, %v608_v0 }
 0x274   : > { %1666 = vpow2.f32 %v611_v1 }
 0x27a   : > { %v1665_v11 = vpop.eup %1664 }
 0x27b   : > { %v613_v12 = vsel %vm600_vm2, %v1665_v11, 0.0 }
 0x27c   : > { %614 = vadd.xlane.f32.xlu1 %v613_v12 }
 0x27e   : > { %v1667_v13 = vpop.eup %1666 }
 0x27f   : > { %v616_v14 = vsel %vm600_vm2, %v1667_v13, 0.0 }
 0x280   : > { %617 = vadd.xlane.f32.xlu1 %v616_v14 }
 0x2de   : > { %v728_v15 = vpop.xlane.xlu0 %727 }
 0x2df   : > { %v732_v16 = vsub.f32 %v719_v54, %v728_v15 }
 0x2e0   : > { %v731_v19 = vpop.xlane.xlu1 %730 }
 0x2e1   : > { %v734_v20 = vmul.f32 1.442695, %v732_v16  ;;  %v733_v21 = vsub.f32 %v722_v57, %v731_v19 }
 0x2e2   : > { %v917_v55 = vpop.permute.xlu0 %916 }
 0x2e3   : > { %1668 = vpow2.f32 %v734_v20  ;;  %v736_v22 = vmul.f32 1.442695, %v733_v21  ;;  %v922_v59 = vsel %vm552_vm1, %v917_v55, 0 }
 0x2e5   : > { %1670 = vpow2.f32 %v736_v22 }
 0x2ed   : > { %v1669_v23 = vpop.eup %1668 }
 0x2ee   : > { %v738_v24 = vsel %vm600_vm2, %v1669_v23, 0.0 }
 0x2ef   : > { %v1671_v25 = vpop.eup %1670  ;;  %739 = vadd.xlane.f32.xlu1 %v738_v24 }
 0x2f0   : > { %v741_v26 = vsel %vm600_vm2, %v1671_v25, 0.0 }
 0x2f3   : > { %742 = vadd.xlane.f32.xlu1 %v741_v26 }
 0x304   : > { %750 = vrot.lane.b32.xlu1 %v1901_v10, %s1711_s21 }
 0x308   : > { %914 = vrot.lane.b32.xlu1 %v1838_v34, %s1712_s17 }
 0x309   : > { %v615_v27 = vpop.xlane.xlu1 %614 }
 0x30a   : > { %1672 = vrcp.f32 %v615_v27  ;;  %v1659_v27 = vld [vmem:[%s2020_s3 + $0x20] sm:$0xff]  }
 0x30d   : > { %v618_v28 = vpop.xlane.xlu1 %617 }
 0x30e   : > { %1674 = vrcp.f32 %v618_v28 }
 0x314   : > { %v1673_v29 = vpop.eup %1672 }
 0x315   : > { %v621_v31 = vmul.f32 %v1673_v29, %v1665_v11 }
 0x318   : > { %v1675_v30 = vpop.eup %1674 }
 0x319   : > { %v622_v32 = vmul.f32 %v1675_v30, %v1667_v13 }
 0x31b   : > { %v623_v33 = vpack.c.bf16 %v622_v32, %v621_v31 }
 0x31d   : > { %1537 = vmatmul.mubr.msk.bf16.vlgmr.msra.gmra.mrb[4].mxu1 %vm600_vm2, %v623_v33 }
 0x31e   : > { %1548 = vmatprep.mubr.msk.bf16.mxu1 %vm1710_vm0, %v1709_v18 }
 0x37c   : > { %v740_v38 = vpop.xlane.xlu1 %739 }
 0x37d   : > { %1676 = vrcp.f32 %v740_v38  ;;  %v1660_v38 = vld [vmem:[%s2020_s3 + $0x28] sm:$0xff]  }
 0x380   : > { %v743_v39 = vpop.xlane.xlu1 %742 }
 0x381   : > { %1678 = vrcp.f32 %v743_v39 }
 0x384   : > { %v751_v40 = vpop.permute.xlu1 %750 }
 0x385   : > { %1547 = vmatpush3.bf16.msra.mxu1 %v751_v40 }
 0x386   : > { %1560 = vmatprep.subr.bf16.mxu1 %v1709_v18 }
 0x387   : > { %v1677_v41 = vpop.eup %1676 }
 0x388   : > { %v746_v43 = vmul.f32 %v1677_v41, %v1669_v23  ;;  %v915_v60 = vpop.permute.xlu1 %914 }
 0x38b   : > { %v1679_v42 = vpop.eup %1678 }
 0x38c   : > { %v747_v44 = vmul.f32 %v1679_v42, %v1671_v25 }
 0x38e   : > { %v748_v46 = vpack.c.bf16 %v747_v44, %v746_v43 }
 0x390   : > { %1549 = vmatmul.mubr.msk.bf16.vlgmr.msra.gmra.mrb[8].mxu1 %vm600_vm2, %v748_v46 }
 0x391   : > { %1561 = vmatpush3.bf16.msra.mxu1 %v1655_v45  ;;  %1564 = vmatprep.mubr.msk.bf16.mxu1 %vm1710_vm0, %v1709_v18 }
 0x392   : > { %1562 = vmatprep.subr.bf16.mxu1 %v1709_v18 }
 0x395   : > { %1563 = vmatpush3.bf16.msra.mxu1 %v1656_v47 }
 0x396   : > { %1574 = vmatprep.subr.bf16.mxu1 %v1709_v18 }
 0x3f0   : > { %v661_v48 = vpop.f32.mrb[4].mxu1 }
 0x3f1   : > { %v1538_v49 = vpop.f32.mrb[5].mxu1 }
 0x3f2   : > { %v664_v50 = vpop.f32.mrb[6].mxu1 }
 0x3f3   : > { %v668_v51 = vpack.c.bf16 %v664_v50, %v661_v48  ;;  %v1539_v52 = vpop.f32.mrb[7].mxu1 }
 0x3f5   : > { %1565 = vmatmul.mubr.msk.bf16.vlgmr.msra.gmra.mrb[12].mxu1 %vm552_vm1, %v668_v51 }
 0x3f6   : > { %1576 = vmatprep.mubr.msk.bf16.mxu1 %vm1710_vm0, %v1709_v18 }
 0x463   : > { %v790_v53 = vpop.f32.mrb[8].mxu1 }
 0x464   : > { %v1550_v54 = vpop.f32.mrb[9].mxu1 }
 0x465   : > { %v793_v56 = vpop.f32.mrb[10].mxu1 }
 0x466   : > { %v797_v57 = vpack.c.bf16 %v793_v56, %v790_v53  ;;  %v1551_v58 = vpop.f32.mrb[11].mxu1 }
 0x468   : > { %1557 = vmatmul.mubr.msk.bf16.vlgmr.msra.gmra.mrb[12].mxu0 %vm552_vm1, %v797_v57 }
 0x469   : > { %1569 = vmatpush3.bf16.xpose.msra.mxu0 %v922_v59  ;;  %1570 = vmatprep.mubr.msk.bf16.mxu0 %vm1710_vm0, %v1709_v18 }
 0x46a   : > { %1580 = vmatprep.subr.bf16.mxu0 %v1709_v18 }
 0x470   : > { %1571 = vmatmul.mubr.msk.bf16.vlgmr.msra.gmra.mrb[16].mxu0 %vm552_vm1, %v915_v60 }
 0x471   : > { %1584 = vmatprep.mubr.msk.bf16.mxu0 %vm1710_vm0, %v1709_v18  ;;  %1581 = vmatpush3.bf16.msra.mxu0 %v1659_v27 }
 0x472   : > { %1582 = vmatprep.subr.bf16.mxu0 %v1709_v18 }
 0x475   : > { %1583 = vmatpush3.bf16.msra.mxu0 %v1660_v38 }
 0x476   : > { %1594 = vmatprep.subr.bf16.mxu0 %v1709_v18 }
 0x4c8   : > { %v907_v61 = vpop.f32.mrb[12].mxu1 }
 0x4c9   : > { %v1566_v62 = vpop.f32.mrb[13].mxu1 }
 0x4ca   : > { %v910_v63 = vpop.f32.mrb[14].mxu1 }
 0x4cb   : > { %v1567_v0 = vpop.f32.mrb[15].mxu1 }
 0x53b   : > { %v851_v1 = vpop.f32.mrb[12].mxu0 }
 0x53c   : > { %v1947_v2 = vadd.f32 %v907_v61, %v851_v1  ;;  %v1558_v3 = vpop.f32.mrb[13].mxu0 }
 0x53d   : > { %v854_v4 = vpop.f32.mrb[14].mxu0 }
 0x53e   : > { %v1949_v5 = vadd.f32 %v910_v63, %v854_v4  ;;  %v1559_v6 = vpop.f32.mrb[15].mxu0 }
 0x543   : > { %v958_v7 = vpop.f32.mrb[16].mxu0 }
 0x544   : > { %v1572_v8 = vpop.f32.mrb[17].mxu0  ;;  %v965_v9 = vsel %vm600_vm2, %v958_v7, -inf }
 0x545   : > { %966 = vmax.xlane.f32.xlu1 %v965_v9  ;;  %v961_v11 = vpop.f32.mrb[18].mxu0 }
 0x546   : > { %v1573_v12 = vpop.f32.mrb[19].mxu0  ;;  %v968_v13 = vsel %vm600_vm2, %v961_v11, -inf }
 0x547   : > { %969 = vmax.xlane.f32.xlu0 %v968_v13 }
 0x55d   : > { %988 = vrot.lane.b32.xlu0 %v1901_v10, %s1712_s17 }
 0x5d2   : > { %v967_v14 = vpop.xlane.xlu1 %966 }
 0x5d3   : > { %v971_v15 = vsub.f32 %v958_v7, %v967_v14 }
 0x5d4   : > { %v970_v16 = vpop.xlane.xlu0 %969 }
 0x5d5   : > { %v973_v19 = vmul.f32 1.442695, %v971_v15  ;;  %v972_v20 = vsub.f32 %v961_v11, %v970_v16  ;;  %v1282_v16 = vunpack.c.l.bf16 %v1818_v17 }
 0x5d7   : > { %1680 = vpow2.f32 %v973_v19  ;;  %v975_v21 = vmul.f32 1.442695, %v972_v20 }
 0x5d8   : > { %v989_v22 = vpop.permute.xlu0 %988 }
 0x5d9   : > { %1682 = vpow2.f32 %v975_v21  ;;  %1575 = vmatpush3.bf16.msra.mxu1 %v989_v22  ;;  %v1283_v22 = vunpack.c.h.bf16 %v1818_v17 }
 0x5da   : > { %1588 = vmatprep.subr.bf16.mxu1 %v1709_v18 }
 0x5e1   : > { %v1681_v23 = vpop.eup %1680 }
 0x5e2   : > { %v977_v24 = vsel %vm600_vm2, %v1681_v23, 0.0 }
 0x5e3   : > { %v1683_v25 = vpop.eup %1682  ;;  %978 = vadd.xlane.f32.xlu1 %v977_v24  ;;  %v1455_v24 = vld [vmem:[%s2021_s4] ss:$0 sm:$0xff] }
 0x5e4   : > { %v980_v26 = vsel %vm600_vm2, %v1683_v25, 0.0 }
 0x5e7   : > { %981 = vadd.xlane.f32.xlu1 %v980_v26 }
 0x5f8   : > { %1100 = vrot.lane.b32.xlu1 %v1840_v35, %s1713_s29 }
 0x5fc   : > { %1098 = vrot.lane.b32.xlu1 %v1838_v34, %s1713_s29 }
 0x670   : > { %v979_v28 = vpop.xlane.xlu1 %978 }
 0x671   : > { %1684 = vrcp.f32 %v979_v28 }
 0x674   : > { %v982_v29 = vpop.xlane.xlu1 %981 }
 0x675   : > { %1686 = vrcp.f32 %v982_v29 }
 0x678   : > { %v1101_v36 = vpop.permute.xlu1 %1100 }
 0x679   : > { %v1106_v37 = vsel %vm552_vm1, %v1101_v36, 0 }
 0x67b   : > { %v1685_v30 = vpop.eup %1684 }
 0x67c   : > { %v985_v32 = vmul.f32 %v1685_v30, %v1681_v23  ;;  %v1099_v34 = vpop.permute.xlu1 %1098 }
 0x67f   : > { %v1687_v31 = vpop.eup %1686 }
 0x680   : > { %v986_v33 = vmul.f32 %v1687_v31, %v1683_v25 }
 0x682   : > { %v987_v35 = vpack.c.bf16 %v986_v33, %v985_v32 }
 0x684   : > { %1577 = vmatmul.mubr.msk.bf16.vlgmr.msra.gmra.mrb[16].mxu1 %vm600_vm2, %v987_v35 }
 0x685   : > { %1589 = vmatpush3.bf16.xpose.msra.mxu1 %v1106_v37  ;;  %1590 = vmatprep.mubr.msk.bf16.mxu1 %vm1710_vm0, %v1709_v18 }
 0x686   : > { %1600 = vmatprep.subr.bf16.mxu1 %v1709_v18 }
 0x68c   : > { %1591 = vmatmul.mubr.msk.bf16.vlgmr.msra.gmra.mrb[20].mxu1 %vm552_vm1, %v1099_v34 }
 0x68d   : > { %1604 = vmatprep.mubr.msk.bf16.mxu1 %vm1710_vm0, %v1709_v18 }
 0x757   : > { %v1028_v39 = vpop.f32.mrb[16].mxu1 }
 0x758   : > { %v1578_v40 = vpop.f32.mrb[17].mxu1 }
 0x759   : > { %v1031_v41 = vpop.f32.mrb[18].mxu1 }
 0x75a   : > { %v1035_v42 = vpack.c.bf16 %v1031_v41, %v1028_v39  ;;  %v1579_v43 = vpop.f32.mrb[19].mxu1 }
 0x75c   : > { %1585 = vmatmul.mubr.msk.bf16.vlgmr.msra.gmra.mrb[20].mxu0 %vm552_vm1, %v1035_v42 }
 0x75d   : > { %1596 = vmatprep.mubr.msk.bf16.mxu0 %vm1710_vm0, %v1709_v18 }
 0x75f   : > { %v1142_v44 = vpop.f32.mrb[20].mxu1 }
 0x760   : > { %v1592_v45 = vpop.f32.mrb[21].mxu1  ;;  %v1149_v46 = vsel %vm600_vm2, %v1142_v44, -inf }
 0x761   : > { %1150 = vmax.xlane.f32.xlu0 %v1149_v46  ;;  %v1145_v47 = vpop.f32.mrb[22].mxu1  ;;  %v1456_v46 = vld [vmem:[%s2022_s5] ss:$0 sm:$0xff] }
 0x762   : > { %v1593_v48 = vpop.f32.mrb[23].mxu1  ;;  %v1152_v49 = vsel %vm600_vm2, %v1145_v47, -inf }
 0x763   : > { %1153 = vmax.xlane.f32.xlu1 %v1152_v49 }
 0x774   : > { %1172 = vrot.lane.b32.xlu1 %v1901_v10, %s1713_s29  ;;  %v1661_v10 = vld [vmem:[%s2020_s3 + $0x30] sm:$0xff]  }
 0x775   : > { %1601 = vmatpush3.bf16.msra.mxu1 %v1661_v10 }
 0x776   : > { %1602 = vmatprep.subr.bf16.mxu1 %v1709_v18  ;;  %v1662_v18 = vld [vmem:[%s2020_s3 + $0x38] sm:$0xff]  }
 0x779   : > { %1603 = vmatpush3.bf16.msra.mxu1 %v1662_v18 }
 0x7ee   : > { %v1151_v50 = vpop.xlane.xlu0 %1150 }
 0x7ef   : > { %v1155_v51 = vsub.f32 %v1142_v44, %v1151_v50  ;;  %v1457_v50 = vld [vmem:[%s2023_s6] ss:$0 sm:$0xff] }
 0x7f0   : > { %v1154_v52 = vpop.xlane.xlu1 %1153 }
 0x7f1   : > { %v1157_v53 = vmul.f32 1.442695, %v1155_v51  ;;  %v1156_v54 = vsub.f32 %v1145_v47, %v1154_v52 }
 0x7f3   : > { %1688 = vpow2.f32 %v1157_v53  ;;  %v1159_v55 = vmul.f32 1.442695, %v1156_v54 }
 0x7f4   : > { %v1173_v56 = vpop.permute.xlu1 %1172 }
 0x7f5   : > { %1690 = vpow2.f32 %v1159_v55  ;;  %1595 = vmatpush3.bf16.msra.mxu0 %v1173_v56 }
 0x7fd   : > { %v1689_v57 = vpop.eup %1688 }
 0x7fe   : > { %v1161_v58 = vsel %vm600_vm2, %v1689_v57, 0.0 }
 0x7ff   : > { %v1691_v59 = vpop.eup %1690  ;;  %1162 = vadd.xlane.f32.xlu0 %v1161_v58 }
 0x800   : > { %v1164_v60 = vsel %vm600_vm2, %v1691_v59, 0.0 }
 0x803   : > { %1165 = vadd.xlane.f32.xlu0 %v1164_v60 }
 0x82f   : > { %v1089_v61 = vpop.f32.mrb[20].mxu0 }
 0x830   : > { %v1096_v62 = vadd.f32 %v1089_v61, %v1947_v2  ;;  %v1586_v63 = vpop.f32.mrb[21].mxu0 }
 0x831   : > { %v1092_v0 = vpop.f32.mrb[22].mxu0 }
 0x832   : > { %v1097_v1 = vadd.f32 %v1092_v0, %v1949_v5  ;;  %v1587_v3 = vpop.f32.mrb[23].mxu0 }
 0x88c   : > { %v1163_v4 = vpop.xlane.xlu0 %1162 }
 0x88d   : > { %1692 = vrcp.f32 %v1163_v4 }
 0x890   : > { %v1166_v6 = vpop.xlane.xlu0 %1165 }
 0x891   : > { %1694 = vrcp.f32 %v1166_v6 }
 0x897   : > { %v1693_v7 = vpop.eup %1692 }
 0x898   : > { %v1169_v9 = vmul.f32 %v1693_v7, %v1689_v57 }
 0x89b   : > { %v1695_v8 = vpop.eup %1694 }
 0x89c   : > { %v1170_v11 = vmul.f32 %v1695_v8, %v1691_v59 }
 0x89e   : > { %v1171_v12 = vpack.c.bf16 %v1170_v11, %v1169_v9 }
 0x8a0   : > { %1597 = vmatmul.mubr.msk.bf16.vlgmr.msra.gmra.mrb[24].mxu0 %vm600_vm2, %v1171_v12 }
 0x973   : > { %v1212_v2 = vpop.f32.mrb[24].mxu0 }
 0x974   : > { %v1598_v13 = vpop.f32.mrb[25].mxu0 }
 0x975   : > { %v1215_v5 = vpop.f32.mrb[26].mxu0 }
 0x976   : > { %v1219_v14 = vpack.c.bf16 %v1215_v5, %v1212_v2  ;;  %v1599_v15 = vpop.f32.mrb[27].mxu0 }
 0x978   : > { %1605 = vmatmul.mubr.msk.bf16.vlgmr.msra.gmra.mrb[24].mxu1 %vm552_vm1, %v1219_v14 }
 0xa4b   : > { %v1273_v19 = vpop.f32.mrb[24].mxu1 }
 0xa4c   : > { %v1280_v20 = vadd.f32 %v1273_v19, %v1096_v62  ;;  %v1606_v21 = vpop.f32.mrb[25].mxu1 }
 0xa4d   : > { %v1276_v23 = vpop.f32.mrb[26].mxu1 }
 0xa4e   : > { %v1284_v25 = vadd.f32 %v1282_v16, %v1280_v20  ;;  %v1281_v26 = vadd.f32 %v1276_v23, %v1097_v1  ;;  %v1607_v27 = vpop.f32.mrb[27].mxu1 }
 0xa50   : > { %v1285_v28 = vadd.f32 %v1283_v22, %v1281_v26  ;;  %v1293_v29 = vadd.f32 %v1455_v24, %v1284_v25 }
 0xa52   : > { %1295 = vadd.xlane.f32.xlu0 %v1293_v29  ;;  %v1294_v30 = vadd.f32 %v1455_v24, %v1285_v28 }
 0xa56   : > { %1297 = vadd.xlane.f32.xlu0 %v1294_v30 }
 0xadf   : > { %v1296_v31 = vpop.xlane.xlu0 %1295 }
 0xae0   : > { %v1300_v32 = vmul.f32 0.0078125, %v1296_v31 }
 0xae2   : > { %v1302_v33 = vsub.f32 %v1293_v29, %v1300_v32 }
 0xae3   : > { %v1298_v36 = vpop.xlane.xlu0 %1297 }
 0xae4   : > { %v1301_v35 = vmul.f32 0.0078125, %v1298_v36  ;;  %v1304_v37 = vmul.f32 %v1302_v33, %v1302_v33 }
 0xae6   : > { %v1303_v17 = vsub.f32 %v1294_v30, %v1301_v35  ;;  %1306 = vadd.xlane.f32.xlu0 %v1304_v37 }
 0xae8   : > { %v1305_v34 = vmul.f32 %v1303_v17, %v1303_v17 }
 0xaea   : > { %1308 = vadd.xlane.f32.xlu0 %v1305_v34 }
 0xb73   : > { %v1307_v38 = vpop.xlane.xlu0 %1306 }
 0xb74   : > { %v1310_v39 = vmul.f32 0.0078125, %v1307_v38 }
 0xb76   : > { %v1312_v40 = vadd.f32 1e-05, %v1310_v39 }
 0xb77   : > { %v1309_v41 = vpop.xlane.xlu0 %1308 }
 0xb78   : > { %1696 = vrsqrt.f32 %v1312_v40  ;;  %v1311_v42 = vmul.f32 0.0078125, %v1309_v41 }
 0xb7a   : > { %v1313_v43 = vadd.f32 1e-05, %v1311_v42 }
 0xb7c   : > { %1698 = vrsqrt.f32 %v1313_v43 }
 0xb82   : > { %v1697_v44 = vpop.eup %1696 }
 0xb83   : > { %v1316_v45 = vmul.f32 %v1697_v44, %v1302_v33 }
 0xb85   : > { %v1325_v48 = vmul.f32 %v1456_v46, %v1316_v45 }
 0xb86   : > { %v1699_v47 = vpop.eup %1698 }
 0xb87   : > { %v1317_v49 = vmul.f32 %v1699_v47, %v1303_v17  ;;  %v1334_v52 = vadd.f32 %v1457_v50, %v1325_v48 }
 0xb89   : > { %v1326_v51 = vmul.f32 %v1456_v46, %v1317_v49 }
 0xb8b   : > { %v1335_v53 = vadd.f32 %v1457_v50, %v1326_v51 }
 0xb8d   : > { %v1469_v54 = vpack.c.bf16 %v1335_v53, %v1334_v52 }
 0xb8f   : > { %1470 = vst [vmem:[%s278_s26] sm:$0xff] %v1469_v54  }
 0xb90 PF: > { %s17_s24 = sadd.s32 1, %s1706_s24  }
 0xb91   : > { %p14_p4 = scmp.ge.s32.totalorder %s17_s24, 4  }
 0xb93   :  { %16 = sbr.rel (!%p14_p4) target bundleno = 1 (0x1), region = 78 }

// kernel: nemesis_vae_forward.11
= control target key start
LH: loop header
LB: loop body
LE: loop exit
PB: predicated region body
PF: predicated region fallthrough
CT: control target
= control target key end

     0   :  { %v220_v0 = vmov 0.0   ;;  %vm221_vm0 = vmmov 0   ;;  %vm66_vm1 = vcmask 1041409   ;;  %s278_s1 = inlined_call_operand.vmem [shape: bf16[128,128], index: 1, kind: input, shape index: {}]   ;;  %s279_s0 = inlined_call_operand.vmem [shape: bf16[2,16,128], index: 0, kind: input, shape index: {}]   ;;  %s280_s2 = inlined_call_operand.vmem [shape: f32[1,128], index: 2, kind: input, shape index: {}]   ;;  %s281_s3 = inlined_call_operand.vmem [shape: f32[2,128], index: 3, kind: output, shape index: {}]  }
   0x1   :  { %190 = vmatprep.subr.bf16.mxu0 %v220_v0  ;;  %v212_v1 = vld [vmem:[%s278_s1] sm:$0xff]   ;;  %206 = vmatprep.mubr.msk.bf16.mxu0 %vm221_vm0, %v220_v0  ;;  %v213_v2 = vld [vmem:[%s278_s1 + $0x8] sm:$0xff]   ;;  %v214_v3 = vld [vmem:[%s278_s1 + $0x10] sm:$0xff]  }
   0x2   :  { %191 = vmatpush3.bf16.msra.mxu0 %v212_v1  ;;  %v173_v4 = vld [vmem:[%s279_s0] sm:$0xff]   ;;  %v180_v5 = vld [vmem:[%s279_s0 + $0x8] sm:$0xff]   ;;  %v215_v10 = vld [vmem:[%s278_s1 + $0x18] sm:$0xff]  }
   0x3   :  { %192 = vmatprep.subr.bf16.mxu0 %v220_v0  ;;  %v174_v6 = vunpack.c.l.bf16 %v173_v4  ;;  %v175_v7 = vunpack.c.h.bf16 %v173_v4  ;;  %v178_v8 = vunpack.c.l.bf16 %v180_v5  ;;  %v179_v9 = vunpack.c.h.bf16 %v180_v5  ;;  %v216_v15 = vld [vmem:[%s278_s1 + $0x20] sm:$0xff]   ;;  %v217_v20 = vld [vmem:[%s278_s1 + $0x28] sm:$0xff]   ;;  %v218_v25 = vld [vmem:[%s278_s1 + $0x30] sm:$0xff]  }
   0x4   :  { %v219_v30 = vld [vmem:[%s278_s1 + $0x38] sm:$0xff]   ;;  %v163_v35 = vld [vmem:[%s280_s2] ss:$0 sm:$0xff] }
   0x5   :  { %v23_v11 = vmax.f32 %v174_v6, %v175_v7  ;;  %v30_v12 = vmax.f32 %v178_v8, %v179_v9 }
   0x6   :  { %193 = vmatpush3.bf16.msra.mxu0 %v213_v2 }
   0x7   :  { %194 = vmatprep.subr.bf16.mxu0 %v220_v0  ;;  %v24_v13 = vrot.slane %v23_v11, 4  ;;  %v31_v14 = vrot.slane %v30_v12, 4 }
   0x9   :  { %v25_v16 = vmax.f32 %v23_v11, %v24_v13  ;;  %v32_v17 = vmax.f32 %v30_v12, %v31_v14 }
   0xa   :  { %195 = vmatpush3.bf16.msra.mxu0 %v214_v3 }
   0xb   :  { %196 = vmatprep.subr.bf16.mxu0 %v220_v0  ;;  %v26_v18 = vrot.slane %v25_v16, 2  ;;  %v33_v19 = vrot.slane %v32_v17, 2 }
   0xd   :  { %v27_v21 = vmax.f32 %v25_v16, %v26_v18  ;;  %v34_v22 = vmax.f32 %v32_v17, %v33_v19 }
   0xe   :  { %197 = vmatpush3.bf16.msra.mxu0 %v215_v10 }
   0xf   :  { %198 = vmatprep.subr.bf16.mxu0 %v220_v0  ;;  %v28_v23 = vrot.slane %v27_v21, 1  ;;  %v35_v24 = vrot.slane %v34_v22, 1 }
  0x11   :  { %v29_v26 = vmax.f32 %v27_v21, %v28_v23  ;;  %v36_v27 = vmax.f32 %v34_v22, %v35_v24 }
  0x12   :  { %199 = vmatpush3.bf16.msra.mxu0 %v216_v15 }
  0x13   :  { %200 = vmatprep.subr.bf16.mxu0 %v220_v0  ;;  %v37_v28 = vpack.c.bf16 %v29_v26, %v29_v26  ;;  %v38_v29 = vpack.c.bf16 %v36_v27, %v36_v27 }
  0x15   :  { %v64_v31 = vunpack.c.l.b16 %v37_v28  ;;  %v65_v32 = vunpack.c.l.b16 %v38_v29 }
  0x16   :  { %201 = vmatpush3.bf16.msra.mxu0 %v217_v20 }
  0x17   :  { %202 = vmatprep.subr.bf16.mxu0 %v220_v0  ;;  %v67_v33 = vsel %vm66_vm1, %v65_v32, %v64_v31 }
  0x18   :  { %v68_v34 = vpack.c.b16 %v67_v33, %v67_v33 }
  0x1a   :  { %203 = vmatpush3.bf16.msra.mxu0 %v218_v25 }
  0x1b   :  { %204 = vmatprep.subr.bf16.mxu0 %v220_v0 }
  0x1e   :  { %205 = vmatpush3.bf16.msra.mxu0 %v219_v30 }
  0x21   :  { %207 = vmatmul.mubr.bf16.vlgmr.msra.gmra.mrb[0].mxu0 %v68_v34 }
  0xf4   :  { %v152_v36 = vpop.f32.mrb[0].mxu0 }
  0xf5   :  { %v153_v37 = vadd.f32 %v163_v35, %v152_v36  ;;  %v208_v38 = vpop.f32.mrb[1].mxu0 }
  0xf6   :  { %v155_v39 = vpop.f32.mrb[2].mxu0 }
  0xf7   :  { %158 = vst [vmem:[%s281_s3] sm:$0x3] %v153_v37  ;;  %v209_v40 = vpop.f32.mrb[3].mxu0 }

</bundles_post_ra>
